<compile_context>
chip_gen: v6e
topology: v6e:2x2x1
jax: 0.10.0
libtpu: 0.0.40
codegen_flags: <defaults>
</compile_context>

<pallas_src>
import functools

import jax
import jax.numpy as jnp
from jax import lax
from jax.experimental import pallas as pl
from jax.experimental.pallas import tpu as pltpu

EPS = 1e-5          # nn.BatchNorm2d default eps
NEG_SLOPE = 0.01    # nn.LeakyReLU default negative_slope


# --------------------------------------------------------------------------
# Kernel 1: phase-decomposed transposed conv (single im2col dot per image)
#           + per-image channel moments for the two-pass BatchNorm.
# --------------------------------------------------------------------------
def _make_conv_kernel(A, B, U, Cin, PC):
    UUC = U * U * Cin

    def kernel(x_ref, w_ref, conv_ref, mom_ref, patch_ref):
        # x_ref:     (1, A+U-1, B+U-1, Cin)  bf16  compact padded input (no dilation)
        # w_ref:     (U*U*Cin, PC)           bf16  unified phase weights
        # conv_ref:  (1, A*B, PC)            f32   conv output (pre-BN)
        # mom_ref:   (1, 2, PC)              f32   [sum, sum of squares] per (phase,ch)
        # patch_ref: (A, B, U*U*Cin)         bf16  small im2col staging buffer (~18 KB)

        # im2col staging: U*U shifted static slices of the compact input.
        for dh in range(U):
            for dw in range(U):
                c0 = (dh * U + dw) * Cin
                patch_ref[:, :, c0:c0 + Cin] = x_ref[0, dh:dh + A, dw:dw + B, :]

        # Layout-preserving collapse (leading dims merge, last dim untouched).
        patch = patch_ref[...].reshape(A * B, UUC)

        # Single MXU contraction per image: (A*B, U*U*Cin) @ (U*U*Cin, s*s*Cout).
        y = jnp.dot(patch, w_ref[...], preferred_element_type=jnp.float32)

        # Per-image moments (reduced over N / phases in the wrapper) -> BN stats.
        mom_ref[0, 0:1, :] = jnp.sum(y, axis=0, keepdims=True)
        mom_ref[0, 1:2, :] = jnp.sum(y * y, axis=0, keepdims=True)

        conv_ref[0] = y

    return kernel


# --------------------------------------------------------------------------
# Kernel 2: BatchNorm (precomputed scale/shift) + LeakyReLU, lane-dense.
# --------------------------------------------------------------------------
def _bn_lrelu_kernel(conv_ref, scale_ref, shift_ref, out_ref):
    # conv_ref/out_ref: (1, A, B*s*s*Cout) f32  (last dim 512 -> full-width vst)
    # scale_ref/shift_ref: (1, B*s*s*Cout) f32
    z = conv_ref[0] * scale_ref[...] + shift_ref[...]
    # LeakyReLU(z) == max(z, slope*z) for 0 < slope < 1 (single VPU max).
    out_ref[0] = jnp.maximum(z, NEG_SLOPE * z)


# --------------------------------------------------------------------------
# Wrapper
# --------------------------------------------------------------------------
def decoder_block_forward(x_nchw, w_t, bias, gamma, beta, *,
                          stride, padding, output_padding,
                          compute_dtype=jnp.bfloat16):
    """x_nchw: (N, Cin, H, W); w_t: PyTorch ConvTranspose2d weight (Cin, Cout, KH, KW)."""
    del bias  # exactly cancelled by train-mode BatchNorm's mean subtraction

    N, Cin, H, W = x_nchw.shape
    Cin_w, Cout, KH, KW = w_t.shape
    assert Cin_w == Cin and KH == KW, "square kernels only"
    K, s, p, op = KH, stride, padding, output_padding

    OH = (H - 1) * s - 2 * p + K + op
    OW = (W - 1) * s - 2 * p + K + op
    # TODO(synk): fall back to a dilated-input formulation for configs where the
    # clean phase decomposition below does not apply (K % s != 0 or OH/OW % s != 0).
    assert K % s == 0 and OH % s == 0 and OW % s == 0, "unsupported deconv geometry"

    T = K // s                      # taps per phase per axis
    A, Bw = OH // s, OW // s        # per-phase output height/width
    PC = s * s * Cout               # phases folded into channels

    # ---- per-phase tap geometry ----
    q = [(r + p) // s for r in range(s)]
    k0 = [(r + p) % s for r in range(s)]
    qmin, qmax = min(q), max(q)
    lo = qmin - (T - 1)             # most-negative input offset used by any tap
    U = qmax - lo + 1               # unified patch window per axis

    # ---- unified phase weights: (U, U, Cin, s, s, Cout) -> (U*U*Cin, PC) ----
    Wu = jnp.zeros((U, U, Cin, s, s, Cout), jnp.float32)
    for rh in range(s):
        for jh in range(T):
            dh = q[rh] - jh - lo
            kh = k0[rh] + jh * s
            for rw in range(s):
                for jw in range(T):
                    dw = q[rw] - jw - lo
                    kw = k0[rw] + jw * s
                    Wu = Wu.at[dh, dw, :, rh, rw, :].set(w_t[:, :, kh, kw])
    w_mat = Wu.reshape(U * U * Cin, PC).astype(compute_dtype)

    # ---- compact padded input (no zero-dilation): xp[i] = x[i + lo] ----
    x = jnp.transpose(x_nchw, (0, 2, 3, 1))            # NHWC
    Hp, Wp = A + U - 1, Bw + U - 1
    xp = jnp.zeros((N, Hp, Wp, Cin), jnp.float32)
    i0, i1 = max(0, -lo), min(Hp, H - lo)
    j0, j1 = max(0, -lo), min(Wp, W - lo)
    xp = xp.at[:, i0:i1, j0:j1, :].set(
        x[:, i0 + lo:i1 + lo, j0 + lo:j1 + lo, :])
    xp = xp.astype(compute_dtype)

    # ---- pass 1: conv + per-image moments (grid over N, parallel) ----
    conv_kernel = _make_conv_kernel(A, Bw, U, Cin, PC)
    conv_flat, moments = pl.pallas_call(
        conv_kernel,
        grid=(N,),
        in_specs=[
            pl.BlockSpec((1, Hp, Wp, Cin), lambda n: (n, 0, 0, 0)),
            pl.BlockSpec((U * U * Cin, PC), lambda n: (0, 0)),
        ],
        out_specs=[
            pl.BlockSpec((1, A * Bw, PC), lambda n: (n, 0, 0)),
            pl.BlockSpec((1, 2, PC), lambda n: (n, 0, 0)),
        ],
        out_shape=[
            jax.ShapeDtypeStruct((N, A * Bw, PC), jnp.float32),
            jax.ShapeDtypeStruct((N, 2, PC), jnp.float32),
        ],
        scratch_shapes=[pltpu.VMEM((A, Bw, U * U * Cin), compute_dtype)],
        compiler_params=pltpu.CompilerParams(
            dimension_semantics=("parallel",)),
    )(xp, w_mat)

    # ---- BN statistics over the whole batch (tiny: 2 * Cout scalars) ----
    cnt = float(N * OH * OW)
    sums = jnp.sum(moments[:, 0, :].reshape(N, s * s, Cout), axis=(0, 1))
    sqs = jnp.sum(moments[:, 1, :].reshape(N, s * s, Cout), axis=(0, 1))
    mean = sums / cnt
    var = jnp.maximum(sqs / cnt - mean * mean, 0.0)      # biased (train-mode) variance
    scale = gamma.astype(jnp.float32) * lax.rsqrt(var + EPS)
    shift = beta.astype(jnp.float32) - mean * scale
    # lane-dense column index: col = b*PC + (rh*s+rw)*Cout + co  ->  channel = col % Cout
    scale_row = jnp.tile(scale, Bw * s * s).reshape(1, Bw * PC)
    shift_row = jnp.tile(shift, Bw * s * s).reshape(1, Bw * PC)

    # Free row-major re-view to a lane-dense layout (last dim 512 >= 128).
    conv_ld = conv_flat.reshape(N, A, Bw * PC)

    # ---- pass 2: normalize + LeakyReLU (grid over N, parallel, lane-dense) ----
    out_ld = pl.pallas_call(
        _bn_lrelu_kernel,
        grid=(N,),
        in_specs=[
            pl.BlockSpec((1, A, Bw * PC), lambda n: (n, 0, 0)),
            pl.BlockSpec((1, Bw * PC), lambda n: (0, 0)),
            pl.BlockSpec((1, Bw * PC), lambda n: (0, 0)),
        ],
        out_specs=pl.BlockSpec((1, A, Bw * PC), lambda n: (n, 0, 0)),
        out_shape=jax.ShapeDtypeStruct((N, A, Bw * PC), jnp.float32),
        compiler_params=pltpu.CompilerParams(
            dimension_semantics=("parallel",)),
    )(conv_ld, scale_row, shift_row)

    # ---- interleave phases back into the spatial grid (wrapper-side plumbing) ----
    z = out_ld.reshape(N, A, Bw, s, s, Cout)             # (n, a, b, rh, rw, co)
    z = jnp.transpose(z, (0, 5, 1, 3, 2, 4))             # (n, co, a, rh, b, rw)
    return z.reshape(N, Cout, OH, OW)                    # NCHW


# --------------------------------------------------------------------------
# Pure-JAX reference (dilated-input ConvTranspose2d + train-mode BN + LeakyReLU)
# --------------------------------------------------------------------------
def reference_forward(x_nchw, w_t, bias, gamma, beta, *,
                      stride, padding, output_padding,
                      compute_dtype=jnp.bfloat16):
    _, Cout, KH, KW = w_t.shape
    x = jnp.transpose(x_nchw, (0, 2, 3, 1)).astype(compute_dtype)
    wm = jnp.transpose(w_t, (2, 3, 0, 1))[::-1, ::-1].astype(compute_dtype)
    plo = KH - 1 - padding
    phi = KH - 1 - padding + output_padding
    y = lax.conv_general_dilated(
        x, wm, window_strides=(1, 1),
        padding=[(plo, phi), (plo, phi)],
        lhs_dilation=(stride, stride),
        dimension_numbers=('NHWC', 'HWIO', 'NHWC'),
        preferred_element_type=jnp.float32) + bias.reshape(1, 1, 1, Cout)
    mean = jnp.mean(y, axis=(0, 1, 2), keepdims=True)
    var = jnp.mean(jnp.square(y - mean), axis=(0, 1, 2), keepdims=True)
    z = (y - mean) * lax.rsqrt(var + EPS) * gamma.reshape(1, 1, 1, Cout) \
        + beta.reshape(1, 1, 1, Cout)
    z = jnp.where(z >= 0, z, NEG_SLOPE * z)
    return jnp.transpose(z, (0, 3, 1, 2))


if __name__ == "__main__":
    # DecoderBlock(in_channels=4, out_channels=8, kernel_size=4,
    #              stride=2, padding=1, output_padding=0)
    N, Cin, H, W = 2, 4, 16, 16
    Cout, K, stride, padding, output_padding = 8, 4, 2, 1, 0

    key = jax.random.PRNGKey(0)
    kx, kw, kb, kg, kbeta = jax.random.split(key, 5)

    x = jax.random.normal(kx, (N, Cin, H, W), jnp.float32)
    w_t = 0.1 * jax.random.normal(kw, (Cin, Cout, K, K), jnp.float32)
    bias = 0.1 * jax.random.normal(kb, (Cout,), jnp.float32)
    gamma = 1.0 + 0.1 * jax.random.normal(kg, (Cout,), jnp.float32)
    beta = 0.1 * jax.random.normal(kbeta, (Cout,), jnp.float32)

    fwd = jax.jit(functools.partial(decoder_block_forward,
                                    stride=stride, padding=padding,
                                    output_padding=output_padding))
    out = fwd(x, w_t, bias, gamma, beta)
    out = jax.block_until_ready(out)

    ref = reference_forward(x, w_t, bias, gamma, beta,
                            stride=stride, padding=padding,
                            output_padding=output_padding)
    ref = jax.block_until_ready(ref)

    OH = (H - 1) * stride - 2 * padding + K + output_padding
    assert out.shape == (N, Cout, OH, OH)
    err = float(jnp.max(jnp.abs(out - ref)))
    assert jnp.allclose(out, ref, rtol=1e-3, atol=1e-3), f"max abs diff {err}"

    print("KERNEL_OK")
</pallas_src>

<mosaic_0001>
module attributes {stable_mosaic.version = 11 : i64} {
  func.func @kernel(%arg0: i32, %arg1: memref<1x18x18x4xbf16, #tpu.memory_space<vmem>>, %arg2: memref<36x32xbf16, #tpu.memory_space<vmem>>, %arg3: memref<1x256x32xf32, #tpu.memory_space<vmem>>, %arg4: memref<1x2x32xf32, #tpu.memory_space<vmem>>, %arg5: memref<16x16x36xbf16, #tpu.memory_space<vmem>>) attributes {dimension_semantics = [#tpu.dimension_semantics<parallel>], iteration_bounds = array<i64: 2>, scalar_prefetch = 0 : i64, scratch_operands = 1 : i64, tpu.core_type = #tpu.core_type<tc>, window_params = [{transform_indices = @transform_0, window_bounds = array<i64: 1, 18, 18, 4>}, {pipeline_mode = #tpu.pipeline_mode<synchronous>, transform_indices = @transform_1, window_bounds = array<i64: 36, 32>}, {transform_indices = @transform_2, window_bounds = array<i64: 1, 256, 32>}, {transform_indices = @transform_3, window_bounds = array<i64: 1, 2, 32>}]} {
    %c0 = arith.constant 0 : index
    %c0_0 = arith.constant 0 : index
    %c0_1 = arith.constant 0 : index
    %c0_2 = arith.constant 0 : index
    %0 = vector.load %arg1[%c0, %c0_0, %c0_1, %c0_2] : memref<1x18x18x4xbf16, #tpu.memory_space<vmem>>, vector<1x16x16x4xbf16>
    %1 = vector.shape_cast %0 : vector<1x16x16x4xbf16> to vector<16x16x4xbf16>
    %c0_3 = arith.constant 0 : index
    %c0_4 = arith.constant 0 : index
    %c0_5 = arith.constant 0 : index
    %2 = vector.load %arg5[%c0_3, %c0_4, %c0_5] : memref<16x16x36xbf16, #tpu.memory_space<vmem>>, vector<16x16x4xbf16>
    tpu.vector_store %arg5[%c0_3, %c0_4, %c0_5], %1 {strides = array<i32>} : memref<16x16x36xbf16, #tpu.memory_space<vmem>>, vector<16x16x4xbf16>,
    %c0_6 = arith.constant 0 : index
    %c0_7 = arith.constant 0 : index
    %c1 = arith.constant 1 : index
    %c0_8 = arith.constant 0 : index
    %3 = vector.load %arg1[%c0_6, %c0_7, %c1, %c0_8] : memref<1x18x18x4xbf16, #tpu.memory_space<vmem>>, vector<1x16x16x4xbf16>
    %4 = vector.shape_cast %3 : vector<1x16x16x4xbf16> to vector<16x16x4xbf16>
    %c0_9 = arith.constant 0 : index
    %c0_10 = arith.constant 0 : index
    %c4 = arith.constant 4 : index
    %5 = vector.load %arg5[%c0_9, %c0_10, %c4] : memref<16x16x36xbf16, #tpu.memory_space<vmem>>, vector<16x16x4xbf16>
    tpu.vector_store %arg5[%c0_9, %c0_10, %c4], %4 {strides = array<i32>} : memref<16x16x36xbf16, #tpu.memory_space<vmem>>, vector<16x16x4xbf16>,
    %c0_11 = arith.constant 0 : index
    %c0_12 = arith.constant 0 : index
    %c2 = arith.constant 2 : index
    %c0_13 = arith.constant 0 : index
    %6 = vector.load %arg1[%c0_11, %c0_12, %c2, %c0_13] : memref<1x18x18x4xbf16, #tpu.memory_space<vmem>>, vector<1x16x16x4xbf16>
    %7 = vector.shape_cast %6 : vector<1x16x16x4xbf16> to vector<16x16x4xbf16>
    %c0_14 = arith.constant 0 : index
    %c0_15 = arith.constant 0 : index
    %c8 = arith.constant 8 : index
    %8 = vector.load %arg5[%c0_14, %c0_15, %c8] : memref<16x16x36xbf16, #tpu.memory_space<vmem>>, vector<16x16x4xbf16>
    tpu.vector_store %arg5[%c0_14, %c0_15, %c8], %7 {strides = array<i32>} : memref<16x16x36xbf16, #tpu.memory_space<vmem>>, vector<16x16x4xbf16>,
    %c0_16 = arith.constant 0 : index
    %c1_17 = arith.constant 1 : index
    %c0_18 = arith.constant 0 : index
    %c0_19 = arith.constant 0 : index
    %9 = vector.load %arg1[%c0_16, %c1_17, %c0_18, %c0_19] : memref<1x18x18x4xbf16, #tpu.memory_space<vmem>>, vector<1x16x16x4xbf16>
    %10 = vector.shape_cast %9 : vector<1x16x16x4xbf16> to vector<16x16x4xbf16>
    %c0_20 = arith.constant 0 : index
    %c0_21 = arith.constant 0 : index
    %c12 = arith.constant 12 : index
    %11 = vector.load %arg5[%c0_20, %c0_21, %c12] : memref<16x16x36xbf16, #tpu.memory_space<vmem>>, vector<16x16x4xbf16>
    tpu.vector_store %arg5[%c0_20, %c0_21, %c12], %10 {strides = array<i32>} : memref<16x16x36xbf16, #tpu.memory_space<vmem>>, vector<16x16x4xbf16>,
    %c0_22 = arith.constant 0 : index
    %c1_23 = arith.constant 1 : index
    %c1_24 = arith.constant 1 : index
    %c0_25 = arith.constant 0 : index
    %12 = vector.load %arg1[%c0_22, %c1_23, %c1_24, %c0_25] : memref<1x18x18x4xbf16, #tpu.memory_space<vmem>>, vector<1x16x16x4xbf16>
    %13 = vector.shape_cast %12 : vector<1x16x16x4xbf16> to vector<16x16x4xbf16>
    %c0_26 = arith.constant 0 : index
    %c0_27 = arith.constant 0 : index
    %c16 = arith.constant 16 : index
    %14 = vector.load %arg5[%c0_26, %c0_27, %c16] : memref<16x16x36xbf16, #tpu.memory_space<vmem>>, vector<16x16x4xbf16>
    tpu.vector_store %arg5[%c0_26, %c0_27, %c16], %13 {strides = array<i32>} : memref<16x16x36xbf16, #tpu.memory_space<vmem>>, vector<16x16x4xbf16>,
    %c0_28 = arith.constant 0 : index
    %c1_29 = arith.constant 1 : index
    %c2_30 = arith.constant 2 : index
    %c0_31 = arith.constant 0 : index
    %15 = vector.load %arg1[%c0_28, %c1_29, %c2_30, %c0_31] : memref<1x18x18x4xbf16, #tpu.memory_space<vmem>>, vector<1x16x16x4xbf16>
    %16 = vector.shape_cast %15 : vector<1x16x16x4xbf16> to vector<16x16x4xbf16>
    %c0_32 = arith.constant 0 : index
    %c0_33 = arith.constant 0 : index
    %c20 = arith.constant 20 : index
    %17 = vector.load %arg5[%c0_32, %c0_33, %c20] : memref<16x16x36xbf16, #tpu.memory_space<vmem>>, vector<16x16x4xbf16>
    tpu.vector_store %arg5[%c0_32, %c0_33, %c20], %16 {strides = array<i32>} : memref<16x16x36xbf16, #tpu.memory_space<vmem>>, vector<16x16x4xbf16>,
    %c0_34 = arith.constant 0 : index
    %c2_35 = arith.constant 2 : index
    %c0_36 = arith.constant 0 : index
    %c0_37 = arith.constant 0 : index
    %18 = vector.load %arg1[%c0_34, %c2_35, %c0_36, %c0_37] : memref<1x18x18x4xbf16, #tpu.memory_space<vmem>>, vector<1x16x16x4xbf16>
    %19 = vector.shape_cast %18 : vector<1x16x16x4xbf16> to vector<16x16x4xbf16>
    %c0_38 = arith.constant 0 : index
    %c0_39 = arith.constant 0 : index
    %c24 = arith.constant 24 : index
    %20 = vector.load %arg5[%c0_38, %c0_39, %c24] : memref<16x16x36xbf16, #tpu.memory_space<vmem>>, vector<16x16x4xbf16>
    tpu.vector_store %arg5[%c0_38, %c0_39, %c24], %19 {strides = array<i32>} : memref<16x16x36xbf16, #tpu.memory_space<vmem>>, vector<16x16x4xbf16>,
    %c0_40 = arith.constant 0 : index
    %c2_41 = arith.constant 2 : index
    %c1_42 = arith.constant 1 : index
    %c0_43 = arith.constant 0 : index
    %21 = vector.load %arg1[%c0_40, %c2_41, %c1_42, %c0_43] : memref<1x18x18x4xbf16, #tpu.memory_space<vmem>>, vector<1x16x16x4xbf16>
    %22 = vector.shape_cast %21 : vector<1x16x16x4xbf16> to vector<16x16x4xbf16>
    %c0_44 = arith.constant 0 : index
    %c0_45 = arith.constant 0 : index
    %c28 = arith.constant 28 : index
    %23 = vector.load %arg5[%c0_44, %c0_45, %c28] : memref<16x16x36xbf16, #tpu.memory_space<vmem>>, vector<16x16x4xbf16>
    tpu.vector_store %arg5[%c0_44, %c0_45, %c28], %22 {strides = array<i32>} : memref<16x16x36xbf16, #tpu.memory_space<vmem>>, vector<16x16x4xbf16>,
    %c0_46 = arith.constant 0 : index
    %c2_47 = arith.constant 2 : index
    %c2_48 = arith.constant 2 : index
    %c0_49 = arith.constant 0 : index
    %24 = vector.load %arg1[%c0_46, %c2_47, %c2_48, %c0_49] : memref<1x18x18x4xbf16, #tpu.memory_space<vmem>>, vector<1x16x16x4xbf16>
    %25 = vector.shape_cast %24 : vector<1x16x16x4xbf16> to vector<16x16x4xbf16>
    %c0_50 = arith.constant 0 : index
    %c0_51 = arith.constant 0 : index
    %c32 = arith.constant 32 : index
    %26 = vector.load %arg5[%c0_50, %c0_51, %c32] : memref<16x16x36xbf16, #tpu.memory_space<vmem>>, vector<16x16x4xbf16>
    tpu.vector_store %arg5[%c0_50, %c0_51, %c32], %25 {strides = array<i32>} : memref<16x16x36xbf16, #tpu.memory_space<vmem>>, vector<16x16x4xbf16>,
    %c0_52 = arith.constant 0 : index
    %c0_53 = arith.constant 0 : index
    %c0_54 = arith.constant 0 : index
    %27 = vector.load %arg5[%c0_52, %c0_53, %c0_54] : memref<16x16x36xbf16, #tpu.memory_space<vmem>>, vector<16x16x36xbf16>
    %28 = vector.shape_cast %27 : vector<16x16x36xbf16> to vector<256x36xbf16>
    %c0_55 = arith.constant 0 : index
    %c0_56 = arith.constant 0 : index
    %29 = vector.load %arg2[%c0_55, %c0_56] : memref<36x32xbf16, #tpu.memory_space<vmem>>, vector<36x32xbf16>
    %cst = arith.constant dense<0.000000e+00> : vector<256x32xf32>
    %30 = tpu.matmul %28, %29, %cst {dimension_numbers = #tpu.dot_dimension_numbers<[1], [0], [0], [1], [0, 0, 1, 1], [], []>} : vector<256x36xbf16>, vector<36x32xbf16>, vector<256x32xf32> -> vector<256x32xf32>
    %cst_57 = arith.constant dense<0.000000e+00> : vector<32xf32>
    %31 = vector.multi_reduction <add>, %30, %cst_57 [0] : vector<256x32xf32> to vector<32xf32>
    %32 = vector.shape_cast %31 : vector<32xf32> to vector<1x32xf32>
    %c0_58 = arith.constant 0 : index
    %c0_59 = arith.constant 0 : index
    %c0_60 = arith.constant 0 : index
    %33 = vector.load %arg4[%c0_58, %c0_59, %c0_60] : memref<1x2x32xf32, #tpu.memory_space<vmem>>, vector<1x1x32xf32>
    %34 = vector.shape_cast %33 : vector<1x1x32xf32> to vector<1x32xf32>
    %35 = vector.shape_cast %32 : vector<1x32xf32> to vector<1x1x32xf32>
    tpu.vector_store %arg4[%c0_58, %c0_59, %c0_60], %35 {strides = array<i32>} : memref<1x2x32xf32, #tpu.memory_space<vmem>>, vector<1x1x32xf32>,
    %36 = arith.mulf %30, %30 : vector<256x32xf32>
    %cst_61 = arith.constant dense<0.000000e+00> : vector<32xf32>
    %37 = vector.multi_reduction <add>, %36, %cst_61 [0] : vector<256x32xf32> to vector<32xf32>
    %38 = vector.shape_cast %37 : vector<32xf32> to vector<1x32xf32>
    %c0_62 = arith.constant 0 : index
    %c1_63 = arith.constant 1 : index
    %c0_64 = arith.constant 0 : index
    %39 = vector.load %arg4[%c0_62, %c1_63, %c0_64] : memref<1x2x32xf32, #tpu.memory_space<vmem>>, vector<1x1x32xf32>
    %40 = vector.shape_cast %39 : vector<1x1x32xf32> to vector<1x32xf32>
    %41 = vector.shape_cast %38 : vector<1x32xf32> to vector<1x1x32xf32>
    tpu.vector_store %arg4[%c0_62, %c1_63, %c0_64], %41 {strides = array<i32>} : memref<1x2x32xf32, #tpu.memory_space<vmem>>, vector<1x1x32xf32>,
    %c0_65 = arith.constant 0 : index
    %c0_66 = arith.constant 0 : index
    %c0_67 = arith.constant 0 : index
    %42 = vector.load %arg3[%c0_65, %c0_66, %c0_67] : memref<1x256x32xf32, #tpu.memory_space<vmem>>, vector<1x256x32xf32>
    %43 = vector.shape_cast %42 : vector<1x256x32xf32> to vector<256x32xf32>
    %44 = vector.shape_cast %30 : vector<256x32xf32> to vector<1x256x32xf32>
    tpu.vector_store %arg3[%c0_65, %c0_66, %c0_67], %44 {strides = array<i32>} : memref<1x256x32xf32, #tpu.memory_space<vmem>>, vector<1x256x32xf32>,
    return
  }
  func.func @transform_0(%arg0: i32) -> (i32, i32, i32, i32) {
    %c0_i32 = arith.constant 0 : i32
    %c0_i32_0 = arith.constant 0 : i32
    %c0_i32_1 = arith.constant 0 : i32
    %c0_i32_2 = arith.constant 0 : i32
    return %arg0, %c0_i32, %c0_i32_0, %c0_i32_1 : i32, i32, i32, i32
  }
  func.func @transform_1(%arg0: i32) -> (i32, i32) {
    %c0_i32 = arith.constant 0 : i32
    %c0_i32_0 = arith.constant 0 : i32
    %c0_i32_1 = arith.constant 0 : i32
    return %c0_i32, %c0_i32_0 : i32, i32
  }
  func.func @transform_2(%arg0: i32) -> (i32, i32, i32) {
    %c0_i32 = arith.constant 0 : i32
    %c0_i32_0 = arith.constant 0 : i32
    %c0_i32_1 = arith.constant 0 : i32
    return %arg0, %c0_i32, %c0_i32_0 : i32, i32, i32
  }
  func.func @transform_3(%arg0: i32) -> (i32, i32, i32) {
    %c0_i32 = arith.constant 0 : i32
    %c0_i32_0 = arith.constant 0 : i32
    %c0_i32_1 = arith.constant 0 : i32
    return %arg0, %c0_i32, %c0_i32_0 : i32, i32, i32
  }
}

module attributes {stable_mosaic.version = 11 : i64} {
  func.func @_bn_lrelu_kernel(%arg0: i32, %arg1: memref<1x16x512xf32, #tpu.memory_space<vmem>>, %arg2: memref<1x512xf32, #tpu.memory_space<vmem>>, %arg3: memref<1x512xf32, #tpu.memory_space<vmem>>, %arg4: memref<1x16x512xf32, #tpu.memory_space<vmem>>) attributes {dimension_semantics = [#tpu.dimension_semantics<parallel>], iteration_bounds = array<i64: 2>, scalar_prefetch = 0 : i64, scratch_operands = 0 : i64, tpu.core_type = #tpu.core_type<tc>, window_params = [{transform_indices = @transform_0, window_bounds = array<i64: 1, 16, 512>}, {pipeline_mode = #tpu.pipeline_mode<synchronous>, transform_indices = @transform_1, window_bounds = array<i64: 1, 512>}, {pipeline_mode = #tpu.pipeline_mode<synchronous>, transform_indices = @transform_2, window_bounds = array<i64: 1, 512>}, {transform_indices = @transform_3, window_bounds = array<i64: 1, 16, 512>}]} {
    %c0 = arith.constant 0 : index
    %c0_0 = arith.constant 0 : index
    %c0_1 = arith.constant 0 : index
    %0 = vector.load %arg1[%c0, %c0_0, %c0_1] : memref<1x16x512xf32, #tpu.memory_space<vmem>>, vector<1x16x512xf32>
    %1 = vector.shape_cast %0 : vector<1x16x512xf32> to vector<16x512xf32>
    %c0_2 = arith.constant 0 : index
    %c0_3 = arith.constant 0 : index
    %2 = vector.load %arg2[%c0_2, %c0_3] : memref<1x512xf32, #tpu.memory_space<vmem>>, vector<1x512xf32>
    %3 = vector.broadcast %2 : vector<1x512xf32> to vector<16x512xf32>
    %4 = arith.mulf %1, %3 : vector<16x512xf32>
    %c0_4 = arith.constant 0 : index
    %c0_5 = arith.constant 0 : index
    %5 = vector.load %arg3[%c0_4, %c0_5] : memref<1x512xf32, #tpu.memory_space<vmem>>, vector<1x512xf32>
    %6 = vector.broadcast %5 : vector<1x512xf32> to vector<16x512xf32>
    %7 = arith.addf %4, %6 : vector<16x512xf32>
    %cst = arith.constant 0.00999999977 : f32
    %8 = vector.broadcast %cst : f32 to vector<16x512xf32>
    %9 = arith.mulf %8, %7 : vector<16x512xf32>
    %10 = arith.maximumf %7, %9 : vector<16x512xf32>
    %c0_6 = arith.constant 0 : index
    %c0_7 = arith.constant 0 : index
    %c0_8 = arith.constant 0 : index
    %11 = vector.load %arg4[%c0_6, %c0_7, %c0_8] : memref<1x16x512xf32, #tpu.memory_space<vmem>>, vector<1x16x512xf32>
    %12 = vector.shape_cast %11 : vector<1x16x512xf32> to vector<16x512xf32>
    %13 = vector.shape_cast %10 : vector<16x512xf32> to vector<1x16x512xf32>
    tpu.vector_store %arg4[%c0_6, %c0_7, %c0_8], %13 {strides = array<i32>} : memref<1x16x512xf32, #tpu.memory_space<vmem>>, vector<1x16x512xf32>,
    return
  }
  func.func @transform_0(%arg0: i32) -> (i32, i32, i32) {
    %c0_i32 = arith.constant 0 : i32
    %c0_i32_0 = arith.constant 0 : i32
    %c0_i32_1 = arith.constant 0 : i32
    return %arg0, %c0_i32, %c0_i32_0 : i32, i32, i32
  }
  func.func @transform_1(%arg0: i32) -> (i32, i32) {
    %c0_i32 = arith.constant 0 : i32
    %c0_i32_0 = arith.constant 0 : i32
    %c0_i32_1 = arith.constant 0 : i32
    return %c0_i32, %c0_i32_0 : i32, i32
  }
  func.func @transform_2(%arg0: i32) -> (i32, i32) {
    %c0_i32 = arith.constant 0 : i32
    %c0_i32_0 = arith.constant 0 : i32
    %c0_i32_1 = arith.constant 0 : i32
    return %c0_i32, %c0_i32_0 : i32, i32
  }
  func.func @transform_3(%arg0: i32) -> (i32, i32, i32) {
    %c0_i32 = arith.constant 0 : i32
    %c0_i32_0 = arith.constant 0 : i32
    %c0_i32_1 = arith.constant 0 : i32
    return %arg0, %c0_i32, %c0_i32_0 : i32, i32, i32
  }
}

</mosaic_0001>

<bundles_post_ra>
// kernel: tile.18
= control target key start
LH: loop header
LB: loop body
LE: loop exit
PB: predicated region body
PF: predicated region fallthrough
CT: control target
= control target key end

     0   :  { %s64_s0 = inlined_call_operand.vmem [shape: f32[8], index: 0, kind: input, shape index: {}]   ;;  %s65_s1 = inlined_call_operand.vmem [shape: f32[64,8], index: 1, kind: output, shape index: {}]  }
   0x1   :  { %v4_v0 = vld [vmem:[%s64_s0] ss:$0 sm:$0xff] }
   0x2   :  { %5 = vst [vmem:[%s65_s1] sm:$0xff] %v4_v0  ;;  %20 = vst [vmem:[%s65_s1 + $0x8] sm:$0xff] %v4_v0 }
   0x3   :  { %21 = vst [vmem:[%s65_s1 + $0x10] sm:$0xff] %v4_v0  ;;  %22 = vst [vmem:[%s65_s1 + $0x18] sm:$0xff] %v4_v0 }
   0x4   :  { %23 = vst [vmem:[%s65_s1 + $0x20] sm:$0xff] %v4_v0  ;;  %24 = vst [vmem:[%s65_s1 + $0x28] sm:$0xff] %v4_v0 }
   0x5   :  { %25 = vst [vmem:[%s65_s1 + $0x30] sm:$0xff] %v4_v0  ;;  %26 = vst [vmem:[%s65_s1 + $0x38] sm:$0xff] %v4_v0 }

// kernel: tile.19
= control target key start
LH: loop header
LB: loop body
LE: loop exit
PB: predicated region body
PF: predicated region fallthrough
CT: control target
= control target key end

     0   :  { %vm6_vm0 = vcmask 1043458   ;;  %s11_s6 = smov 3  ;;  %s14_s7 = smov 12  ;;  %vm8_vm1 = vcmask 64512   ;;  %vm20_vm2 = vcmask 1048512   ;;  %vm32_vm3 = vcmask 982912   ;;  %s417_s0 = inlined_call_operand.vmem [shape: f32[64,8], index: 0, kind: input, shape index: {}]   ;;  %s418_s1 = inlined_call_operand.vmem [shape: f32[1,512], index: 1, kind: output, shape index: {}]  }
   0x1   :  { %v220_v0 = vld [vmem:[%s417_s0 + $0xf] ss:$16 sm:%s11_s6]   ;;  %s35_s12 = smov 3  ;;  %s38_s15 = smov 12  ;;  %vm44_vm4 = vcmask 917312   ;;  %vm56_vm5 = vcmask 851712  }
   0x2   :  { %v221_v1 = vld [vmem:[%s417_s0 + $0xf] ss:$16 sm:%s14_s7]   ;;  %v224_v3 = vld [vmem:[%s417_s0 + $0xd] ss:$16 sm:%s35_s12]   ;;  %s268_s16 = smov 120   ;;  %s23_s19 = smov 3 }
   0x3   :  { %v17_v2 = vsel %vm6_vm0, %v221_v1, %v220_v0  ;;  %v225_v4 = vld [vmem:[%s417_s0 + $0xd] ss:$16 sm:%s38_s15]   ;;  %s26_s20 = smov 12  ;;  %v222_v6 = vld [vmem:[%s417_s0 + $0xe] ss:$16 sm:%s23_s19]   ;;  %s47_s25 = smov 3 }
   0x4   :  { %18 = vrot.lane.b32.xlu0 %v17_v2, %s268_s16  ;;  %v41_v5 = vsel %vm6_vm0, %v225_v4, %v224_v3  ;;  %v223_v7 = vld [vmem:[%s417_s0 + $0xe] ss:$16 sm:%s26_s20]   ;;  %s269_s26 = smov 104   ;;  %s50_s29 = smov 12  ;;  %vm68_vm6 = vcmask 786112   ;;  %vm80_vm7 = vcmask 720512  }
   0x5   :  { %42 = vrot.lane.b32.xlu1 %v41_v5, %s269_s26  ;;  %v29_v8 = vsel %vm6_vm0, %v223_v7, %v222_v6  ;;  %v226_v9 = vld [vmem:[%s417_s0 + $0xc] ss:$16 sm:%s47_s25]   ;;  %s59_s3 = smov 3  ;;  %s62_s4 = smov 12  ;;  %vm92_vm8 = vcmask 654912   ;;  %vm104_vm9 = vcmask 589312  }
   0x6   :  { %v227_v10 = vld [vmem:[%s417_s0 + $0xc] ss:$16 sm:%s50_s29]   ;;  %s270_s5 = smov 112   ;;  %v228_v12 = vld [vmem:[%s417_s0 + $0xb] ss:$16 sm:%s59_s3]   ;;  %s71_s8 = smov 3 }
   0x7   :  { %v53_v11 = vsel %vm6_vm0, %v227_v10, %v226_v9  ;;  %v229_v13 = vld [vmem:[%s417_s0 + $0xb] ss:$16 sm:%s62_s4]   ;;  %v230_v14 = vld [vmem:[%s417_s0 + $0xa] ss:$16 sm:%s71_s8]   ;;  %s74_s13 = smov 12  ;;  %s271_s14 = smov 96  }
   0x8   :  { %30 = vrot.lane.b32.xlu0 %v29_v8, %s270_s5  ;;  %v65_v15 = vsel %vm6_vm0, %v229_v13, %v228_v12  ;;  %v231_v16 = vld [vmem:[%s417_s0 + $0xa] ss:$16 sm:%s74_s13]   ;;  %s83_s17 = smov 3  ;;  %s86_s18 = smov 12  ;;  %vm116_vm10 = vcmask 523712   ;;  %vm128_vm11 = vcmask 458112  }
   0x9   :  { %54 = vrot.lane.b32.xlu1 %v53_v11, %s271_s14  ;;  %v77_v17 = vsel %vm6_vm0, %v231_v16, %v230_v14  ;;  %v232_v18 = vld [vmem:[%s417_s0 + $0x9] ss:$16 sm:%s83_s17]   ;;  %s95_s23 = smov 3  ;;  %s272_s24 = smov 88   ;;  %vm140_vm12 = vcmask 392512   ;;  %vm152_vm13 = vcmask 326912  }
   0xa   :  { %v233_v19 = vld [vmem:[%s417_s0 + $0x9] ss:$16 sm:%s86_s18]   ;;  %v234_v20 = vld [vmem:[%s417_s0 + $0x8] ss:$16 sm:%s95_s23]   ;;  %s98_s27 = smov 12  ;;  %s107_s30 = smov 3 }
   0xb   :  { %v89_v21 = vsel %vm6_vm0, %v233_v19, %v232_v18  ;;  %v235_v22 = vld [vmem:[%s417_s0 + $0x8] ss:$16 sm:%s98_s27]   ;;  %s110_s2 = smov 12  ;;  %s273_s3 = smov 80   ;;  %v236_v23 = vld [vmem:[%s417_s0 + $0x7] ss:$16 sm:%s107_s30]  }
   0xc   :  { %66 = vrot.lane.b32.xlu0 %v65_v15, %s272_s24  ;;  %s119_s6 = smov 3  ;;  %v101_v24 = vsel %vm6_vm0, %v235_v22, %v234_v20  ;;  %v237_v25 = vld [vmem:[%s417_s0 + $0x7] ss:$16 sm:%s110_s2]   ;;  %s122_s11 = smov 12  ;;  %vm164_vm14 = vcmask 261312   ;;  %vm176_vm15 = vcmask 195712  }
   0xd   :  { %78 = vrot.lane.b32.xlu1 %v77_v17, %s273_s3  ;;  %v238_v26 = vld [vmem:[%s417_s0 + $0x6] ss:$16 sm:%s119_s6]   ;;  %s274_s12 = smov 72   ;;  %s131_s15 = smov 3  ;;  %v113_v28 = vsel %vm6_vm0, %v237_v25, %v236_v23 }
   0xe   :  { %v239_v27 = vld [vmem:[%s417_s0 + $0x6] ss:$16 sm:%s122_s11]   ;;  %s134_s16 = smov 12  ;;  %v240_v29 = vld [vmem:[%s417_s0 + $0x5] ss:$16 sm:%s131_s15]   ;;  %s143_s19 = smov 3 }
   0xf   :  { %s275_s20 = smov 64   ;;  %v241_v30 = vld [vmem:[%s417_s0 + $0x5] ss:$16 sm:%s134_s16]   ;;  %s146_s23 = smov 12  ;;  %v125_v31 = vsel %vm6_vm0, %v239_v27, %v238_v26  ;;  %v242_v32 = vld [vmem:[%s417_s0 + $0x4] ss:$16 sm:%s143_s19]  }
  0x10   :  { %90 = vrot.lane.b32.xlu0 %v89_v21, %s274_s12  ;;  %s155_s26 = smov 3  ;;  %s158_s27 = smov 12  ;;  %v243_v33 = vld [vmem:[%s417_s0 + $0x4] ss:$16 sm:%s146_s23]   ;;  %v137_v34 = vsel %vm6_vm0, %v241_v30, %v240_v29 }
  0x11   :  { %102 = vrot.lane.b32.xlu1 %v101_v24, %s275_s20  ;;  %s276_s28 = smov 56   ;;  %s167_s2 = smov 3  ;;  %v244_v35 = vld [vmem:[%s417_s0 + $0x3] ss:$16 sm:%s155_s26]   ;;  %v149_v37 = vsel %vm6_vm0, %v243_v33, %v242_v32 }
  0x12   :  { %s170_s5 = smov 12  ;;  %s277_s6 = smov 48   ;;  %v245_v36 = vld [vmem:[%s417_s0 + $0x3] ss:$16 sm:%s158_s27]   ;;  %v246_v38 = vld [vmem:[%s417_s0 + $0x2] ss:$16 sm:%s167_s2]  }
  0x13   :  { %s179_s9 = smov 3  ;;  %v247_v39 = vld [vmem:[%s417_s0 + $0x2] ss:$16 sm:%s170_s5]   ;;  %s182_s14 = smov 12  ;;  %v161_v41 = vsel %vm6_vm0, %v245_v36, %v244_v35 }
  0x14   :  { %114 = vrot.lane.b32.xlu0 %v113_v28, %s276_s28  ;;  %s2_s15 = smov 3  ;;  %s278_s16 = smov 40   ;;  %v248_v42 = vld [vmem:[%s417_s0 + $0x1] ss:$16 sm:%s179_s9]   ;;  %v173_v46 = vsel %vm6_vm0, %v247_v39, %v246_v38 }
  0x15   :  { %126 = vrot.lane.b32.xlu1 %v125_v31, %s277_s6  ;;  %v3_v40 = vld [vmem:[%s417_s0] ss:$16 sm:%s2_s15]   ;;  %s4_s19 = smov 12  ;;  %s279_s24 = smov 32  }
  0x16   :  { %v5_v43 = vld [vmem:[%s417_s0] ss:$16 sm:%s4_s19]   ;;  %v249_v44 = vld [vmem:[%s417_s0 + $0x1] ss:$16 sm:%s182_s14]   ;;  %s280_s0 = smov 24   ;;  %s281_s27 = smov 16  }
  0x17   :  { %v7_v45 = vsel %vm6_vm0, %v5_v43, %v3_v40  ;;  %v185_v47 = vsel %vm6_vm0, %v249_v44, %v248_v42  ;;  %s282_s28 = smov 8   ;;  %vm188_vm0 = vcmask 130112  }
  0x18   :  { %138 = vrot.lane.b32.xlu0 %v137_v34, %s278_s16  ;;  %9 = vst.msk [vmem:[#allocation0] ss:$8 sm:$0xf] %vm8_vm1, %v7_v45  }
  0x19   :  { %150 = vrot.lane.b32.xlu1 %v149_v37, %s279_s24 }
  0x1c   :  { %162 = vrot.lane.b32.xlu0 %v161_v41, %s280_s0 }
  0x1d   :  { %174 = vrot.lane.b32.xlu1 %v173_v46, %s281_s27 }
  0x20   :  { %186 = vrot.lane.b32.xlu0 %v185_v47, %s282_s28 }
  0x76   :  { %v19_v48 = vpop.permute.xlu0 %18  }
  0x77   :  { %21 = vst.msk [vmem:[#allocation0] ss:$8 sm:$0xf] %vm20_vm2, %v19_v48   ;;  %v43_v49 = vpop.permute.xlu1 %42  }
  0x7a   :  { %v31_v50 = vpop.permute.xlu0 %30  }
  0x7b   :  { %33 = vst.msk [vmem:[#allocation0] ss:$8 sm:$0xf] %vm32_vm3, %v31_v50   ;;  %v55_v51 = vpop.permute.xlu1 %54  }
  0x7c   :  { %45 = vst.msk [vmem:[#allocation0] ss:$8 sm:$0xf] %vm44_vm4, %v43_v49  }
  0x7d   :  { %57 = vst.msk [vmem:[#allocation0] ss:$8 sm:$0xf] %vm56_vm5, %v55_v51  }
  0x7e   :  { %v67_v52 = vpop.permute.xlu0 %66  }
  0x7f   :  { %69 = vst.msk [vmem:[#allocation0] ss:$8 sm:$0xf] %vm68_vm6, %v67_v52   ;;  %v79_v53 = vpop.permute.xlu1 %78  }
  0x80   :  { %81 = vst.msk [vmem:[#allocation0] ss:$8 sm:$0xf] %vm80_vm7, %v79_v53  }
  0x82   :  { %v91_v54 = vpop.permute.xlu0 %90  }
  0x83   :  { %93 = vst.msk [vmem:[#allocation0] ss:$8 sm:$0xf] %vm92_vm8, %v91_v54   ;;  %v103_v55 = vpop.permute.xlu1 %102  }
  0x84   :  { %105 = vst.msk [vmem:[#allocation0] ss:$8 sm:$0xf] %vm104_vm9, %v103_v55  }
  0x86   :  { %v115_v56 = vpop.permute.xlu0 %114  }
  0x87   :  { %117 = vst.msk [vmem:[#allocation0] ss:$8 sm:$0xf] %vm116_vm10, %v115_v56   ;;  %v127_v57 = vpop.permute.xlu1 %126  }
  0x88   :  { %129 = vst.msk [vmem:[#allocation0] ss:$8 sm:$0xf] %vm128_vm11, %v127_v57  }
  0x8a   :  { %v139_v58 = vpop.permute.xlu0 %138  }
  0x8b   :  { %141 = vst.msk [vmem:[#allocation0] ss:$8 sm:$0xf] %vm140_vm12, %v139_v58   ;;  %v151_v59 = vpop.permute.xlu1 %150  }
  0x8c   :  { %153 = vst.msk [vmem:[#allocation0] ss:$8 sm:$0xf] %vm152_vm13, %v151_v59  }
  0x8e   :  { %v163_v60 = vpop.permute.xlu0 %162  }
  0x8f   :  { %165 = vst.msk [vmem:[#allocation0] ss:$8 sm:$0xf] %vm164_vm14, %v163_v60   ;;  %v175_v61 = vpop.permute.xlu1 %174  }
  0x90   :  { %177 = vst.msk [vmem:[#allocation0] ss:$8 sm:$0xf] %vm176_vm15, %v175_v61  }
  0x92   :  { %v187_v62 = vpop.permute.xlu0 %186  }
  0x93   :  { %189 = vst.msk [vmem:[#allocation0] ss:$8 sm:$0xf] %vm188_vm0, %v187_v62  }
  0x9a   :  { %v194_v63 = vld [vmem:[#allocation0] sm:$0x1]  ;;  %v199_v0 = vld [vmem:[#allocation0 + $0x8] sm:$0x1]  ;;  %v205_v1 = vld [vmem:[#allocation0 + $0x10] sm:$0x1] }
  0x9b   :  { %197 = vst [vmem:[%s418_s1] sm:$0x1] %v194_v63  ;;  %250 = vst [vmem:[%s418_s1 + $0x1] sm:$0x1] %v199_v0  ;;  %v212_v2 = vld [vmem:[#allocation0 + $0x18] sm:$0x1] }
  0x9c   :  { %251 = vst [vmem:[%s418_s1 + $0x2] sm:$0x1] %v205_v1  ;;  %252 = vst [vmem:[%s418_s1 + $0x3] sm:$0x1] %v212_v2 }

// kernel: decoder_block_forward.3
= control target key start
LH: loop header
LB: loop body
LE: loop exit
PB: predicated region body
PF: predicated region fallthrough
CT: control target
= control target key end

     0   :  { %s367_s12 = smov 0   ;;  %s397_s0 = inlined_call_operand.vmem [shape: f32[2,16,512], index: 0, kind: input, shape index: {}]   ;;  %s398_s1 = inlined_call_operand.vmem [shape: f32[1,512], index: 1, kind: input, shape index: {}]   ;;  %s399_s2 = inlined_call_operand.vmem [shape: f32[1,512], index: 2, kind: input, shape index: {}]   ;;  %s400_s3 = inlined_call_operand.vmem [shape: f32[2,16,512], index: 3, kind: output, shape index: {}]  }
   0x1 LB: > { %s318_s13 = sadd.s32 4294967295, %s345_s12   ;;  %p322_p0 = scmp.ge.s32.totalorder %s345_s12, 1  ;;  %s345_s12 = sphi %s367_s12, %s13_s12  }
   0x2   : > { %p137_p1 = scmp.lt.s32.totalorder %s345_s12, 3 }
   0x4   : > { %p138_p2 = pnand %p322_p0, %p137_p1 }
   0x5   : > { %p161_p3 = scmp.lt.s32.totalorder (!%p138_p2), %s318_s13, 1 }
   0x6   : > { %141 = sbr.rel (%p138_p2) target bundleno = 31 (0x1f), region = 32 }
   0xb   : > { %v181_v0 = vlaneseq  ;;  %s402_s13 = smov (!%p161_p3, %s318_s13), 1  ;;  %v179_v2 = vld [vmem:[%s398_s1] sm:$0xf] }
   0xc   : > { %v209_v3 = vld [vmem:[%s399_s2] sm:$0xf]  ;;  %s329_s18 = sshll.u32 %s402_s13, 6 }
   0xd   : > { %v182_v1 = vshrl.u32 %v181_v0, 7  ;;  %s165_s21 = scalar_lea.vmem %s397_s0, %s329_s18  ;;  %s170_s24 = scalar_lea.vmem %s400_s3, %s329_s18 }
   0xe   : > { %v171_v8 = vld [vmem:[%s165_s21] sm:$0xff]  ;;  %v172_v11 = vld [vmem:[%s165_s21 + $0x8] sm:$0xff]  ;;  %v173_v14 = vld [vmem:[%s165_s21 + $0x10] sm:$0xff] }
   0xf   : > { %v183_v4 = vsub.s32 0, %v182_v1  ;;  %v187_v5 = vsub.s32 1, %v182_v1  ;;  %v191_v6 = vsub.s32 2, %v182_v1  ;;  %v195_v7 = vsub.s32 3, %v182_v1  ;;  %v174_v17 = vld [vmem:[%s165_s21 + $0x18] sm:$0xff]  ;;  %v175_v20 = vld [vmem:[%s165_s21 + $0x20] sm:$0xff] }
  0x10   : > { %v176_v21 = vld [vmem:[%s165_s21 + $0x28] sm:$0xff]  ;;  %v177_v26 = vld [vmem:[%s165_s21 + $0x30] sm:$0xff]  ;;  %v178_v27 = vld [vmem:[%s165_s21 + $0x38] sm:$0xff] }
  0x11   : > { %v184_v9 = vrot.slane %v179_v2, %v183_v4  ;;  %v214_v10 = vrot.slane %v209_v3, %v183_v4  ;;  %v188_v12 = vrot.slane %v179_v2, %v187_v5  ;;  %v218_v13 = vrot.slane %v209_v3, %v187_v5 }
  0x12   : > { %v192_v15 = vrot.slane %v179_v2, %v191_v6  ;;  %v222_v16 = vrot.slane %v209_v3, %v191_v6  ;;  %v196_v18 = vrot.slane %v179_v2, %v195_v7  ;;  %v226_v19 = vrot.slane %v209_v3, %v195_v7 }
  0x13   : > { %v201_v22 = vmul.f32 %v184_v9, %v171_v8  ;;  %v202_v23 = vmul.f32 %v188_v12, %v172_v11  ;;  %v205_v24 = vmul.f32 %v184_v9, %v175_v20  ;;  %v206_v25 = vmul.f32 %v188_v12, %v176_v21 }
  0x14   : > { %v203_v28 = vmul.f32 %v192_v15, %v173_v14  ;;  %v204_v29 = vmul.f32 %v196_v18, %v174_v17  ;;  %v207_v30 = vmul.f32 %v192_v15, %v177_v26  ;;  %v208_v31 = vmul.f32 %v196_v18, %v178_v27 }
  0x15   : > { %v231_v32 = vadd.f32 %v214_v10, %v201_v22  ;;  %v232_v33 = vadd.f32 %v218_v13, %v202_v23  ;;  %v235_v34 = vadd.f32 %v214_v10, %v205_v24  ;;  %v236_v35 = vadd.f32 %v218_v13, %v206_v25 }
  0x16   : > { %v233_v36 = vadd.f32 %v222_v16, %v203_v28  ;;  %v234_v37 = vadd.f32 %v226_v19, %v204_v29  ;;  %v237_v38 = vadd.f32 %v222_v16, %v207_v30  ;;  %v238_v39 = vadd.f32 %v226_v19, %v208_v31 }
  0x17   : > { %v239_v40 = vmul.f32 0.01, %v231_v32  ;;  %v240_v41 = vmul.f32 0.01, %v232_v33  ;;  %v243_v42 = vmul.f32 0.01, %v235_v34 }
  0x18   : > { %v241_v43 = vmul.f32 0.01, %v233_v36  ;;  %v242_v44 = vmul.f32 0.01, %v234_v37  ;;  %v244_v45 = vmul.f32 0.01, %v236_v35 }
  0x19   : > { %v247_v46 = vmax.f32 %v231_v32, %v239_v40  ;;  %v248_v47 = vmax.f32 %v232_v33, %v240_v41  ;;  %v251_v48 = vmax.f32 %v235_v34, %v243_v42  ;;  %v245_v49 = vmul.f32 0.01, %v237_v38 }
  0x1a   : > { %v249_v50 = vmax.f32 %v233_v36, %v241_v43  ;;  %v250_v51 = vmax.f32 %v234_v37, %v242_v44  ;;  %v252_v52 = vmax.f32 %v236_v35, %v244_v45  ;;  %v246_v53 = vmul.f32 0.01, %v238_v39 }
  0x1b   : > { %255 = vst [vmem:[%s170_s24] sm:$0xff] %v247_v46  ;;  %256 = vst [vmem:[%s170_s24 + $0x8] sm:$0xff] %v248_v47  ;;  %v253_v54 = vmax.f32 %v237_v38, %v245_v49 }
  0x1c   : > { %259 = vst [vmem:[%s170_s24 + $0x20] sm:$0xff] %v251_v48  ;;  %257 = vst [vmem:[%s170_s24 + $0x10] sm:$0xff] %v249_v50  ;;  %v254_v55 = vmax.f32 %v238_v39, %v246_v53 }
  0x1d   : > { %258 = vst [vmem:[%s170_s24 + $0x18] sm:$0xff] %v250_v51  ;;  %260 = vst [vmem:[%s170_s24 + $0x28] sm:$0xff] %v252_v52 }
  0x1e   : > { %261 = vst [vmem:[%s170_s24 + $0x30] sm:$0xff] %v253_v54  ;;  %262 = vst [vmem:[%s170_s24 + $0x38] sm:$0xff] %v254_v55 }
  0x1f PF: > { %s13_s12 = sadd.s32 1, %s345_s12  }
  0x20   : > { %p10_p4 = scmp.ge.s32.totalorder %s13_s12, 4  }
  0x22   :  { %12 = sbr.rel (!%p10_p4) target bundleno = 1 (0x1), region = 62 }

// kernel: decoder_block_forward.2
= control target key start
LH: loop header
LB: loop body
LE: loop exit
PB: predicated region body
PF: predicated region fallthrough
CT: control target
= control target key end

     0   :  { %s4462_s12 = smov 0   ;;  %s6057_s0 = inlined_call_operand.vmem [shape: bf16[2,18,18,4], index: 0, kind: input, shape index: {}]   ;;  %s6058_s1 = inlined_call_operand.vmem [shape: bf16[36,32], index: 1, kind: input, shape index: {}]   ;;  %s6059_s2 = inlined_call_operand.vmem [shape: f32[2,256,32], index: 2, kind: output, shape index: {0}]   ;;  %s6060_s3 = inlined_call_operand.vmem [shape: f32[2,2,32], index: 3, kind: output, shape index: {1}]  }
   0x1 LB: > { %s3974_s13 = sadd.s32 4294967295, %s4432_s12   ;;  %p3978_p0 = scmp.ge.s32.totalorder %s4432_s12, 1  ;;  %s4432_s12 = sphi %s4462_s12, %s14_s12  }
   0x2   : > { %p140_p1 = scmp.lt.s32.totalorder %s4432_s12, 3 }
   0x4   : > { %p141_p2 = pnand %p3978_p0, %p140_p1 }
   0x5   : > { %p168_p3 = scmp.lt.s32.totalorder (!%p141_p2), %s3974_s13, 1  ;;  %s4434_s18 = smov (!%p141_p2), 4  }
   0x6   : > { %144 = sbr.rel (%p141_p2) target bundleno = 878 (0x36e), region = 28  ;;  %s4435_s19 = smov (!%p141_p2), 8  }
   0x7   : > { %s4436_s20 = smov (!%p141_p2), 12   ;;  %s4437_s21 = smov (!%p141_p2), 16  }
   0x8   : > { %s4438_s22 = smov (!%p141_p2), 20   ;;  %s4439_s23 = smov (!%p141_p2), 24  }
   0x9   : > { %s4440_s28 = smov (!%p141_p2), 28   ;;  %s4441_s4 = smov (!%p141_p2), 32  }
   0xb   : > { %s6066_s13 = smov (!%p168_p3, %s3974_s13), 1  ;;  %vm296_vm0 = vsmask.f32 3328  ;;  %vm297_vm1 = vsmask.f32 7440  ;;  %vm215_vm3 = vcmask 27648  }
   0xc   : > { %s4390_s14 = smul.u32 216, %s6066_s13  ;;  %vm4487_vm2 = vmor %vm296_vm0, %vm297_vm1  ;;  %vm908_vm4 = vcmask 1042432   ;;  %vm909_vm5 = vcmask 1046532   ;;  %vm779_vm7 = vcmask 60448   ;;  %vm1119_vm8 = vcmask 93248   ;;  %s4324_s5 = sshll.u32 %s6066_s13, 8 }
   0xd   : > { %vm4631_vm6 = vmor %vm908_vm4, %vm909_vm5  ;;  %vm3517_vm9 = vcmask 1041408   ;;  %vm1313_vm10 = vcmask 126048   ;;  %vm1874_vm11 = vcmask 158848   ;;  %vm2211_vm12 = vcmask 191648   ;;  %s5859_s8 = scalar_lea.vmem %s6059_s2, %s4324_s5  ;;  %s3982_s9 = sshll.u32 %s6066_s13, 1 }
   0xe   : > { %s4476_s17 = scalar_lea.vmem %s6057_s0, %s4390_s14  ;;  %vm2405_vm13 = vcmask 224448   ;;  %vm2966_vm14 = vcmask 257248   ;;  %vm3303_vm15 = vcmask 290048   ;;  %vm3468_vm0 = vcmask 293888   ;;  %s181_s14 = scalar_lea.vmem %s6060_s3, %s3982_s9 }
   0xf   : > { %v251_v0 = vld [vmem:[%s4476_s17 + $0xc] sm:$0xf]  ;;  %v252_v1 = vld [vmem:[%s4476_s17 + $0x10] sm:$0xf]  ;;  %v248_v2 = vld [vmem:[%s4476_s17] sm:$0xf] }
  0x10   : > { %v324_v3 = vshrl.u32 %v251_v0, 16  ;;  %v327_v4 = vshll.u32 %v251_v0, 16  ;;  %v333_v5 = vshll.u32 %v252_v1, 16  ;;  %v337_v6 = vshrl.u32 %v252_v1, 16  ;;  %v249_v7 = vld [vmem:[%s4476_s17 + $0x4] sm:$0xf] }
  0x11   : > { %v300_v8 = vshrl.u32 %v248_v2, 16  ;;  %v303_v9 = vshll.u32 %v248_v2, 16  ;;  %v309_v10 = vshll.u32 %v249_v7, 16  ;;  %v313_v11 = vshrl.u32 %v249_v7, 16  ;;  %v253_v12 = vld [vmem:[%s4476_s17 + $0x14] sm:$0x1] }
  0x12   : > { %v326_v13 = vrot.slane %v324_v3, 4  ;;  %v329_v14 = vrot.slane %v327_v4, 5  ;;  %v335_v15 = vrot.slane %v333_v5, 5  ;;  %v339_v16 = vrot.slane %v337_v6, 4  ;;  %v250_v17 = vld [vmem:[%s4476_s17 + $0x8] sm:$0x1] }
  0x13   : > { %v302_v18 = vrot.slane %v300_v8, 4  ;;  %v305_v19 = vrot.slane %v303_v9, 5  ;;  %v311_v20 = vrot.slane %v309_v10, 5  ;;  %v315_v21 = vrot.slane %v313_v11, 4  ;;  %v255_v22 = vld [vmem:[%s4476_s17 + $0x1c] sm:$0xf] }
  0x14   : > { %v330_v23 = vor.u32 %v329_v14, %v326_v13  ;;  %v340_v24 = vor.u32 %v339_v16, %v335_v15  ;;  %v343_v25 = vshll.u32 %v253_v12, 16  ;;  %v319_v26 = vshll.u32 %v250_v17, 16  ;;  %v256_v30 = vld [vmem:[%s4476_s17 + $0x20] sm:$0x1]  ;;  %v254_v33 = vld [vmem:[%s4476_s17 + $0x18] sm:$0xf] }
  0x15   : > { %v306_v28 = vor.u32 %v305_v19, %v302_v18  ;;  %v316_v29 = vor.u32 %v315_v21, %v311_v20  ;;  %v357_v31 = vshll.u32 %v255_v22, 16  ;;  %v361_v32 = vshrl.u32 %v255_v22, 16  ;;  %v258_v42 = vld [vmem:[%s4476_s17 + $0x28] sm:$0xf]  ;;  %v259_v47 = vld [vmem:[%s4476_s17 + $0x2c] sm:$0x1] }
  0x16   : > { %v331_v34 = vrot.slane %v330_v23, 4  ;;  %v341_v35 = vrot.slane %v340_v24, 4  ;;  %v345_v36 = vrot.slane %v343_v25, 5  ;;  %v321_v37 = vrot.slane %v319_v26, 5  ;;  %v257_v48 = vld [vmem:[%s4476_s17 + $0x24] sm:$0xf] }
  0x17   : > { %v307_v38 = vrot.slane %v306_v28, 4  ;;  %v317_v39 = vrot.slane %v316_v29, 4  ;;  %v359_v40 = vrot.slane %v357_v31, 5  ;;  %v363_v41 = vrot.slane %v361_v32, 4  ;;  %v261_v53 = vld [vmem:[%s4476_s17 + $0x34] sm:$0xf] }
  0x18   : > { %v336_v43 = vsel %vm4487_vm2, %v331_v34, %v335_v15  ;;  %v346_v44 = vsel %vm4487_vm2, %v341_v35, %v345_v36  ;;  %v367_v45 = vshll.u32 %v256_v30, 16  ;;  %v348_v46 = vshrl.u32 %v254_v33, 16  ;;  %v262_v62 = vld [vmem:[%s4476_s17 + $0x38] sm:$0x1]  ;;  %v260_v3 = vld [vmem:[%s4476_s17 + $0x30] sm:$0xf] }
  0x19   : > { %687 = vrot.lane.b32.xlu1 %v336_v43, %s4434_s18  ;;  %v312_v49 = vsel %vm4487_vm2, %v307_v38, %v311_v20  ;;  %v322_v50 = vsel %vm4487_vm2, %v317_v39, %v321_v37  ;;  %v364_v51 = vor.u32 %v363_v41, %v359_v40  ;;  %v351_v52 = vshll.u32 %v254_v33, 16  ;;  %v264_v8 = vld [vmem:[%s4476_s17 + $0x40] sm:$0xf]  ;;  %v265_v17 = vld [vmem:[%s4476_s17 + $0x44] sm:$0x1] }
  0x1a   : > { %683 = vrot.lane.b32.xlu0 %v312_v49, %s4434_s18  ;;  %v369_v54 = vrot.slane %v367_v45, 5  ;;  %v350_v55 = vrot.slane %v348_v46, 4  ;;  %v381_v56 = vshll.u32 %v258_v42, 16  ;;  %v385_v57 = vshrl.u32 %v258_v42, 16  ;;  %v263_v22 = vld [vmem:[%s4476_s17 + $0x3c] sm:$0xf] }
  0x1b   : > { %v365_v58 = vrot.slane %v364_v51, 4  ;;  %v353_v59 = vrot.slane %v351_v52, 5  ;;  %v391_v60 = vshll.u32 %v259_v47, 16  ;;  %v372_v61 = vshrl.u32 %v257_v48, 16  ;;  %v267_v28 = vld [vmem:[%s4476_s17 + $0x4c] sm:$0xf] }
  0x1c   : > { %v383_v63 = vrot.slane %v381_v56, 5  ;;  %v387_v0 = vrot.slane %v385_v57, 4  ;;  %v375_v1 = vshll.u32 %v257_v48, 16  ;;  %v405_v2 = vshll.u32 %v261_v53, 16  ;;  %v268_v37 = vld [vmem:[%s4476_s17 + $0x50] sm:$0x1] }
  0x1d   : > { %689 = vrot.lane.b32.xlu1 %v346_v44, %s4434_s18  ;;  %v370_v4 = vsel %vm4487_vm2, %v365_v58, %v369_v54  ;;  %v354_v5 = vor.u32 %v353_v59, %v350_v55  ;;  %v393_v6 = vrot.slane %v391_v60, 5  ;;  %v374_v7 = vrot.slane %v372_v61, 4  ;;  %v266_v42 = vld [vmem:[%s4476_s17 + $0x48] sm:$0xf]  ;;  %v270_v47 = vld [vmem:[%s4476_s17 + $0x58] sm:$0xf] }
  0x1e   : > { %685 = vrot.lane.b32.xlu0 %v322_v50, %s4434_s18  ;;  %v388_v9 = vor.u32 %v387_v0, %v383_v63  ;;  %v377_v10 = vrot.slane %v375_v1, 5  ;;  %v407_v11 = vrot.slane %v405_v2, 5  ;;  %v409_v12 = vshrl.u32 %v261_v53, 16  ;;  %v271_v56 = vld [vmem:[%s4476_s17 + $0x5c] sm:$0x1] }
  0x1f   : > { %v355_v13 = vrot.slane %v354_v5, 4  ;;  %v415_v14 = vshll.u32 %v262_v62, 16  ;;  %v396_v15 = vshrl.u32 %v260_v3, 16  ;;  %v399_v16 = vshll.u32 %v260_v3, 16  ;;  %v269_v61 = vld [vmem:[%s4476_s17 + $0x54] sm:$0xf] }
  0x20   : > { %v389_v18 = vrot.slane %v388_v9, 4  ;;  %v378_v19 = vor.u32 %v377_v10, %v374_v7  ;;  %v411_v20 = vrot.slane %v409_v12, 4  ;;  %v429_v21 = vshll.u32 %v264_v8, 16 }
  0x21   : > { %693 = vrot.lane.b32.xlu1 %v370_v4, %s4434_s18  ;;  %v360_v23 = vsel %vm4487_vm2, %v355_v13, %v359_v40  ;;  %v417_v24 = vrot.slane %v415_v14, 5  ;;  %v398_v25 = vrot.slane %v396_v15, 4  ;;  %v401_v26 = vrot.slane %v399_v16, 5  ;;  %v274_v15 = vld [vmem:[%s4476_s17 + $0x68] sm:$0x1] }
  0x22   : > { %691 = vrot.lane.b32.xlu0 %v360_v23, %s4434_s18  ;;  %v394_v29 = vsel %vm4487_vm2, %v389_v18, %v393_v6  ;;  %v379_v30 = vrot.slane %v378_v19, 4  ;;  %v412_v31 = vor.u32 %v411_v20, %v407_v11  ;;  %v431_v32 = vrot.slane %v429_v21, 5  ;;  %v273_v6 = vld [vmem:[%s4476_s17 + $0x64] sm:$0xf]  ;;  %v272_v16 = vld [vmem:[%s4476_s17 + $0x60] sm:$0xf] }
  0x23   : > { %v402_v33 = vor.u32 %v401_v26, %v398_v25  ;;  %v433_v34 = vshrl.u32 %v264_v8, 16  ;;  %v439_v35 = vshll.u32 %v265_v17, 16  ;;  %v420_v36 = vshrl.u32 %v263_v22, 16  ;;  %v276_v25 = vld [vmem:[%s4476_s17 + $0x70] sm:$0xf] }
  0x24   : > { %v384_v38 = vsel %vm4487_vm2, %v379_v30, %v383_v63  ;;  %v413_v39 = vrot.slane %v412_v31, 4  ;;  %v423_v40 = vshll.u32 %v263_v22, 16  ;;  %v453_v41 = vshll.u32 %v267_v28, 16 }
  0x25   : > { %697 = vrot.lane.b32.xlu1 %v394_v29, %s4434_s18  ;;  %v403_v43 = vrot.slane %v402_v33, 4  ;;  %v435_v44 = vrot.slane %v433_v34, 4  ;;  %v441_v45 = vrot.slane %v439_v35, 5  ;;  %v422_v46 = vrot.slane %v420_v36, 4  ;;  %v277_v35 = vld [vmem:[%s4476_s17 + $0x74] sm:$0x1] }
  0x26   : > { %695 = vrot.lane.b32.xlu0 %v384_v38, %s4434_s18  ;;  %v418_v48 = vsel %vm4487_vm2, %v413_v39, %v417_v24  ;;  %v425_v49 = vrot.slane %v423_v40, 5  ;;  %v455_v50 = vrot.slane %v453_v41, 5  ;;  %v457_v51 = vshrl.u32 %v267_v28, 16  ;;  %v275_v36 = vld [vmem:[%s4476_s17 + $0x6c] sm:$0xf] }
  0x27   : > { %v408_v52 = vsel %vm4487_vm2, %v403_v43, %v407_v11  ;;  %v436_v53 = vor.u32 %v435_v44, %v431_v32  ;;  %v463_v54 = vshll.u32 %v268_v37, 16  ;;  %v444_v55 = vshrl.u32 %v266_v42, 16 }
  0x28   : > { %v426_v57 = vor.u32 %v425_v49, %v422_v46  ;;  %v459_v58 = vrot.slane %v457_v51, 4  ;;  %v447_v59 = vshll.u32 %v266_v42, 16  ;;  %v477_v60 = vshll.u32 %v270_v47, 16 }
  0x29   : > { %701 = vrot.lane.b32.xlu1 %v418_v48, %s4434_s18  ;;  %v437_v62 = vrot.slane %v436_v53, 4  ;;  %v465_v63 = vrot.slane %v463_v54, 5  ;;  %v446_v0 = vrot.slane %v444_v55, 4  ;;  %v481_v1 = vshrl.u32 %v270_v47, 16  ;;  %v280_v54 = vld [vmem:[%s4476_s17 + $0x80] sm:$0x1] }
  0x2a   : > { %699 = vrot.lane.b32.xlu0 %v408_v52, %s4434_s18  ;;  %v427_v2 = vrot.slane %v426_v57, 4  ;;  %v460_v3 = vor.u32 %v459_v58, %v455_v50  ;;  %v449_v4 = vrot.slane %v447_v59, 5  ;;  %v479_v5 = vrot.slane %v477_v60, 5  ;;  %v278_v55 = vld [vmem:[%s4476_s17 + $0x78] sm:$0xf] }
  0x2b   : > { %v442_v7 = vsel %vm4487_vm2, %v437_v62, %v441_v45  ;;  %v483_v8 = vrot.slane %v481_v1, 4  ;;  %v487_v9 = vshll.u32 %v271_v56, 16  ;;  %v468_v10 = vshrl.u32 %v269_v61, 16  ;;  %v279_v45 = vld [vmem:[%s4476_s17 + $0x7c] sm:$0xf] }
  0x2c   : > { %v432_v11 = vsel %vm4487_vm2, %v427_v2, %v431_v32  ;;  %v461_v12 = vrot.slane %v460_v3, 4  ;;  %v450_v13 = vor.u32 %v449_v4, %v446_v0  ;;  %v471_v14 = vshll.u32 %v269_v61, 16  ;;  %v282_v0 = vld [vmem:[%s4476_s17 + $0x88] sm:$0xf] }
  0x2d   : > { %705 = vrot.lane.b32.xlu1 %v442_v7, %s4434_s18  ;;  %v484_v17 = vor.u32 %v483_v8, %v479_v5  ;;  %v489_v18 = vrot.slane %v487_v9, 5  ;;  %v470_v19 = vrot.slane %v468_v10, 4  ;;  %v501_v20 = vshll.u32 %v273_v6, 16  ;;  %v281_v10 = vld [vmem:[%s4476_s17 + $0x84] sm:$0xf] }
  0x2e   : > { %703 = vrot.lane.b32.xlu0 %v432_v11, %s4434_s18  ;;  %v466_v21 = vsel %vm4487_vm2, %v461_v12, %v465_v63  ;;  %v451_v22 = vrot.slane %v450_v13, 4  ;;  %v473_v23 = vrot.slane %v471_v14, 5  ;;  %v505_v24 = vshrl.u32 %v273_v6, 16 }
  0x2f   : > { %v485_v26 = vrot.slane %v484_v17, 4  ;;  %v503_v28 = vrot.slane %v501_v20, 5  ;;  %v511_v29 = vshll.u32 %v274_v15, 16  ;;  %v492_v30 = vshrl.u32 %v272_v16, 16 }
  0x30   : > { %v456_v31 = vsel %vm4487_vm2, %v451_v22, %v455_v50  ;;  %v474_v32 = vor.u32 %v473_v23, %v470_v19  ;;  %v507_v33 = vrot.slane %v505_v24, 4  ;;  %v495_v34 = vshll.u32 %v272_v16, 16  ;;  %v285_v19 = vld [vmem:[%s4476_s17 + $0x94] sm:$0xf]  ;;  %v286_v24 = vld [vmem:[%s4476_s17 + $0x98] sm:$0x1] }
  0x31   : > { %709 = vrot.lane.b32.xlu1 %v466_v21, %s4434_s18  ;;  %v490_v37 = vsel %vm4487_vm2, %v485_v26, %v489_v18  ;;  %v513_v38 = vrot.slane %v511_v29, 5  ;;  %v494_v39 = vrot.slane %v492_v30, 4  ;;  %v525_v40 = vshll.u32 %v276_v25, 16  ;;  %v284_v30 = vld [vmem:[%s4476_s17 + $0x90] sm:$0xf] }
  0x32   : > { %707 = vrot.lane.b32.xlu0 %v456_v31, %s4434_s18  ;;  %v475_v41 = vrot.slane %v474_v32, 4  ;;  %v508_v42 = vor.u32 %v507_v33, %v503_v28  ;;  %v497_v43 = vrot.slane %v495_v34, 5  ;;  %v529_v44 = vshrl.u32 %v276_v25, 16 }
  0x33   : > { %v527_v46 = vrot.slane %v525_v40, 5  ;;  %v535_v47 = vshll.u32 %v277_v35, 16  ;;  %v516_v48 = vshrl.u32 %v275_v36, 16  ;;  %v519_v49 = vshll.u32 %v275_v36, 16 }
  0x34   : > { %v480_v50 = vsel %vm4487_vm2, %v475_v41, %v479_v5  ;;  %v509_v51 = vrot.slane %v508_v42, 4  ;;  %v498_v52 = vor.u32 %v497_v43, %v494_v39  ;;  %v531_v53 = vrot.slane %v529_v44, 4  ;;  %v283_v5 = vld [vmem:[%s4476_s17 + $0x8c] sm:$0x1]  ;;  %v288_v39 = vld [vmem:[%s4476_s17 + $0xa0] sm:$0xf] }
  0x35   : > { %713 = vrot.lane.b32.xlu1 %v490_v37, %s4434_s18  ;;  %v537_v56 = vrot.slane %v535_v47, 5  ;;  %v518_v57 = vrot.slane %v516_v48, 4  ;;  %v521_v58 = vrot.slane %v519_v49, 5  ;;  %v549_v59 = vshll.u32 %v279_v45, 16  ;;  %v289_v48 = vld [vmem:[%s4476_s17 + $0xa4] sm:$0x1] }
  0x36   : > { %711 = vrot.lane.b32.xlu0 %v480_v50, %s4434_s18  ;;  %v514_v60 = vsel %vm4487_vm2, %v509_v51, %v513_v38  ;;  %v499_v61 = vrot.slane %v498_v52, 4  ;;  %v532_v62 = vor.u32 %v531_v53, %v527_v46  ;;  %v553_v63 = vshrl.u32 %v279_v45, 16  ;;  %v287_v49 = vld [vmem:[%s4476_s17 + $0x9c] sm:$0xf] }
  0x37   : > { %v522_v1 = vor.u32 %v521_v58, %v518_v57  ;;  %v551_v2 = vrot.slane %v549_v59, 5  ;;  %v559_v3 = vshll.u32 %v280_v54, 16  ;;  %v540_v4 = vshrl.u32 %v278_v55, 16  ;;  %v291_v58 = vld [vmem:[%s4476_s17 + $0xac] sm:$0xf] }
  0x38   : > { %v504_v6 = vsel %vm4487_vm2, %v499_v61, %v503_v28  ;;  %v533_v7 = vrot.slane %v532_v62, 4  ;;  %v555_v8 = vrot.slane %v553_v63, 4  ;;  %v543_v9 = vshll.u32 %v278_v55, 16 }
  0x39   : > { %717 = vrot.lane.b32.xlu1 %v514_v60, %s4434_s18  ;;  %v523_v11 = vrot.slane %v522_v1, 4  ;;  %v561_v12 = vrot.slane %v559_v3, 5  ;;  %v542_v13 = vrot.slane %v540_v4, 4  ;;  %v573_v14 = vshll.u32 %v282_v0, 16  ;;  %v292_v3 = vld [vmem:[%s4476_s17 + $0xb0] sm:$0x1] }
  0x3a   : > { %715 = vrot.lane.b32.xlu0 %v504_v6, %s4434_s18  ;;  %v538_v15 = vsel %vm4487_vm2, %v533_v7, %v537_v56  ;;  %v556_v16 = vor.u32 %v555_v8, %v551_v2  ;;  %v545_v17 = vrot.slane %v543_v9, 5  ;;  %v577_v18 = vshrl.u32 %v282_v0, 16  ;;  %v290_v4 = vld [vmem:[%s4476_s17 + $0xa8] sm:$0xf] }
  0x3b   : > { %v528_v20 = vsel %vm4487_vm2, %v523_v11, %v527_v46  ;;  %v575_v21 = vrot.slane %v573_v14, 5  ;;  %v583_v22 = vshll.u32 %v283_v5, 16  ;;  %v564_v23 = vshrl.u32 %v281_v10, 16 }
  0x3c   : > { %v557_v25 = vrot.slane %v556_v16, 4  ;;  %v546_v26 = vor.u32 %v545_v17, %v542_v13  ;;  %v579_v28 = vrot.slane %v577_v18, 4  ;;  %v567_v29 = vshll.u32 %v281_v10, 16  ;;  %v294_v13 = vld [vmem:[%s4476_s17 + $0xb8] sm:$0xf] }
  0x3d   : > { %721 = vrot.lane.b32.xlu1 %v538_v15, %s4434_s18  ;;  %v585_v31 = vrot.slane %v583_v22, 5  ;;  %v566_v32 = vrot.slane %v564_v23, 4  ;;  %v597_v33 = vshll.u32 %v285_v19, 16  ;;  %v601_v34 = vshrl.u32 %v285_v19, 16  ;;  %v295_v22 = vld [vmem:[%s4476_s17 + $0xbc] sm:$0x1] }
  0x3e   : > { %719 = vrot.lane.b32.xlu0 %v528_v20, %s4434_s18  ;;  %v562_v35 = vsel %vm4487_vm2, %v557_v25, %v561_v12  ;;  %v547_v36 = vrot.slane %v546_v26, 4  ;;  %v580_v37 = vor.u32 %v579_v28, %v575_v21  ;;  %v569_v38 = vrot.slane %v567_v29, 5  ;;  %v293_v23 = vld [vmem:[%s4476_s17 + $0xb4] sm:$0xf] }
  0x3f   : > { %v599_v40 = vrot.slane %v597_v33, 5  ;;  %v603_v41 = vrot.slane %v601_v34, 4  ;;  %v607_v42 = vshll.u32 %v286_v24, 16  ;;  %v588_v43 = vshrl.u32 %v284_v30, 16 }
  0x40   : > { %v552_v44 = vsel %vm4487_vm2, %v547_v36, %v551_v2  ;;  %v581_v45 = vrot.slane %v580_v37, 4  ;;  %v570_v46 = vor.u32 %v569_v38, %v566_v32  ;;  %v591_v47 = vshll.u32 %v284_v30, 16  ;;  %v813_v37 = vld [vmem:[%s4476_s17 + $0x4] sm:$0xf] }
  0x41   : > { %725 = vrot.lane.b32.xlu1 %v562_v35, %s4434_s18  ;;  %v604_v50 = vor.u32 %v603_v41, %v599_v40  ;;  %v609_v51 = vrot.slane %v607_v42, 5  ;;  %v590_v52 = vrot.slane %v588_v43, 4  ;;  %v621_v53 = vshll.u32 %v288_v39, 16 }
  0x42   : > { %723 = vrot.lane.b32.xlu0 %v552_v44, %s4434_s18  ;;  %v586_v54 = vsel %vm4487_vm2, %v581_v45, %v585_v31  ;;  %v571_v55 = vrot.slane %v570_v46, 4  ;;  %v593_v56 = vrot.slane %v591_v47, 5  ;;  %v625_v57 = vshrl.u32 %v288_v39, 16 }
  0x43   : > { %v605_v59 = vrot.slane %v604_v50, 4  ;;  %v623_v60 = vrot.slane %v621_v53, 5  ;;  %v631_v61 = vshll.u32 %v289_v48, 16  ;;  %v612_v62 = vshrl.u32 %v287_v49, 16  ;;  %v814_v48 = vld [vmem:[%s4476_s17 + $0x8] sm:$0x1] }
  0x44   : > { %v576_v63 = vsel %vm4487_vm2, %v571_v55, %v575_v21  ;;  %v594_v0 = vor.u32 %v593_v56, %v590_v52  ;;  %v627_v1 = vrot.slane %v625_v57, 4  ;;  %v615_v2 = vshll.u32 %v287_v49, 16  ;;  %v185_v56 = vld [vmem:[%s4476_s17 + $0xc] sm:$0xf] }
  0x45   : > { %729 = vrot.lane.b32.xlu1 %v586_v54, %s4434_s18  ;;  %v610_v5 = vsel %vm4487_vm2, %v605_v59, %v609_v51  ;;  %v633_v6 = vrot.slane %v631_v61, 5  ;;  %v614_v7 = vrot.slane %v612_v62, 4  ;;  %v645_v8 = vshll.u32 %v291_v58, 16  ;;  %v816_v51 = vld [vmem:[%s4476_s17 + $0x10] sm:$0xf] }
  0x46   : > { %727 = vrot.lane.b32.xlu0 %v576_v63, %s4434_s18  ;;  %v595_v9 = vrot.slane %v594_v0, 4  ;;  %v628_v10 = vor.u32 %v627_v1, %v623_v60  ;;  %v617_v11 = vrot.slane %v615_v2, 5  ;;  %v649_v12 = vshrl.u32 %v291_v58, 16  ;;  %v812_v54 = vld [vmem:[%s4476_s17] sm:$0xe] }
  0x47   : > { %v647_v14 = vrot.slane %v645_v8, 5  ;;  %v655_v15 = vshll.u32 %v292_v3, 16  ;;  %v636_v16 = vshrl.u32 %v290_v4, 16  ;;  %v639_v17 = vshll.u32 %v290_v4, 16  ;;  %218 = vst.msk [vmem:[#allocation2 + $0x8] sm:$0xf] %vm215_vm3, %v185_v56 }
  0x48   : > { %v600_v18 = vsel %vm4487_vm2, %v595_v9, %v599_v40  ;;  %v629_v19 = vrot.slane %v628_v10, 4  ;;  %v618_v20 = vor.u32 %v617_v11, %v614_v7  ;;  %v651_v21 = vrot.slane %v649_v12, 4  ;;  %v183_v61 = vld [vmem:[%s4476_s17] sm:$0xf]  ;;  %v817_v0 = vld [vmem:[%s4476_s17 + $0x14] sm:$0x1] }
  0x49   : > { %733 = vrot.lane.b32.xlu1 %v610_v5, %s4434_s18  ;;  %v657_v24 = vrot.slane %v655_v15, 5  ;;  %v638_v25 = vrot.slane %v636_v16, 4  ;;  %v641_v26 = vrot.slane %v639_v17, 5  ;;  %v669_v28 = vshll.u32 %v294_v13, 16  ;;  %v819_v1 = vld [vmem:[%s4476_s17 + $0x1c] sm:$0xf] }
  0x4a   : > { %731 = vrot.lane.b32.xlu0 %v600_v18, %s4434_s18  ;;  %v634_v29 = vsel %vm4487_vm2, %v629_v19, %v633_v6  ;;  %v619_v30 = vrot.slane %v618_v20, 4  ;;  %v652_v31 = vor.u32 %v651_v21, %v647_v14  ;;  %v673_v32 = vshrl.u32 %v294_v13, 16  ;;  %216 = vst.msk [vmem:[#allocation2] sm:$0xf] %vm215_vm3, %v183_v61  ;;  %v815_v3 = vld [vmem:[%s4476_s17 + $0xc] sm:$0xe] }
  0x4b   : > { %v642_v33 = vor.u32 %v641_v26, %v638_v25  ;;  %v671_v34 = vrot.slane %v669_v28, 5  ;;  %v679_v35 = vshll.u32 %v295_v22, 16  ;;  %v660_v36 = vshrl.u32 %v293_v23, 16  ;;  %v186_v4 = vld [vmem:[%s4476_s17 + $0x10] sm:$0xf] }
  0x4c   : > { %v624_v38 = vsel %vm4487_vm2, %v619_v30, %v623_v60  ;;  %v653_v39 = vrot.slane %v652_v31, 4  ;;  %v675_v40 = vrot.slane %v673_v32, 4  ;;  %v663_v41 = vshll.u32 %v293_v23, 16  ;;  %v184_v5 = vld [vmem:[%s4476_s17 + $0x4] sm:$0xf] }
  0x4d   : > { %737 = vrot.lane.b32.xlu1 %v634_v29, %s4434_s18  ;;  %v643_v42 = vrot.slane %v642_v33, 4  ;;  %v681_v43 = vrot.slane %v679_v35, 5  ;;  %v662_v44 = vrot.slane %v660_v36, 4  ;;  %v913_v49 = vrot.slane %v813_v37, 5  ;;  %219 = vst.msk [vmem:[#allocation2 + $0xc] sm:$0xf] %vm215_vm3, %v186_v4 }
  0x4e   : > { %735 = vrot.lane.b32.xlu0 %v624_v38, %s4434_s18  ;;  %v658_v45 = vsel %vm4487_vm2, %v653_v39, %v657_v24  ;;  %v676_v46 = vor.u32 %v675_v40, %v671_v34  ;;  %v665_v47 = vrot.slane %v663_v41, 5  ;;  %v916_v55 = vrot.slane %v814_v48, 5  ;;  %217 = vst.msk [vmem:[#allocation2 + $0x4] sm:$0xf] %vm215_vm3, %v184_v5  ;;  %v820_v12 = vld [vmem:[%s4476_s17 + $0x20] sm:$0x1] }
  0x4f   : > { %v648_v50 = vsel %vm4487_vm2, %v643_v42, %v647_v14  ;;  %v915_v59 = vrot.slane %v913_v49, 4  ;;  %v920_v60 = vrot.slane %v816_v51, 5  ;;  %v3983_v63 = vrot.slane %v812_v54, 9  ;;  %v822_v13 = vld [vmem:[%s4476_s17 + $0x28] sm:$0xf] }
  0x50   : > { %v677_v52 = vrot.slane %v676_v46, 4  ;;  %v666_v53 = vor.u32 %v665_v47, %v662_v44  ;;  %v923_v8 = vrot.slane %v817_v0, 5  ;;  %v927_v9 = vrot.slane %v819_v1, 5  ;;  %v818_v14 = vld [vmem:[%s4476_s17 + $0x18] sm:$0xe] }
  0x51   : > { %741 = vrot.lane.b32.xlu1 %v658_v45, %s4434_s18  ;;  %v917_v6 = vsel %vm4631_vm6, %v915_v59, %v916_v55  ;;  %v922_v7 = vrot.slane %v920_v60, 4  ;;  %v914_v10 = vsel %vm4631_vm6, %v3983_v63, %v913_v49  ;;  %v3984_v11 = vrot.slane %v815_v3, 9  ;;  %v188_v15 = vld [vmem:[%s4476_s17 + $0x1c] sm:$0xf]  ;;  %v187_v16 = vld [vmem:[%s4476_s17 + $0x18] sm:$0xf] }
  0x52   : > { %739 = vrot.lane.b32.xlu0 %v648_v50, %s4434_s18  ;;  %v682_v57 = vsel %vm4487_vm2, %v677_v52, %v681_v43  ;;  %v667_v58 = vrot.slane %v666_v53, 4  ;;  %221 = vst.msk [vmem:[#allocation2 + $0x14] sm:$0xf] %vm215_vm3, %v188_v15  ;;  %v929_v18 = vrot.slane %v927_v9, 4  ;;  %v930_v19 = vrot.slane %v820_v12, 5 }
  0x53   : > { %v924_v17 = vsel %vm4631_vm6, %v922_v7, %v923_v8  ;;  %v934_v20 = vrot.slane %v822_v13, 5  ;;  %220 = vst.msk [vmem:[#allocation2 + $0x10] sm:$0xf] %vm215_vm3, %v187_v16  ;;  %v921_v21 = vsel %vm4631_vm6, %v3984_v11, %v920_v60  ;;  %v3985_v22 = vrot.slane %v818_v14, 9  ;;  %v823_v23 = vld [vmem:[%s4476_s17 + $0x2c] sm:$0x1] }
  0x54   : > { %v672_v2 = vsel %vm4487_vm2, %v667_v58, %v671_v34  ;;  %v825_v24 = vld [vmem:[%s4476_s17 + $0x34] sm:$0xf]  ;;  %v821_v25 = vld [vmem:[%s4476_s17 + $0x24] sm:$0xe]  ;;  %v190_v26 = vld [vmem:[%s4476_s17 + $0x28] sm:$0xf]  ;;  %v931_v29 = vsel %vm4631_vm6, %v929_v18, %v930_v19 }
  0x55   : > { %745 = vrot.lane.b32.xlu1 %v682_v57, %s4434_s18  ;;  %223 = vst.msk [vmem:[#allocation2 + $0x1c] sm:$0xf] %vm215_vm3, %v190_v26  ;;  %v189_v28 = vld [vmem:[%s4476_s17 + $0x24] sm:$0xf]  ;;  %v936_v30 = vrot.slane %v934_v20, 4  ;;  %v937_v31 = vrot.slane %v823_v23, 5  ;;  %v928_v34 = vsel %vm4631_vm6, %v3985_v22, %v927_v9 }
  0x56   : > { %743 = vrot.lane.b32.xlu0 %v672_v2, %s4434_s18  ;;  %v826_v32 = vld [vmem:[%s4476_s17 + $0x38] sm:$0x1]  ;;  %v941_v33 = vrot.slane %v825_v24, 5  ;;  %222 = vst.msk [vmem:[#allocation2 + $0x18] sm:$0xf] %vm215_vm3, %v189_v28  ;;  %v3986_v35 = vrot.slane %v821_v25, 9 }
  0x57   : > { %v828_v36 = vld [vmem:[%s4476_s17 + $0x40] sm:$0xf]  ;;  %v192_v37 = vld [vmem:[%s4476_s17 + $0x34] sm:$0xf]  ;;  %v824_v38 = vld [vmem:[%s4476_s17 + $0x30] sm:$0xe]  ;;  %v938_v41 = vsel %vm4631_vm6, %v936_v30, %v937_v31 }
  0x58   : > { %225 = vst.msk [vmem:[#allocation2 + $0x24] sm:$0xf] %vm215_vm3, %v192_v37  ;;  %v191_v39 = vld [vmem:[%s4476_s17 + $0x30] sm:$0xf]  ;;  %v829_v40 = vld [vmem:[%s4476_s17 + $0x44] sm:$0x1]  ;;  %v935_v46 = vsel %vm4631_vm6, %v3986_v35, %v934_v20 }
  0x59   : > { %1025 = vrot.lane.b32.xlu1 %v917_v6, %s4435_s19  ;;  %224 = vst.msk [vmem:[#allocation2 + $0x20] sm:$0xf] %vm215_vm3, %v191_v39  ;;  %v943_v42 = vrot.slane %v941_v33, 4  ;;  %v944_v43 = vrot.slane %v826_v32, 5  ;;  %v948_v44 = vrot.slane %v828_v36, 5  ;;  %v3987_v47 = vrot.slane %v824_v38, 9 }
  0x5a   : > { %1023 = vrot.lane.b32.xlu0 %v914_v10, %s4435_s19  ;;  %v194_v45 = vld [vmem:[%s4476_s17 + $0x40] sm:$0xf]  ;;  %v831_v48 = vld [vmem:[%s4476_s17 + $0x4c] sm:$0xf]  ;;  %v193_v49 = vld [vmem:[%s4476_s17 + $0x3c] sm:$0xf] }
  0x5b   : > { %227 = vst.msk [vmem:[#allocation2 + $0x2c] sm:$0xf] %vm215_vm3, %v194_v45  ;;  %v827_v50 = vld [vmem:[%s4476_s17 + $0x3c] sm:$0xe]  ;;  %226 = vst.msk [vmem:[#allocation2 + $0x28] sm:$0xf] %vm215_vm3, %v193_v49  ;;  %v945_v53 = vsel %vm4631_vm6, %v943_v42, %v944_v43  ;;  %v942_v58 = vsel %vm4631_vm6, %v3987_v47, %v941_v33 }
  0x5c   : > { %v832_v51 = vld [vmem:[%s4476_s17 + $0x50] sm:$0x1]  ;;  %v196_v52 = vld [vmem:[%s4476_s17 + $0x4c] sm:$0xf]  ;;  %v950_v54 = vrot.slane %v948_v44, 4  ;;  %v951_v55 = vrot.slane %v829_v40, 5 }
  0x5d   : > { %1029 = vrot.lane.b32.xlu1 %v924_v17, %s4435_s19  ;;  %v955_v56 = vrot.slane %v831_v48, 5  ;;  %229 = vst.msk [vmem:[#allocation2 + $0x34] sm:$0xf] %vm215_vm3, %v196_v52  ;;  %v195_v57 = vld [vmem:[%s4476_s17 + $0x48] sm:$0xf]  ;;  %v3988_v59 = vrot.slane %v827_v50, 9 }
  0x5e   : > { %1027 = vrot.lane.b32.xlu0 %v921_v21, %s4435_s19  ;;  %v834_v60 = vld [vmem:[%s4476_s17 + $0x58] sm:$0xf]  ;;  %228 = vst.msk [vmem:[#allocation2 + $0x30] sm:$0xf] %vm215_vm3, %v195_v57  ;;  %v830_v63 = vld [vmem:[%s4476_s17 + $0x48] sm:$0xe]  ;;  %v952_v5 = vsel %vm4631_vm6, %v950_v54, %v951_v55 }
  0x5f   : > { %v198_v61 = vld [vmem:[%s4476_s17 + $0x58] sm:$0xf]  ;;  %v835_v0 = vld [vmem:[%s4476_s17 + $0x5c] sm:$0x1]  ;;  %v197_v1 = vld [vmem:[%s4476_s17 + $0x54] sm:$0xf]  ;;  %v949_v10 = vsel %vm4631_vm6, %v3988_v59, %v948_v44 }
  0x60   : > { %231 = vst.msk [vmem:[#allocation2 + $0x3c] sm:$0xf] %vm215_vm3, %v198_v61  ;;  %v958_v2 = vrot.slane %v832_v51, 5  ;;  %230 = vst.msk [vmem:[#allocation2 + $0x38] sm:$0xf] %vm215_vm3, %v197_v1  ;;  %v957_v6 = vrot.slane %v955_v56, 4 }
  0x61   : > { %1033 = vrot.lane.b32.xlu1 %v931_v29, %s4435_s19  ;;  %v200_v3 = vld [vmem:[%s4476_s17 + $0x64] sm:$0xf]  ;;  %v199_v4 = vld [vmem:[%s4476_s17 + $0x60] sm:$0xf]  ;;  %v962_v7 = vrot.slane %v834_v60, 5  ;;  %v3989_v11 = vrot.slane %v830_v63, 9 }
  0x62   : > { %1031 = vrot.lane.b32.xlu0 %v928_v34, %s4435_s19  ;;  %233 = vst.msk [vmem:[#allocation2 + $0x44] sm:$0xf] %vm215_vm3, %v200_v3  ;;  %232 = vst.msk [vmem:[#allocation2 + $0x40] sm:$0xf] %vm215_vm3, %v199_v4  ;;  %v202_v8 = vld [vmem:[%s4476_s17 + $0x70] sm:$0xf]  ;;  %v959_v19 = vsel %vm4631_vm6, %v957_v6, %v958_v2 }
  0x63   : > { %v201_v9 = vld [vmem:[%s4476_s17 + $0x6c] sm:$0xf]  ;;  %v837_v12 = vld [vmem:[%s4476_s17 + $0x64] sm:$0xf]  ;;  %235 = vst.msk [vmem:[#allocation2 + $0x4c] sm:$0xf] %vm215_vm3, %v202_v8  ;;  %v956_v24 = vsel %vm4631_vm6, %v3989_v11, %v955_v56 }
  0x64   : > { %234 = vst.msk [vmem:[#allocation2 + $0x48] sm:$0xf] %vm215_vm3, %v201_v9  ;;  %v204_v13 = vld [vmem:[%s4476_s17 + $0x7c] sm:$0xf]  ;;  %v833_v14 = vld [vmem:[%s4476_s17 + $0x54] sm:$0xe] }
  0x65   : > { %1037 = vrot.lane.b32.xlu1 %v938_v41, %s4435_s19  ;;  %237 = vst.msk [vmem:[#allocation2 + $0x54] sm:$0xf] %vm215_vm3, %v204_v13  ;;  %v203_v15 = vld [vmem:[%s4476_s17 + $0x78] sm:$0xf]  ;;  %v965_v16 = vrot.slane %v835_v0, 5  ;;  %v964_v20 = vrot.slane %v962_v7, 4 }
  0x66   : > { %1035 = vrot.lane.b32.xlu0 %v935_v46, %s4435_s19  ;;  %236 = vst.msk [vmem:[#allocation2 + $0x50] sm:$0xf] %vm215_vm3, %v203_v15  ;;  %v206_v17 = vld [vmem:[%s4476_s17 + $0x88] sm:$0xf]  ;;  %v205_v18 = vld [vmem:[%s4476_s17 + $0x84] sm:$0xf] }
  0x67   : > { %v969_v21 = vrot.slane %v837_v12, 5  ;;  %239 = vst.msk [vmem:[#allocation2 + $0x5c] sm:$0xf] %vm215_vm3, %v206_v17  ;;  %238 = vst.msk [vmem:[#allocation2 + $0x58] sm:$0xf] %vm215_vm3, %v205_v18  ;;  %v3990_v25 = vrot.slane %v833_v14, 9  ;;  %v966_v32 = vsel %vm4631_vm6, %v964_v20, %v965_v16 }
  0x68   : > { %v208_v22 = vld [vmem:[%s4476_s17 + $0x94] sm:$0xf]  ;;  %v207_v23 = vld [vmem:[%s4476_s17 + $0x90] sm:$0xf]  ;;  %v838_v26 = vld [vmem:[%s4476_s17 + $0x68] sm:$0x1] }
  0x69   : > { %1041 = vrot.lane.b32.xlu1 %v945_v53, %s4435_s19  ;;  %v840_v28 = vld [vmem:[%s4476_s17 + $0x70] sm:$0xf]  ;;  %241 = vst.msk [vmem:[#allocation2 + $0x64] sm:$0xf] %vm215_vm3, %v208_v22  ;;  %240 = vst.msk [vmem:[#allocation2 + $0x60] sm:$0xf] %vm215_vm3, %v207_v23  ;;  %v963_v36 = vsel %vm4631_vm6, %v3990_v25, %v962_v7 }
  0x6a   : > { %1039 = vrot.lane.b32.xlu0 %v942_v58, %s4435_s19  ;;  %v836_v29 = vld [vmem:[%s4476_s17 + $0x60] sm:$0xe]  ;;  %v209_v31 = vld [vmem:[%s4476_s17 + $0x9c] sm:$0xf]  ;;  %v971_v33 = vrot.slane %v969_v21, 4  ;;  %v972_v34 = vrot.slane %v838_v26, 5 }
  0x6b   : > { %v210_v30 = vld [vmem:[%s4476_s17 + $0xa0] sm:$0xf]  ;;  %v976_v35 = vrot.slane %v840_v28, 5  ;;  %242 = vst.msk [vmem:[#allocation2 + $0x68] sm:$0xf] %vm215_vm3, %v209_v31  ;;  %v3991_v37 = vrot.slane %v836_v29, 9 }
  0x6c   : > { %243 = vst.msk [vmem:[#allocation2 + $0x6c] sm:$0xf] %vm215_vm3, %v210_v30  ;;  %v841_v38 = vld [vmem:[%s4476_s17 + $0x74] sm:$0x1]  ;;  %v843_v39 = vld [vmem:[%s4476_s17 + $0x7c] sm:$0xf]  ;;  %v973_v43 = vsel %vm4631_vm6, %v971_v33, %v972_v34 }
  0x6d   : > { %1045 = vrot.lane.b32.xlu1 %v952_v5, %s4435_s19  ;;  %v839_v40 = vld [vmem:[%s4476_s17 + $0x6c] sm:$0xe]  ;;  %v211_v42 = vld [vmem:[%s4476_s17 + $0xa8] sm:$0xf]  ;;  %v978_v44 = vrot.slane %v976_v35, 4  ;;  %v979_v45 = vrot.slane %v841_v38, 5  ;;  %v970_v48 = vsel %vm4631_vm6, %v3991_v37, %v969_v21 }
  0x6e   : > { %1043 = vrot.lane.b32.xlu0 %v949_v10, %s4435_s19  ;;  %v212_v41 = vld [vmem:[%s4476_s17 + $0xac] sm:$0xf]  ;;  %244 = vst.msk [vmem:[#allocation2 + $0x70] sm:$0xf] %vm215_vm3, %v211_v42  ;;  %v844_v46 = vld [vmem:[%s4476_s17 + $0x80] sm:$0x1] }
  0x6f   : > { %245 = vst.msk [vmem:[#allocation2 + $0x74] sm:$0xf] %vm215_vm3, %v212_v41  ;;  %v983_v47 = vrot.slane %v843_v39, 5  ;;  %v3992_v49 = vrot.slane %v839_v40, 9  ;;  %v846_v50 = vld [vmem:[%s4476_s17 + $0x88] sm:$0xf]  ;;  %v980_v54 = vsel %vm4631_vm6, %v978_v44, %v979_v45 }
  0x70   : > { %v214_v51 = vld [vmem:[%s4476_s17 + $0xb8] sm:$0xf]  ;;  %v213_v53 = vld [vmem:[%s4476_s17 + $0xb4] sm:$0xf]  ;;  %v986_v56 = vrot.slane %v844_v46, 5  ;;  %v990_v57 = vrot.slane %v846_v50, 5 }
  0x71   : > { %1049 = vrot.lane.b32.xlu1 %v959_v19, %s4435_s19  ;;  %v842_v52 = vld [vmem:[%s4476_s17 + $0x78] sm:$0xe]  ;;  %247 = vst.msk [vmem:[#allocation2 + $0x7c] sm:$0xf] %vm215_vm3, %v214_v51  ;;  %246 = vst.msk [vmem:[#allocation2 + $0x78] sm:$0xf] %vm215_vm3, %v213_v53  ;;  %v977_v58 = vsel %vm4631_vm6, %v3992_v49, %v976_v35 }
  0x72   : > { %1047 = vrot.lane.b32.xlu0 %v956_v24, %s4435_s19  ;;  %v985_v55 = vrot.slane %v983_v47, 4  ;;  %v3993_v59 = vrot.slane %v842_v52, 9  ;;  %v847_v60 = vld [vmem:[%s4476_s17 + $0x8c] sm:$0x1]  ;;  %v849_v61 = vld [vmem:[%s4476_s17 + $0x94] sm:$0xf] }
  0x73   : > { %v845_v63 = vld [vmem:[%s4476_s17 + $0x84] sm:$0xe]  ;;  %v992_v1 = vrot.slane %v990_v57, 4  ;;  %v993_v2 = vrot.slane %v847_v60, 5  ;;  %v997_v3 = vrot.slane %v849_v61, 5  ;;  %vm3682_vm1 = vcmask 261120  }
  0x74   : > { %v987_v0 = vsel %vm4631_vm6, %v985_v55, %v986_v56  ;;  %v984_v4 = vsel %vm4631_vm6, %v3993_v59, %v983_v47  ;;  %v3994_v5 = vrot.slane %v845_v63, 9  ;;  %v850_v6 = vld [vmem:[%s4476_s17 + $0x98] sm:$0x1]  ;;  %v852_v7 = vld [vmem:[%s4476_s17 + $0xa0] sm:$0xf] }
  0x75   : > { %1053 = vrot.lane.b32.xlu1 %v966_v32, %s4435_s19  ;;  %v848_v8 = vld [vmem:[%s4476_s17 + $0x90] sm:$0xe]  ;;  %v994_v9 = vsel %vm4631_vm6, %v992_v1, %v993_v2  ;;  %v999_v10 = vrot.slane %v997_v3, 4  ;;  %v1000_v11 = vrot.slane %v850_v6, 5  ;;  %v1004_v12 = vrot.slane %v852_v7, 5 }
  0x76   : > { %1051 = vrot.lane.b32.xlu0 %v963_v36, %s4435_s19  ;;  %v991_v13 = vsel %vm4631_vm6, %v3994_v5, %v990_v57  ;;  %v3995_v14 = vrot.slane %v848_v8, 9  ;;  %v853_v15 = vld [vmem:[%s4476_s17 + $0xa4] sm:$0x1]  ;;  %v855_v16 = vld [vmem:[%s4476_s17 + $0xac] sm:$0xf] }
  0x77   : > { %v851_v17 = vld [vmem:[%s4476_s17 + $0x9c] sm:$0xe]  ;;  %v1001_v18 = vsel %vm4631_vm6, %v999_v10, %v1000_v11  ;;  %v1006_v19 = vrot.slane %v1004_v12, 4  ;;  %v1007_v20 = vrot.slane %v853_v15, 5  ;;  %v1011_v21 = vrot.slane %v855_v16, 5 }
  0x78   : > { %v998_v22 = vsel %vm4631_vm6, %v3995_v14, %v997_v3  ;;  %v3996_v23 = vrot.slane %v851_v17, 9  ;;  %v856_v24 = vld [vmem:[%s4476_s17 + $0xb0] sm:$0x1]  ;;  %v858_v25 = vld [vmem:[%s4476_s17 + $0xb8] sm:$0xf] }
  0x79   : > { %1057 = vrot.lane.b32.xlu1 %v973_v43, %s4435_s19  ;;  %v854_v26 = vld [vmem:[%s4476_s17 + $0xa8] sm:$0xe]  ;;  %v1008_v28 = vsel %vm4631_vm6, %v1006_v19, %v1007_v20  ;;  %v1013_v29 = vrot.slane %v1011_v21, 4  ;;  %v1014_v30 = vrot.slane %v856_v24, 5  ;;  %v1018_v31 = vrot.slane %v858_v25, 5 }
  0x7a   : > { %1055 = vrot.lane.b32.xlu0 %v970_v48, %s4435_s19  ;;  %v1005_v33 = vsel %vm4631_vm6, %v3996_v23, %v1004_v12  ;;  %v3997_v34 = vrot.slane %v854_v26, 9  ;;  %v859_v35 = vld [vmem:[%s4476_s17 + $0xbc] sm:$0x1]  ;;  %v857_v37 = vld [vmem:[%s4476_s17 + $0xb4] sm:$0xe] }
  0x7b   : > { %v1015_v38 = vsel %vm4631_vm6, %v1013_v29, %v1014_v30  ;;  %v1020_v39 = vrot.slane %v1018_v31, 4  ;;  %v1021_v40 = vrot.slane %v859_v35, 5  ;;  %v3998_v43 = vrot.slane %v857_v37, 9  ;;  %v4000_v49 = vld [vmem:[%s4476_s17 + $0x10] sm:$0xf] }
  0x7c   : > { %v1012_v42 = vsel %vm4631_vm6, %v3997_v34, %v1011_v21  ;;  %v3999_v51 = vld [vmem:[%s4476_s17 + $0xc] sm:$0xf]  ;;  %v4002_v53 = vld [vmem:[%s4476_s17 + $0x1c] sm:$0xf]  ;;  %v4001_v55 = vld [vmem:[%s4476_s17 + $0x18] sm:$0xf] }
  0x7d   : > { %1061 = vrot.lane.b32.xlu1 %v980_v54, %s4435_s19  ;;  %v1022_v45 = vsel %vm4631_vm6, %v1020_v39, %v1021_v40  ;;  %v1019_v47 = vsel %vm4631_vm6, %v3998_v43, %v1018_v31  ;;  %v4004_v57 = vld [vmem:[%s4476_s17 + $0x28] sm:$0xf]  ;;  %v4003_v59 = vld [vmem:[%s4476_s17 + $0x24] sm:$0xf]  ;;  %v4006_v61 = vld [vmem:[%s4476_s17 + $0x34] sm:$0xf] }
  0x7e   : > { %1059 = vrot.lane.b32.xlu0 %v977_v58, %s4435_s19  ;;  %v4008_v2 = vld [vmem:[%s4476_s17 + $0x40] sm:$0xf]  ;;  %v4032_v5 = vld [vmem:[%s4476_s17 + $0x10] sm:$0xf]  ;;  %v4031_v7 = vld [vmem:[%s4476_s17 + $0xc] sm:$0xf] }
  0x7f   : > { %v4010_v8 = vld [vmem:[%s4476_s17 + $0x4c] sm:$0xf]  ;;  %v1408_v10 = vshrl.u32 %v4032_v5, 16  ;;  %v4009_v12 = vld [vmem:[%s4476_s17 + $0x48] sm:$0xf]  ;;  %v1398_v14 = vshll.u32 %v4031_v7, 16 }
  0x80   : > { %v4035_v15 = vld [vmem:[%s4476_s17 + $0x1c] sm:$0xf]  ;;  %v4034_v17 = vld [vmem:[%s4476_s17 + $0x18] sm:$0xf]  ;;  %v4011_v19 = vld [vmem:[%s4476_s17 + $0x54] sm:$0xf] }
  0x81   : > { %1065 = vrot.lane.b32.xlu1 %v987_v0, %s4435_s19  ;;  %v4005_v0 = vld [vmem:[%s4476_s17 + $0x30] sm:$0xf]  ;;  %v1410_v21 = vrot.slane %v1408_v10, 4  ;;  %v1432_v23 = vshrl.u32 %v4035_v15, 16  ;;  %v4033_v25 = vld [vmem:[%s4476_s17 + $0x14] sm:$0x1] }
  0x82   : > { %1063 = vrot.lane.b32.xlu0 %v984_v4, %s4435_s19  ;;  %v4007_v4 = vld [vmem:[%s4476_s17 + $0x3c] sm:$0xf]  ;;  %v1419_v29 = vshrl.u32 %v4034_v17, 16  ;;  %v1422_v30 = vshll.u32 %v4034_v17, 16  ;;  %v1414_v34 = vshll.u32 %v4033_v25, 16 }
  0x83   : > { %v4036_v40 = vld [vmem:[%s4476_s17 + $0x20] sm:$0x1] }
  0x85   : > { %1069 = vrot.lane.b32.xlu1 %v994_v9, %s4435_s19  ;;  %v1404_v9 = vshll.u32 %v4032_v5, 16 }
  0x86   : > { %1067 = vrot.lane.b32.xlu0 %v991_v13, %s4435_s19  ;;  %v1395_v13 = vshrl.u32 %v4031_v7, 16  ;;  %v4084_v7 = vld [vmem:[%s4476_s17 + $0x20] sm:$0x1] }
  0x87   : > { %v1406_v20 = vrot.slane %v1404_v9, 5 }
  0x88   : > { %v1397_v26 = vrot.slane %v1395_v13, 4  ;;  %v4082_v13 = vld [vmem:[%s4476_s17 + $0x18] sm:$0xe] }
  0x89   : > { %1073 = vrot.lane.b32.xlu1 %v1001_v18, %s4435_s19  ;;  %v4012_v18 = vld [vmem:[%s4476_s17 + $0x58] sm:$0xf] }
  0x8a   : > { %1071 = vrot.lane.b32.xlu0 %v998_v22, %s4435_s19  ;;  %v1428_v22 = vshll.u32 %v4035_v15, 16 }
  0x8b   : > { %v688_v32 = vpop.permute.xlu1 %687 }
  0x8c   : > { %782 = vst.msk [vmem:[#allocation2 + $0x8] sm:$0xf] %vm779_vm7, %v688_v32  ;;  %v684_v36 = vpop.permute.xlu0 %683  ;;  %v4014_v32 = vld [vmem:[%s4476_s17 + $0x64] sm:$0xf]  ;;  %v1430_v35 = vrot.slane %v1428_v22, 5 }
  0x8d   : > { %780 = vst.msk [vmem:[#allocation2] sm:$0xf] %vm779_vm7, %v684_v36  ;;  %1077 = vrot.lane.b32.xlu1 %v1008_v28, %s4435_s19  ;;  %v1400_v28 = vrot.slane %v1398_v14, 5  ;;  %v1434_v36 = vrot.slane %v1432_v23, 4  ;;  %v4175_v14 = vld [vmem:[%s4476_s17 + $0x18] sm:$0xf] }
  0x8e   : > { %1075 = vrot.lane.b32.xlu0 %v1005_v33, %s4435_s19  ;;  %v1411_v33 = vor.u32 %v1410_v21, %v1406_v20  ;;  %v4128_v23 = vrot.slane %v4082_v13, 9  ;;  %v2490_v25 = vshll.u32 %v4175_v14, 16  ;;  %v4984_v13 = vld [vmem:[%s4476_s17 + $0x28] sm:$0xf] }
  0x8f   : > { %v690_v41 = vpop.permute.xlu1 %689  ;;  %v1401_v39 = vor.u32 %v1400_v28, %v1397_v26  ;;  %v4178_v26 = vld [vmem:[%s4476_s17 + $0x24] sm:$0xf] }
  0x90   : > { %783 = vst.msk [vmem:[#allocation2 + $0xc] sm:$0xf] %vm779_vm7, %v690_v41  ;;  %v686_v44 = vpop.permute.xlu0 %685  ;;  %v1421_v41 = vrot.slane %v1419_v29, 4 }
  0x91   : > { %781 = vst.msk [vmem:[#allocation2 + $0x4] sm:$0xf] %vm779_vm7, %v686_v44  ;;  %1081 = vrot.lane.b32.xlu1 %v1015_v38, %s4435_s19  ;;  %v4013_v38 = vld [vmem:[%s4476_s17 + $0x60] sm:$0xf]  ;;  %v4016_v44 = vld [vmem:[%s4476_s17 + $0x70] sm:$0xf] }
  0x92   : > { %1079 = vrot.lane.b32.xlu0 %v1012_v42, %s4435_s19  ;;  %v1424_v42 = vrot.slane %v1422_v30, 5 }
  0x93   : > { %v694_v46 = vpop.permute.xlu1 %693 }
  0x94   : > { %785 = vst.msk [vmem:[#allocation2 + $0x14] sm:$0xf] %vm779_vm7, %v694_v46  ;;  %v692_v48 = vpop.permute.xlu0 %691  ;;  %v1416_v46 = vrot.slane %v1414_v34, 5  ;;  %v2511_v34 = vshrl.u32 %v4178_v26, 16 }
  0x95   : > { %784 = vst.msk [vmem:[#allocation2 + $0x10] sm:$0xf] %vm779_vm7, %v692_v48  ;;  %1085 = vrot.lane.b32.xlu1 %v1022_v45, %s4435_s19  ;;  %v1412_v45 = vrot.slane %v1411_v33, 4  ;;  %v1438_v48 = vshll.u32 %v4036_v40, 16  ;;  %v2492_v40 = vrot.slane %v2490_v25, 5  ;;  %v4408_v25 = vld [vmem:[%s6058_s1 + $0x8] sm:$0xff]  }
  0x96   : > { %1083 = vrot.lane.b32.xlu0 %v1019_v47, %s4435_s19  ;;  %v1435_v47 = vor.u32 %v1434_v36, %v1430_v35 }
  0x97   : > { %v698_v50 = vpop.permute.xlu1 %697 }
  0x98   : > { %787 = vst.msk [vmem:[#allocation2 + $0x1c] sm:$0xf] %vm779_vm7, %v698_v50  ;;  %v696_v52 = vpop.permute.xlu0 %695  ;;  %v4015_v50 = vld [vmem:[%s4476_s17 + $0x6c] sm:$0xf] }
  0x99   : > { %786 = vst.msk [vmem:[#allocation2 + $0x18] sm:$0xf] %vm779_vm7, %v696_v52  ;;  %1219 = vrot.lane.b32.xlu1 %v4000_v49, %s4436_s20  ;;  %v1425_v52 = vor.u32 %v1424_v42, %v1421_v41  ;;  %v4180_v42 = vld [vmem:[%s4476_s17 + $0x2c] sm:$0x1] }
  0x9a   : > { %1217 = vrot.lane.b32.xlu0 %v3999_v51, %s4436_s20  ;;  %v1402_v51 = vrot.slane %v1401_v39, 4 }
  0x9b   : > { %v702_v54 = vpop.permute.xlu1 %701 }
  0x9c   : > { %789 = vst.msk [vmem:[#allocation2 + $0x24] sm:$0xf] %vm779_vm7, %v702_v54  ;;  %v700_v56 = vpop.permute.xlu0 %699 }
  0x9d   : > { %788 = vst.msk [vmem:[#allocation2 + $0x20] sm:$0xf] %vm779_vm7, %v700_v56  ;;  %1223 = vrot.lane.b32.xlu1 %v4002_v53, %s4436_s20  ;;  %v4080_v53 = vld [vmem:[%s4476_s17 + $0x10] sm:$0xf]  ;;  %v1436_v56 = vrot.slane %v1435_v47, 4 }
  0x9e   : > { %1221 = vrot.lane.b32.xlu0 %v4001_v55, %s4436_s20  ;;  %v1417_v55 = vsel %vm4487_vm2, %v1412_v45, %v1416_v46  ;;  %v4144_v45 = vld [vmem:[%s4476_s17 + $0x1c] sm:$0xf] }
  0x9f   : > { %v706_v58 = vpop.permute.xlu1 %705 }
  0xa0   : > { %791 = vst.msk [vmem:[#allocation2 + $0x2c] sm:$0xf] %vm779_vm7, %v706_v58  ;;  %v704_v60 = vpop.permute.xlu0 %703  ;;  %v2005_v58 = vrot.slane %v4080_v53, 5 }
  0xa1   : > { %790 = vst.msk [vmem:[#allocation2 + $0x28] sm:$0xf] %vm779_vm7, %v704_v60  ;;  %1227 = vrot.lane.b32.xlu1 %v4004_v57, %s4436_s20  ;;  %v1440_v57 = vrot.slane %v1438_v48, 5  ;;  %v2513_v48 = vrot.slane %v2511_v34, 4 }
  0xa2   : > { %1225 = vrot.lane.b32.xlu0 %v4003_v59, %s4436_s20  ;;  %v4083_v59 = vld [vmem:[%s4476_s17 + $0x1c] sm:$0xf]  ;;  %v2007_v5 = vrot.slane %v2005_v58, 4 }
  0xa3   : > { %v710_v63 = vpop.permute.xlu1 %709 }
  0xa4   : > { %793 = vst.msk [vmem:[#allocation2 + $0x34] sm:$0xf] %vm779_vm7, %v710_v63  ;;  %v708_v1 = vpop.permute.xlu0 %707  ;;  %v1426_v63 = vrot.slane %v1425_v52, 4 }
  0xa5   : > { %792 = vst.msk [vmem:[#allocation2 + $0x30] sm:$0xf] %vm779_vm7, %v708_v1  ;;  %1231 = vrot.lane.b32.xlu1 %v4006_v61, %s4436_s20  ;;  %v1407_v61 = vsel %vm4487_vm2, %v1402_v51, %v1406_v20  ;;  %v4179_v20 = vld [vmem:[%s4476_s17 + $0x28] sm:$0xf]  ;;  %v4143_v51 = vld [vmem:[%s4476_s17 + $0x18] sm:$0xf] }
  0xa6   : > { %1229 = vrot.lane.b32.xlu0 %v4005_v0, %s4436_s20  ;;  %v4081_v0 = vld [vmem:[%s4476_s17 + $0x14] sm:$0x1]  ;;  %v1431_v9 = vsel %vm4487_vm2, %v1426_v63, %v1430_v35  ;;  %v2520_v30 = vshll.u32 %v4179_v20, 16  ;;  %v2514_v35 = vshll.u32 %v4178_v26, 16 }
  0xa7   : > { %v714_v3 = vpop.permute.xlu1 %713 }
  0xa8   : > { %795 = vst.msk [vmem:[#allocation2 + $0x3c] sm:$0xf] %vm779_vm7, %v714_v3  ;;  %v712_v6 = vpop.permute.xlu0 %711  ;;  %v2012_v3 = vrot.slane %v4083_v59, 5 }
  0xa9   : > { %794 = vst.msk [vmem:[#allocation2 + $0x38] sm:$0xf] %vm779_vm7, %v712_v6  ;;  %1235 = vrot.lane.b32.xlu1 %v4008_v2, %s4436_s20  ;;  %v4079_v2 = vld [vmem:[%s4476_s17 + $0xc] sm:$0xe]  ;;  %v2008_v6 = vrot.slane %v4081_v0, 5 }
  0xaa   : > { %1233 = vrot.lane.b32.xlu0 %v4007_v4, %s4436_s20  ;;  %v1441_v4 = vsel %vm4487_vm2, %v1436_v56, %v1440_v57  ;;  %v4127_v10 = vrot.slane %v4079_v2, 9  ;;  %v2014_v15 = vrot.slane %v2012_v3, 4  ;;  %v4145_v0 = vld [vmem:[%s4476_s17 + $0x24] sm:$0xf]  ;;  %v4969_v2 = vld [vmem:[%s4476_s17 + $0x20] sm:$0x1] }
  0xab   : > { %v718_v11 = vpop.permute.xlu1 %717  ;;  %v2009_v17 = vsel %vm4631_vm6, %v2007_v5, %v2008_v6  ;;  %v4037_v5 = vld [vmem:[%s4476_s17 + $0x24] sm:$0xf]  ;;  %v4407_v6 = vld [vmem:[%s6058_s1 + $0x10] ss:$0 sps:$4 sm:$0x33]  }
  0xac   : > { %797 = vst.msk [vmem:[#allocation2 + $0x44] sm:$0xf] %vm779_vm7, %v718_v11  ;;  %v716_v16 = vpop.permute.xlu0 %715  ;;  %v4176_v11 = vld [vmem:[%s4476_s17 + $0x1c] sm:$0xf]  ;;  %v2006_v22 = vsel %vm4631_vm6, %v4127_v10, %v2005_v58  ;;  %4388 = vmatprep.subr.msk.bf16.mxu0 %vm3517_vm9, %v4407_v6  ;;  %4389 = vmatprep.subr.msk.bf16.mxu1 %vm3517_vm9, %v4407_v6 }
  0xad   : > { %796 = vst.msk [vmem:[#allocation2 + $0x40] sm:$0xf] %vm779_vm7, %v716_v16  ;;  %1239 = vrot.lane.b32.xlu1 %v4010_v8, %s4436_s20  ;;  %v2015_v16 = vrot.slane %v4084_v7, 5 }
  0xae   : > { %1237 = vrot.lane.b32.xlu0 %v4009_v12, %s4436_s20 }
  0xaf   : > { %v722_v24 = vpop.permute.xlu1 %721  ;;  %v2016_v29 = vsel %vm4631_vm6, %v2014_v15, %v2015_v16  ;;  %v3519_v15 = vsel %vm3517_vm9, %v4407_v6, 0  ;;  %v4086_v6 = vld [vmem:[%s4476_s17 + $0x28] sm:$0xf] }
  0xb0   : > { %799 = vst.msk [vmem:[#allocation2 + $0x4c] sm:$0xf] %vm779_vm7, %v722_v24  ;;  %v720_v31 = vpop.permute.xlu0 %719  ;;  %v2487_v24 = vshrl.u32 %v4175_v14, 16  ;;  %4345 = vmatpush3.bf16.msra.mxu0 %v3519_v15  ;;  %4385 = vmatpush3.bf16.msra.mxu1 %v3519_v15 }
  0xb1   : > { %798 = vst.msk [vmem:[#allocation2 + $0x48] sm:$0xf] %vm779_vm7, %v720_v31  ;;  %1243 = vrot.lane.b32.xlu1 %v4012_v18, %s4436_s20  ;;  %v2496_v18 = vshll.u32 %v4176_v11, 16  ;;  %v2524_v31 = vshrl.u32 %v4179_v20, 16  ;;  %v4041_v20 = vld [vmem:[%s4476_s17 + $0x34] sm:$0xf]  ;;  %4346 = vmatprep.subr.bf16.mxu0 %v4408_v25 }
  0xb2   : > { %1241 = vrot.lane.b32.xlu0 %v4011_v19, %s4436_s20  ;;  %v2500_v19 = vshrl.u32 %v4176_v11, 16  ;;  %v2489_v39 = vrot.slane %v2487_v24, 4  ;;  %v4040_v24 = vld [vmem:[%s4476_s17 + $0x30] sm:$0xf]  ;;  %v1476_v34 = vshll.u32 %v4041_v20, 16  ;;  %4383 = vmatprep.subr.bf16.mxu1 %v4408_v25 }
  0xb3   : > { %v726_v37 = vpop.permute.xlu1 %725 }
  0xb4   : > { %801 = vst.msk [vmem:[#allocation2 + $0x54] sm:$0xf] %vm779_vm7, %v726_v37  ;;  %v724_v43 = vpop.permute.xlu0 %723  ;;  %v2502_v33 = vrot.slane %v2500_v19, 4  ;;  %v2013_v37 = vsel %vm4631_vm6, %v4128_v23, %v2012_v3  ;;  %v2493_v52 = vor.u32 %v2492_v40, %v2489_v39  ;;  %v1446_v19 = vshll.u32 %v4037_v5, 16  ;;  %4347 = vmatpush3.bf16.msra.mxu0 %v4408_v25  ;;  %4386 = vmatpush3.bf16.msra.mxu1 %v4408_v25 }
  0xb5   : > { %800 = vst.msk [vmem:[#allocation2 + $0x50] sm:$0xf] %vm779_vm7, %v724_v43  ;;  %1247 = vrot.lane.b32.xlu1 %v4014_v32, %s4436_s20  ;;  %v4942_v32 = vrot.slane %v2496_v18, 5  ;;  %v4951_v43 = vrot.slane %v2520_v30, 5  ;;  %v1443_v18 = vshrl.u32 %v4037_v5, 16  ;;  %v1467_v40 = vshrl.u32 %v4040_v24, 16 }
  0xb6   : > { %1245 = vrot.lane.b32.xlu0 %v4013_v38, %s4436_s20  ;;  %v4177_v38 = vld [vmem:[%s4476_s17 + $0x20] sm:$0x1]  ;;  %v1448_v39 = vrot.slane %v1446_v19, 5 }
  0xb7   : > { %v730_v49 = vpop.permute.xlu1 %729  ;;  %v2503_v46 = vor.u32 %v2502_v33, %v4942_v32  ;;  %v2506_v47 = vshll.u32 %v4177_v38, 16  ;;  %v1445_v38 = vrot.slane %v1443_v18, 4  ;;  %v4085_v18 = vld [vmem:[%s4476_s17 + $0x24] sm:$0xe] }
  0xb8   : > { %803 = vst.msk [vmem:[#allocation2 + $0x5c] sm:$0xf] %vm779_vm7, %v730_v49  ;;  %v728_v54 = vpop.permute.xlu0 %727  ;;  %v2516_v49 = vrot.slane %v2514_v35, 5  ;;  %v1480_v35 = vshrl.u32 %v4041_v20, 16 }
  0xb9   : > { %802 = vst.msk [vmem:[#allocation2 + $0x58] sm:$0xf] %vm779_vm7, %v728_v54  ;;  %1251 = vrot.lane.b32.xlu1 %v4016_v44, %s4436_s20  ;;  %v2526_v44 = vrot.slane %v2524_v31, 4  ;;  %v2530_v54 = vshll.u32 %v4180_v42, 16  ;;  %v2504_v57 = vrot.slane %v2503_v46, 4  ;;  %v2508_v58 = vrot.slane %v2506_v47, 5 }
  0xba   : > { %1249 = vrot.lane.b32.xlu0 %v4015_v50, %s4436_s20  ;;  %v2517_v59 = vor.u32 %v2516_v49, %v2513_v48 }
  0xbb   : > { %v734_v60 = vpop.permute.xlu1 %733  ;;  %v2527_v56 = vor.u32 %v2526_v44, %v4951_v43  ;;  %v2509_v11 = vsel %vm4487_vm2, %v2504_v57, %v2508_v58  ;;  %v4226_v44 = vld [vmem:[%s4476_s17 + $0x24] sm:$0xe]  ;;  %v1469_v57 = vrot.slane %v1467_v40, 4 }
  0xbc   : > { %805 = vst.msk [vmem:[#allocation2 + $0x64] sm:$0xf] %vm779_vm7, %v734_v60  ;;  %v732_v1 = vpop.permute.xlu0 %731  ;;  %v4964_v60 = vld [vmem:[%s4476_s17 + $0x1c] sm:$0xf] }
  0xbd   : > { %804 = vst.msk [vmem:[#allocation2 + $0x60] sm:$0xf] %vm779_vm7, %v732_v1  ;;  %1780 = vrot.lane.b32.xlu1 %v1417_v55, %s4437_s21  ;;  %v4146_v55 = vld [vmem:[%s4476_s17 + $0x28] sm:$0xf]  ;;  %v2494_v1 = vrot.slane %v2493_v52, 4  ;;  %v2528_v7 = vrot.slane %v2527_v56, 4 }
  0xbe   : > { %1778 = vrot.lane.b32.xlu0 %v1407_v61, %s4437_s21  ;;  %v4038_v61 = vld [vmem:[%s4476_s17 + $0x28] sm:$0xf]  ;;  %v1482_v52 = vrot.slane %v1480_v35, 4  ;;  %v4042_v56 = vld [vmem:[%s4476_s17 + $0x38] sm:$0x1] }
  0xbf   : > { %v738_v8 = vpop.permute.xlu1 %737  ;;  %v1452_v10 = vshll.u32 %v4038_v61, 16  ;;  %v1456_v14 = vshrl.u32 %v4038_v61, 16 }
  0xc0   : > { %807 = vst.msk [vmem:[#allocation2 + $0x6c] sm:$0xf] %vm779_vm7, %v738_v8  ;;  %v736_v12 = vpop.permute.xlu0 %735  ;;  %v3097_v8 = vrot.slane %v4964_v60, 5 }
  0xc1   : > { %806 = vst.msk [vmem:[#allocation2 + $0x68] sm:$0xf] %vm779_vm7, %v736_v12  ;;  %1784 = vrot.lane.b32.xlu1 %v1441_v4, %s4437_s21  ;;  %v2532_v4 = vrot.slane %v2530_v54, 5  ;;  %v2518_v12 = vrot.slane %v2517_v59, 4  ;;  %v5001_v30 = vrot.slane %v1452_v10, 5  ;;  %v1458_v33 = vrot.slane %v1456_v14, 4 }
  0xc2   : > { %1782 = vrot.lane.b32.xlu0 %v1431_v9, %s4437_s21  ;;  %v4223_v9 = vld [vmem:[%s4476_s17 + $0x18] sm:$0xe]  ;;  %v4272_v54 = vrot.slane %v4226_v44, 9 }
  0xc3   : > { %v742_v21 = vpop.permute.xlu1 %741  ;;  %v4271_v23 = vrot.slane %v4223_v9, 9  ;;  %v2533_v26 = vsel %vm4487_vm2, %v2528_v7, %v2532_v4  ;;  %v2523_v31 = vsel %vm4487_vm2, %v2518_v12, %v4951_v43  ;;  %v4409_v43 = vld [vmem:[%s6058_s1] sm:$0xff]   ;;  %v1459_v49 = vor.u32 %v1458_v33, %v5001_v30  ;;  %v4089_v12 = vld [vmem:[%s4476_s17 + $0x34] sm:$0xf] }
  0xc4   : > { %809 = vst.msk [vmem:[#allocation2 + $0x74] sm:$0xf] %vm779_vm7, %v742_v21  ;;  %v740_v28 = vpop.permute.xlu0 %739  ;;  %4348 = vmatprep.subr.bf16.mxu0 %v4409_v43  ;;  %4384 = vmatprep.subr.bf16.mxu1 %v4409_v43  ;;  %v2026_v19 = vrot.slane %v4089_v12, 5 }
  0xc5   : > { %808 = vst.msk [vmem:[#allocation2 + $0x70] sm:$0xf] %vm779_vm7, %v740_v28  ;;  %2117 = vrot.lane.b32.xlu1 %v2009_v17, %s4438_s22  ;;  %v2499_v17 = vsel %vm4487_vm2, %v2494_v1, %v4942_v32  ;;  %v3099_v28 = vrot.slane %v3097_v8, 4  ;;  %v4228_v32 = vld [vmem:[%s4476_s17 + $0x2c] sm:$0x1]  ;;  %v3098_v46 = vsel %vm4631_vm6, %v4271_v23, %v3097_v8  ;;  %4349 = vmatpush3.bf16.msra.mxu0 %v4409_v43  ;;  %v1460_v61 = vrot.slane %v1459_v49, 4 }
  0xc6   : > { %2115 = vrot.lane.b32.xlu0 %v2006_v22, %s4438_s22  ;;  %v3100_v22 = vrot.slane %v4969_v2, 5  ;;  %v3107_v48 = vrot.slane %v4228_v32, 5  ;;  %4387 = vmatpush3.bf16.msra.mxu1 %v4409_v43  ;;  %v1486_v1 = vshll.u32 %v4042_v56, 16  ;;  %v4090_v23 = vld [vmem:[%s4476_s17 + $0x38] sm:$0x1]  ;;  %v2028_v32 = vrot.slane %v2026_v19, 4 }
  0xc7   : > { %v746_v36 = vpop.permute.xlu1 %745  ;;  %v2029_v33 = vrot.slane %v4090_v23, 5 }
  0xc8   : > { %811 = vst.msk [vmem:[#allocation2 + $0x7c] sm:$0xf] %vm779_vm7, %v746_v36  ;;  %v744_v41 = vpop.permute.xlu0 %743  ;;  %v1488_v10 = vrot.slane %v1486_v1, 5 }
  0xc9   : > { %810 = vst.msk [vmem:[#allocation2 + $0x78] sm:$0xf] %vm779_vm7, %v744_v41  ;;  %2121 = vrot.lane.b32.xlu1 %v2016_v29, %s4438_s22  ;;  %v3104_v29 = vrot.slane %v4984_v13, 5  ;;  %v1470_v41 = vshll.u32 %v4040_v24, 16  ;;  %v2030_v49 = vsel %vm4631_vm6, %v2028_v32, %v2029_v33 }
  0xca   : > { %2119 = vrot.lane.b32.xlu0 %v2013_v37, %s4438_s22  ;;  %v4039_v37 = vld [vmem:[%s4476_s17 + $0x2c] sm:$0x1] }
  0xcb   : > { %v1026_v50 = vpop.permute.xlu1 %1025  ;;  %v3106_v47 = vrot.slane %v3104_v29, 4  ;;  %v1472_v58 = vrot.slane %v1470_v41, 5 }
  0xcc   : > { %1121 = vst.msk [vmem:[#allocation2 + $0x4] sm:$0xf] %vm1119_vm8, %v1026_v50  ;;  %v1024_v53 = vpop.permute.xlu0 %1023  ;;  %v1462_v50 = vshll.u32 %v4039_v37, 16  ;;  %v4185_v37 = vld [vmem:[%s4476_s17 + $0x40] sm:$0xf] }
  0xcd   : > { %1120 = vst.msk [vmem:[#allocation2] sm:$0xf] %vm1119_vm8, %v1024_v53  ;;  %2311 = vrot.lane.b32.xlu1 %v4144_v45, %s4439_s23  ;;  %v3101_v45 = vsel %vm4631_vm6, %v3099_v28, %v3100_v22  ;;  %v3108_v60 = vsel %vm4631_vm6, %v3106_v47, %v3107_v48  ;;  %v1473_v5 = vor.u32 %v1472_v58, %v1469_v57  ;;  %v4182_v28 = vld [vmem:[%s4476_s17 + $0x34] sm:$0xf] }
  0xce   : > { %2309 = vrot.lane.b32.xlu0 %v4143_v51, %s4439_s23  ;;  %v5022_v51 = vrot.slane %v1476_v34, 5  ;;  %v2544_v35 = vshll.u32 %v4182_v28, 16 }
  0xcf   : > { %v1030_v63 = vpop.permute.xlu1 %1029  ;;  %v1474_v15 = vrot.slane %v1473_v5, 4 }
  0xd0   : > { %1123 = vst.msk [vmem:[#allocation2 + $0xc] sm:$0xf] %vm1119_vm8, %v1030_v63  ;;  %v1028_v3 = vpop.permute.xlu0 %1027  ;;  %v1464_v63 = vrot.slane %v1462_v50, 5  ;;  %v5076_v50 = vrot.slane %v2544_v35, 5  ;;  %v4047_v35 = vld [vmem:[%s4476_s17 + $0x4c] sm:$0xf] }
  0xd1   : > { %1122 = vst.msk [vmem:[#allocation2 + $0x8] sm:$0xf] %vm1119_vm8, %v1028_v3  ;;  %2315 = vrot.lane.b32.xlu1 %v4146_v55, %s4439_s23  ;;  %v1449_v55 = vor.u32 %v1448_v39, %v1445_v38  ;;  %v3105_v3 = vsel %vm4631_vm6, %v4272_v54, %v3104_v29  ;;  %v1479_v25 = vsel %vm4487_vm2, %v1474_v15, %v5022_v51  ;;  %v4184_v38 = vld [vmem:[%s4476_s17 + $0x3c] sm:$0xf]  ;;  %v4183_v54 = vld [vmem:[%s4476_s17 + $0x38] sm:$0x1] }
  0xd2   : > { %2313 = vrot.lane.b32.xlu0 %v4145_v0, %s4439_s23  ;;  %v1483_v0 = vor.u32 %v1482_v52, %v5022_v51  ;;  %v1465_v8 = vsel %vm4487_vm2, %v1460_v61, %v1464_v63  ;;  %v2559_v47 = vshrl.u32 %v4184_v38, 16  ;;  %v2562_v48 = vshll.u32 %v4184_v38, 16  ;;  %v4148_v63 = vld [vmem:[%s4476_s17 + $0x34] sm:$0xf]  ;;  %v4149_v15 = vld [vmem:[%s4476_s17 + $0x3c] sm:$0xf] }
  0xd3   : > { %v1034_v16 = vpop.permute.xlu1 %1033  ;;  %v1450_v4 = vrot.slane %v1449_v55, 4  ;;  %v2554_v1 = vshll.u32 %v4183_v54, 16 }
  0xd4   : > { %1125 = vst.msk [vmem:[#allocation2 + $0x14] sm:$0xf] %vm1119_vm8, %v1034_v16  ;;  %v1032_v21 = vpop.permute.xlu0 %1031  ;;  %v1484_v9 = vrot.slane %v1483_v0, 4  ;;  %v4087_v16 = vld [vmem:[%s4476_s17 + $0x2c] sm:$0x1]  ;;  %v2564_v61 = vrot.slane %v2562_v48, 5 }
  0xd5   : > { %1124 = vst.msk [vmem:[#allocation2 + $0x10] sm:$0xf] %vm1119_vm8, %v1032_v21  ;;  %2872 = vrot.lane.b32.xlu1 %v2509_v11, %s4440_s28  ;;  %v2019_v11 = vrot.slane %v4086_v6, 5  ;;  %v1455_v14 = vsel %vm4487_vm2, %v1450_v4, %v5001_v30  ;;  %v2022_v22 = vrot.slane %v4087_v16, 5  ;;  %v4088_v30 = vld [vmem:[%s4476_s17 + $0x30] sm:$0xe] }
  0xd6   : > { %2870 = vrot.lane.b32.xlu0 %v2499_v17, %s4440_s28  ;;  %v1489_v20 = vsel %vm4487_vm2, %v1484_v9, %v1488_v10  ;;  %v4130_v41 = vrot.slane %v4088_v30, 9  ;;  %v4147_v4 = vld [vmem:[%s4476_s17 + $0x30] sm:$0xf]  ;;  %v4230_v10 = vld [vmem:[%s4476_s17 + $0x34] sm:$0xf]  ;;  %v1528_v48 = vshrl.u32 %v4047_v35, 16 }
  0xd7   : > { %v1038_v36 = vpop.permute.xlu1 %1037  ;;  %v2021_v21 = vrot.slane %v2019_v11, 4 }
  0xd8   : > { %1127 = vst.msk [vmem:[#allocation2 + $0x1c] sm:$0xf] %vm1119_vm8, %v1038_v36  ;;  %v1036_v42 = vpop.permute.xlu0 %1035  ;;  %v2548_v36 = vshrl.u32 %v4182_v28, 16  ;;  %v5110_v28 = vld [vmem:[%s4476_s17 + $0x40] sm:$0xf] }
  0xd9   : > { %1126 = vst.msk [vmem:[#allocation2 + $0x18] sm:$0xf] %vm1119_vm8, %v1036_v42  ;;  %2876 = vrot.lane.b32.xlu1 %v2533_v26, %s4440_s28  ;;  %v4129_v26 = vrot.slane %v4085_v18, 9  ;;  %v2023_v34 = vsel %vm4631_vm6, %v2021_v21, %v2022_v22 }
  0xda   : > { %2874 = vrot.lane.b32.xlu0 %v2523_v31, %s4440_s28  ;;  %v4181_v31 = vld [vmem:[%s4476_s17 + $0x30] sm:$0xf]  ;;  %v2550_v51 = vrot.slane %v2548_v36, 4 }
  0xdb   : > { %v1042_v53 = vpop.permute.xlu1 %1041  ;;  %v2020_v40 = vsel %vm4631_vm6, %v4129_v26, %v2019_v11  ;;  %v2535_v42 = vshrl.u32 %v4181_v31, 16  ;;  %v2538_v44 = vshll.u32 %v4181_v31, 16  ;;  %v4150_v11 = vld [vmem:[%s4476_s17 + $0x40] sm:$0xf]  ;;  %v4229_v26 = vld [vmem:[%s4476_s17 + $0x30] sm:$0xe] }
  0xdc   : > { %1129 = vst.msk [vmem:[#allocation2 + $0x24] sm:$0xf] %vm1119_vm8, %v1042_v53  ;;  %v1040_v59 = vpop.permute.xlu0 %1039  ;;  %v2027_v53 = vsel %vm4631_vm6, %v4130_v41, %v2026_v19  ;;  %v2551_v0 = vor.u32 %v2550_v51, %v5076_v50  ;;  %v3111_v19 = vrot.slane %v4230_v10, 5 }
  0xdd   : > { %1128 = vst.msk [vmem:[#allocation2 + $0x20] sm:$0xf] %vm1119_vm8, %v1040_v59  ;;  %3209 = vrot.lane.b32.xlu1 %v3101_v45, %s4441_s4  ;;  %v2568_v45 = vshll.u32 %v4185_v37, 16  ;;  %v2537_v55 = vrot.slane %v2535_v42, 4  ;;  %v2540_v56 = vrot.slane %v2538_v44, 5  ;;  %v4273_v42 = vrot.slane %v4229_v26, 9 }
  0xde   : > { %3207 = vrot.lane.b32.xlu0 %v3098_v46, %s4441_s4  ;;  %v2572_v46 = vshrl.u32 %v4185_v37, 16  ;;  %v2552_v12 = vrot.slane %v2551_v0, 4  ;;  %v3113_v37 = vrot.slane %v3111_v19, 4  ;;  %v3118_v44 = vrot.slane %v5110_v28, 5 }
  0xdf   : > { %v1046_v2 = vpop.permute.xlu1 %1045  ;;  %v5084_v58 = vrot.slane %v2568_v45, 5  ;;  %v2541_v5 = vor.u32 %v2540_v56, %v2537_v55  ;;  %v4232_v56 = vld [vmem:[%s4476_s17 + $0x3c] sm:$0xe] }
  0xe0   : > { %1131 = vst.msk [vmem:[#allocation2 + $0x2c] sm:$0xf] %vm1119_vm8, %v1046_v2  ;;  %v1044_v7 = vpop.permute.xlu0 %1043  ;;  %v2574_v59 = vrot.slane %v2572_v46, 4  ;;  %v4186_v2 = vld [vmem:[%s4476_s17 + $0x44] sm:$0x1] }
  0xe1   : > { %1130 = vst.msk [vmem:[#allocation2 + $0x28] sm:$0xf] %vm1119_vm8, %v1044_v7  ;;  %3213 = vrot.lane.b32.xlu1 %v3108_v60, %s4441_s4  ;;  %v2561_v60 = vrot.slane %v2559_v47, 4  ;;  %v2542_v16 = vrot.slane %v2541_v5, 4  ;;  %v1524_v47 = vshll.u32 %v4047_v35, 16 }
  0xe2   : > { %3211 = vrot.lane.b32.xlu0 %v3105_v3, %s4441_s4  ;;  %v2575_v7 = vor.u32 %v2574_v59, %v5084_v58  ;;  %v3120_v59 = vrot.slane %v3118_v44, 4  ;;  %v4048_v5 = vld [vmem:[%s4476_s17 + $0x50] sm:$0x1] }
  0xe3   : > { %v1050_v13 = vpop.permute.xlu1 %1049  ;;  %v2565_v9 = vor.u32 %v2564_v61, %v2561_v60  ;;  %v2547_v32 = vsel %vm4487_vm2, %v2542_v16, %v5076_v50  ;;  %v4045_v50 = vld [vmem:[%s4476_s17 + $0x44] sm:$0x1]  ;;  %v1526_v0 = vrot.slane %v1524_v47, 5 }
  0xe4   : > { %1133 = vst.msk [vmem:[#allocation2 + $0x34] sm:$0xf] %vm1119_vm8, %v1050_v13  ;;  %v1048_v17 = vpop.permute.xlu0 %1047  ;;  %v2556_v13 = vrot.slane %v2554_v1, 5  ;;  %v2576_v21 = vrot.slane %v2575_v7, 4  ;;  %v1530_v1 = vrot.slane %v1528_v48, 4 }
  0xe5   : > { %1132 = vst.msk [vmem:[#allocation2 + $0x30] sm:$0xf] %vm1119_vm8, %v1048_v17  ;;  %1788 = vrot.lane.b32.xlu1 %v1465_v8, %s4437_s21  ;;  %v2578_v8 = vshll.u32 %v4186_v2, 16  ;;  %v4044_v17 = vld [vmem:[%s4476_s17 + $0x40] sm:$0xf]  ;;  %v2566_v23 = vrot.slane %v2565_v9, 4 }
  0xe6   : > { %1786 = vrot.lane.b32.xlu0 %v1455_v14, %s4437_s21  ;;  %v1504_v30 = vshrl.u32 %v4044_v17, 16 }
  0xe7   : > { %v1054_v24 = vpop.permute.xlu1 %1053  ;;  %v2580_v22 = vrot.slane %v2578_v8, 5  ;;  %v2571_v41 = vsel %vm4487_vm2, %v2566_v23, %v5084_v58  ;;  %v3112_v58 = vsel %vm4631_vm6, %v4273_v42, %v3111_v19  ;;  %v4094_v42 = vld [vmem:[%s4476_s17 + $0x48] sm:$0xe] }
  0xe8   : > { %1135 = vst.msk [vmem:[#allocation2 + $0x3c] sm:$0xf] %vm1119_vm8, %v1054_v24  ;;  %v1052_v29 = vpop.permute.xlu0 %1051  ;;  %v4231_v24 = vld [vmem:[%s4476_s17 + $0x38] sm:$0x1]  ;;  %v1506_v46 = vrot.slane %v1504_v30, 4 }
  0xe9   : > { %1134 = vst.msk [vmem:[#allocation2 + $0x38] sm:$0xf] %vm1119_vm8, %v1052_v29  ;;  %1792 = vrot.lane.b32.xlu1 %v1489_v20, %s4437_s21  ;;  %v4043_v20 = vld [vmem:[%s4476_s17 + $0x3c] sm:$0xf]  ;;  %v1500_v29 = vshll.u32 %v4044_v17, 16  ;;  %v3114_v38 = vrot.slane %v4231_v24, 5 }
  0xea   : > { %1790 = vrot.lane.b32.xlu0 %v1479_v25, %s4437_s21  ;;  %v2557_v25 = vsel %vm4487_vm2, %v2552_v12, %v2556_v13  ;;  %v1491_v33 = vshrl.u32 %v4043_v20, 16  ;;  %v1531_v12 = vor.u32 %v1530_v1, %v1526_v0  ;;  %v1534_v13 = vshll.u32 %v4048_v5, 16  ;;  %v4095_v24 = vld [vmem:[%s4476_s17 + $0x4c] sm:$0xf] }
  0xeb   : > { %v1058_v39 = vpop.permute.xlu1 %1057  ;;  %v5128_v45 = vrot.slane %v1500_v29, 5  ;;  %v4093_v29 = vld [vmem:[%s4476_s17 + $0x44] sm:$0x1] }
  0xec   : > { %1137 = vst.msk [vmem:[#allocation2 + $0x44] sm:$0xf] %vm1119_vm8, %v1058_v39  ;;  %v1056_v43 = vpop.permute.xlu0 %1055  ;;  %v4046_v39 = vld [vmem:[%s4476_s17 + $0x48] sm:$0xf]  ;;  %v1493_v51 = vrot.slane %v1491_v33, 4  ;;  %v2036_v35 = vrot.slane %v4093_v29, 5 }
  0xed   : > { %1136 = vst.msk [vmem:[#allocation2 + $0x40] sm:$0xf] %vm1119_vm8, %v1056_v43  ;;  %2125 = vrot.lane.b32.xlu1 %v2023_v34, %s4438_s22  ;;  %v1494_v34 = vshll.u32 %v4043_v20, 16  ;;  %v4234_v43 = vld [vmem:[%s4476_s17 + $0x44] sm:$0x1]  ;;  %v1518_v54 = vshll.u32 %v4046_v39, 16  ;;  %v1507_v61 = vor.u32 %v1506_v46, %v5128_v45 }
  0xee   : > { %2123 = vrot.lane.b32.xlu0 %v2020_v40, %s4438_s22  ;;  %v2581_v40 = vsel %vm4487_vm2, %v2576_v21, %v2580_v22  ;;  %v3121_v60 = vrot.slane %v4234_v43, 5  ;;  %v1532_v21 = vrot.slane %v1531_v12, 4  ;;  %v1536_v22 = vrot.slane %v1534_v13, 5 }
  0xef   : > { %v1062_v52 = vpop.permute.xlu1 %1061  ;;  %v1520_v7 = vrot.slane %v1518_v54, 5  ;;  %v1508_v10 = vrot.slane %v1507_v61, 4 }
  0xf0   : > { %1139 = vst.msk [vmem:[#allocation2 + $0x4c] sm:$0xf] %vm1119_vm8, %v1062_v52  ;;  %v1060_v57 = vpop.permute.xlu0 %1059  ;;  %v1496_v52 = vrot.slane %v1494_v34, 5  ;;  %v3122_v9 = vsel %vm4631_vm6, %v3120_v59, %v3121_v60  ;;  %v1537_v33 = vsel %vm4487_vm2, %v1532_v21, %v1536_v22  ;;  %v4236_v22 = vld [vmem:[%s4476_s17 + $0x4c] sm:$0xf] }
  0xf1   : > { %1138 = vst.msk [vmem:[#allocation2 + $0x48] sm:$0xf] %vm1119_vm8, %v1060_v57  ;;  %2129 = vrot.lane.b32.xlu1 %v2030_v49, %s4438_s22  ;;  %v3115_v57 = vsel %vm4631_vm6, %v3113_v37, %v3114_v38 }
  0xf2   : > { %2127 = vrot.lane.b32.xlu0 %v2027_v53, %s4438_s22  ;;  %v1515_v53 = vshrl.u32 %v4046_v39, 16 }
  0xf3   : > { %v1066_v3 = vpop.permute.xlu1 %1065 }
  0xf4   : > { %1141 = vst.msk [vmem:[#allocation2 + $0x54] sm:$0xf] %vm1119_vm8, %v1066_v3  ;;  %v1064_v6 = vpop.permute.xlu0 %1063  ;;  %v4274_v3 = vrot.slane %v4232_v56, 9 }
  0xf5   : > { %1140 = vst.msk [vmem:[#allocation2 + $0x50] sm:$0xf] %vm1119_vm8, %v1064_v6  ;;  %2319 = vrot.lane.b32.xlu1 %v4148_v63, %s4439_s23  ;;  %v1510_v63 = vshll.u32 %v4045_v50, 16  ;;  %v1517_v6 = vrot.slane %v1515_v53, 4  ;;  %v4190_v50 = vld [vmem:[%s4476_s17 + $0x54] sm:$0xf] }
  0xf6   : > { %2317 = vrot.lane.b32.xlu0 %v4147_v4, %s4439_s23  ;;  %v1497_v4 = vor.u32 %v1496_v52, %v1493_v51  ;;  %v4132_v53 = vrot.slane %v4094_v42, 9  ;;  %v2607_v59 = vshrl.u32 %v4190_v50, 16  ;;  %v2610_v60 = vshll.u32 %v4190_v50, 16 }
  0xf7   : > { %v1070_v14 = vpop.permute.xlu1 %1069  ;;  %v1521_v17 = vor.u32 %v1520_v7, %v1517_v6 }
  0xf8   : > { %1143 = vst.msk [vmem:[#allocation2 + $0x5c] sm:$0xf] %vm1119_vm8, %v1070_v14  ;;  %v1068_v18 = vpop.permute.xlu0 %1067  ;;  %v1498_v16 = vrot.slane %v1497_v4, 4 }
  0xf9   : > { %1142 = vst.msk [vmem:[#allocation2 + $0x58] sm:$0xf] %vm1119_vm8, %v1068_v18  ;;  %2323 = vrot.lane.b32.xlu1 %v4150_v11, %s4439_s23  ;;  %v1512_v11 = vrot.slane %v1510_v63, 5  ;;  %v4092_v18 = vld [vmem:[%s4476_s17 + $0x40] sm:$0xf]  ;;  %v1522_v28 = vrot.slane %v1521_v17, 4 }
  0xfa   : > { %2321 = vrot.lane.b32.xlu0 %v4149_v15, %s4439_s23  ;;  %v3119_v15 = vsel %vm4631_vm6, %v4274_v3, %v3118_v44  ;;  %v2033_v23 = vrot.slane %v4092_v18, 5  ;;  %v1503_v26 = vsel %vm4487_vm2, %v1498_v16, %v5128_v45  ;;  %v4187_v44 = vld [vmem:[%s4476_s17 + $0x48] sm:$0xf]  ;;  %v4189_v3 = vld [vmem:[%s4476_s17 + $0x50] sm:$0x1] }
  0xfb   : > { %v1074_v31 = vpop.permute.xlu1 %1073  ;;  %v1513_v20 = vsel %vm4487_vm2, %v1508_v10, %v1512_v11  ;;  %v1527_v38 = vsel %vm4487_vm2, %v1522_v28, %v1526_v0  ;;  %v2583_v54 = vshrl.u32 %v4187_v44, 16  ;;  %v2612_v10 = vrot.slane %v2610_v60, 5  ;;  %v4152_v11 = vld [vmem:[%s4476_s17 + $0x4c] sm:$0xf]  ;;  %v4151_v16 = vld [vmem:[%s4476_s17 + $0x48] sm:$0xf] }
  0xfc   : > { %1145 = vst.msk [vmem:[#allocation2 + $0x64] sm:$0xf] %vm1119_vm8, %v1074_v31  ;;  %v1072_v36 = vpop.permute.xlu0 %1071  ;;  %v4091_v31 = vld [vmem:[%s4476_s17 + $0x3c] sm:$0xe]  ;;  %v2035_v34 = vrot.slane %v2033_v23, 4  ;;  %v2602_v13 = vshll.u32 %v4189_v3, 16 }
  0xfd   : > { %1144 = vst.msk [vmem:[#allocation2 + $0x60] sm:$0xf] %vm1119_vm8, %v1072_v36  ;;  %2880 = vrot.lane.b32.xlu1 %v2557_v25, %s4440_s28  ;;  %v4096_v36 = vld [vmem:[%s4476_s17 + $0x50] sm:$0x1]  ;;  %v4131_v39 = vrot.slane %v4091_v31, 9  ;;  %v2585_v4 = vrot.slane %v2583_v54, 4 }
  0xfe   : > { %2878 = vrot.lane.b32.xlu0 %v2547_v32, %s4440_s28  ;;  %v2040_v32 = vrot.slane %v4095_v24, 5  ;;  %v2043_v45 = vrot.slane %v4096_v36, 5  ;;  %v2037_v46 = vsel %vm4631_vm6, %v2035_v34, %v2036_v35  ;;  %v4153_v28 = vld [vmem:[%s4476_s17 + $0x54] sm:$0xf] }
  0xff   : > { %v1078_v49 = vpop.permute.xlu1 %1077  ;;  %v2034_v52 = vsel %vm4631_vm6, %v4131_v39, %v2033_v23  ;;  %v4154_v23 = vld [vmem:[%s4476_s17 + $0x58] sm:$0xf]  ;;  %v4235_v39 = vld [vmem:[%s4476_s17 + $0x48] sm:$0xe] }
 0x100   : > { %1147 = vst.msk [vmem:[#allocation2 + $0x6c] sm:$0xf] %vm1119_vm8, %v1078_v49  ;;  %v1076_v55 = vpop.permute.xlu0 %1075  ;;  %v2042_v43 = vrot.slane %v2040_v32, 4  ;;  %v4191_v49 = vld [vmem:[%s4476_s17 + $0x58] sm:$0xf]  ;;  %v4275_v54 = vrot.slane %v4235_v39, 9 }
 0x101   : > { %1146 = vst.msk [vmem:[#allocation2 + $0x68] sm:$0xf] %vm1119_vm8, %v1076_v55  ;;  %2884 = vrot.lane.b32.xlu1 %v2581_v40, %s4440_s28  ;;  %v4188_v40 = vld [vmem:[%s4476_s17 + $0x4c] sm:$0xf]  ;;  %v2586_v55 = vshll.u32 %v4187_v44, 16 }
 0x102   : > { %2882 = vrot.lane.b32.xlu0 %v2571_v41, %s4440_s28  ;;  %v2592_v47 = vshll.u32 %v4188_v40, 16  ;;  %v2596_v48 = vshrl.u32 %v4188_v40, 16  ;;  %v2044_v61 = vsel %vm4631_vm6, %v2042_v43, %v2043_v45  ;;  %v5225_v40 = vld [vmem:[%s4476_s17 + $0x58] sm:$0xf] }
 0x103   : > { %v1082_v2 = vpop.permute.xlu1 %1081  ;;  %v2588_v5 = vrot.slane %v2586_v55, 5  ;;  %v3132_v55 = vrot.slane %v5225_v40, 5 }
 0x104   : > { %1149 = vst.msk [vmem:[#allocation2 + $0x74] sm:$0xf] %vm1119_vm8, %v1082_v2  ;;  %v1080_v8 = vpop.permute.xlu0 %1079  ;;  %v5191_v63 = vrot.slane %v2592_v47, 5  ;;  %v2598_v0 = vrot.slane %v2596_v48, 4  ;;  %v2041_v2 = vsel %vm4631_vm6, %v4132_v53, %v2040_v32  ;;  %v3125_v32 = vrot.slane %v4236_v22, 5 }
 0x105   : > { %1148 = vst.msk [vmem:[#allocation2 + $0x70] sm:$0xf] %vm1119_vm8, %v1080_v8  ;;  %3217 = vrot.lane.b32.xlu1 %v3115_v57, %s4441_s4  ;;  %v2616_v57 = vshll.u32 %v4191_v49, 16  ;;  %v2589_v17 = vor.u32 %v2588_v5, %v2585_v4  ;;  %v4053_v47 = vld [vmem:[%s4476_s17 + $0x64] sm:$0xf] }
 0x106   : > { %3215 = vrot.lane.b32.xlu0 %v3112_v58, %s4441_s4  ;;  %v2620_v58 = vshrl.u32 %v4191_v49, 16  ;;  %v2599_v12 = vor.u32 %v2598_v0, %v5191_v63  ;;  %v3127_v49 = vrot.slane %v3125_v32, 4  ;;  %v1576_v60 = vshrl.u32 %v4053_v47, 16  ;;  %v4238_v5 = vld [vmem:[%s4476_s17 + $0x54] sm:$0xe] }
 0x107   : > { %v1086_v14 = vpop.permute.xlu1 %1085  ;;  %v5199_v7 = vrot.slane %v2616_v57, 5  ;;  %v2590_v29 = vrot.slane %v2589_v17, 4  ;;  %v4054_v17 = vld [vmem:[%s4476_s17 + $0x68] sm:$0x1] }
 0x108   : > { %1151 = vst.msk [vmem:[#allocation2 + $0x7c] sm:$0xf] %vm1119_vm8, %v1086_v14  ;;  %v1084_v19 = vpop.permute.xlu0 %1083  ;;  %v2622_v8 = vrot.slane %v2620_v58, 4  ;;  %v4192_v14 = vld [vmem:[%s4476_s17 + $0x5c] sm:$0x1]  ;;  %v2600_v24 = vrot.slane %v2599_v12, 4 }
 0x109   : > { %1150 = vst.msk [vmem:[#allocation2 + $0x78] sm:$0xf] %vm1119_vm8, %v1084_v19  ;;  %3221 = vrot.lane.b32.xlu1 %v3122_v9, %s4441_s4  ;;  %v2609_v9 = vrot.slane %v2607_v59, 4  ;;  %v2595_v43 = vsel %vm4487_vm2, %v2590_v29, %v5191_v63  ;;  %v1572_v59 = vshll.u32 %v4053_v47, 16  ;;  %v4051_v63 = vld [vmem:[%s4476_s17 + $0x5c] sm:$0x1] }
 0x10a   : > { %3219 = vrot.lane.b32.xlu0 %v3119_v15, %s4441_s4  ;;  %v2623_v19 = vor.u32 %v2622_v8, %v5199_v7  ;;  %v3134_v8 = vrot.slane %v3132_v55, 4 }
 0x10b   : > { %v1220_v25 = vpop.permute.xlu1 %1219  ;;  %v2613_v21 = vor.u32 %v2612_v10, %v2609_v9  ;;  %v5256_v12 = vrot.slane %v1572_v59, 5 }
 0x10c   : > { %1315 = vst.msk [vmem:[#allocation2 + $0x4] sm:$0xf] %vm1313_vm10, %v1220_v25  ;;  %v1218_v30 = vpop.permute.xlu0 %1217  ;;  %v2604_v25 = vrot.slane %v2602_v13, 5  ;;  %v2624_v34 = vrot.slane %v2623_v19, 4  ;;  %v1578_v13 = vrot.slane %v1576_v60, 4 }
 0x10d   : > { %1314 = vst.msk [vmem:[#allocation2] sm:$0xf] %vm1313_vm10, %v1218_v30  ;;  %1796 = vrot.lane.b32.xlu1 %v1513_v20, %s4437_s21  ;;  %v2626_v20 = vshll.u32 %v4192_v14, 16  ;;  %v4050_v30 = vld [vmem:[%s4476_s17 + $0x58] sm:$0xf]  ;;  %v2614_v36 = vrot.slane %v2613_v21, 4 }
 0x10e   : > { %1794 = vrot.lane.b32.xlu0 %v1503_v26, %s4437_s21  ;;  %v1552_v42 = vshrl.u32 %v4050_v30, 16 }
 0x10f   : > { %v1224_v37 = vpop.permute.xlu1 %1223  ;;  %v2628_v35 = vrot.slane %v2626_v20, 5  ;;  %v2619_v53 = vsel %vm4487_vm2, %v2614_v36, %v5199_v7  ;;  %v3126_v7 = vsel %vm4631_vm6, %v4275_v54, %v3125_v32 }
 0x110   : > { %1317 = vst.msk [vmem:[#allocation2 + $0xc] sm:$0xf] %vm1313_vm10, %v1224_v37  ;;  %v1222_v41 = vpop.permute.xlu0 %1221  ;;  %v4237_v37 = vld [vmem:[%s4476_s17 + $0x50] sm:$0x1]  ;;  %v1554_v58 = vrot.slane %v1552_v42, 4 }
 0x111   : > { %1316 = vst.msk [vmem:[#allocation2 + $0x8] sm:$0xf] %vm1313_vm10, %v1222_v41  ;;  %1800 = vrot.lane.b32.xlu1 %v1537_v33, %s4437_s21  ;;  %v4049_v33 = vld [vmem:[%s4476_s17 + $0x54] sm:$0xf]  ;;  %v1548_v41 = vshll.u32 %v4050_v30, 16  ;;  %v3128_v50 = vrot.slane %v4237_v37, 5 }
 0x112   : > { %1798 = vrot.lane.b32.xlu0 %v1527_v38, %s4437_s21  ;;  %v2605_v38 = vsel %vm4487_vm2, %v2600_v24, %v2604_v25  ;;  %v1539_v45 = vshrl.u32 %v4049_v33, 16  ;;  %v1579_v24 = vor.u32 %v1578_v13, %v5256_v12  ;;  %v1582_v25 = vshll.u32 %v4054_v17, 16  ;;  %v4101_v37 = vld [vmem:[%s4476_s17 + $0x64] sm:$0xf]  ;;  %v4195_v13 = vld [vmem:[%s4476_s17 + $0x68] sm:$0x1] }
 0x113   : > { %v1228_v51 = vpop.permute.xlu1 %1227  ;;  %v5243_v57 = vrot.slane %v1548_v41, 5  ;;  %v4099_v41 = vld [vmem:[%s4476_s17 + $0x5c] sm:$0x1] }
 0x114   : > { %1319 = vst.msk [vmem:[#allocation2 + $0x14] sm:$0xf] %vm1313_vm10, %v1228_v51  ;;  %v1226_v56 = vpop.permute.xlu0 %1225  ;;  %v4052_v51 = vld [vmem:[%s4476_s17 + $0x60] sm:$0xf]  ;;  %v1541_v0 = vrot.slane %v1539_v45, 4  ;;  %v2050_v47 = vrot.slane %v4099_v41, 5 }
 0x115   : > { %1318 = vst.msk [vmem:[#allocation2 + $0x10] sm:$0xf] %vm1313_vm10, %v1226_v56  ;;  %2133 = vrot.lane.b32.xlu1 %v2037_v46, %s4438_s22  ;;  %v1542_v46 = vshll.u32 %v4049_v33, 16  ;;  %v4240_v56 = vld [vmem:[%s4476_s17 + $0x5c] sm:$0x1]  ;;  %v1566_v3 = vshll.u32 %v4052_v51, 16  ;;  %v1555_v10 = vor.u32 %v1554_v58, %v5243_v57 }
 0x116   : > { %2131 = vrot.lane.b32.xlu0 %v2034_v52, %s4438_s22  ;;  %v2629_v52 = vsel %vm4487_vm2, %v2624_v34, %v2628_v35  ;;  %v3135_v9 = vrot.slane %v4240_v56, 5  ;;  %v1580_v34 = vrot.slane %v1579_v24, 4  ;;  %v1584_v35 = vrot.slane %v1582_v25, 5  ;;  %v4155_v25 = vld [vmem:[%s4476_s17 + $0x60] sm:$0xf] }
 0x117   : > { %v1232_v1 = vpop.permute.xlu1 %1231  ;;  %v1568_v19 = vrot.slane %v1566_v3, 5  ;;  %v1556_v22 = vrot.slane %v1555_v10, 4  ;;  %v4197_v3 = vld [vmem:[%s4476_s17 + $0x70] sm:$0xf] }
 0x118   : > { %1321 = vst.msk [vmem:[#allocation2 + $0x1c] sm:$0xf] %vm1313_vm10, %v1232_v1  ;;  %v1230_v6 = vpop.permute.xlu0 %1229  ;;  %v1544_v1 = vrot.slane %v1542_v46, 5  ;;  %v3136_v21 = vsel %vm4631_vm6, %v3134_v8, %v3135_v9  ;;  %v1585_v45 = vsel %vm4487_vm2, %v1580_v34, %v1584_v35  ;;  %v2664_v10 = vshll.u32 %v4197_v3, 16 }
 0x119   : > { %1320 = vst.msk [vmem:[#allocation2 + $0x18] sm:$0xf] %vm1313_vm10, %v1230_v6  ;;  %2137 = vrot.lane.b32.xlu1 %v2044_v61, %s4438_s22  ;;  %v3129_v6 = vsel %vm4631_vm6, %v3127_v49, %v3128_v50  ;;  %v4100_v49 = vld [vmem:[%s4476_s17 + $0x60] sm:$0xe] }
 0x11a   : > { %2135 = vrot.lane.b32.xlu0 %v2041_v2, %s4438_s22  ;;  %v1563_v2 = vshrl.u32 %v4052_v51, 16  ;;  %v4134_v58 = vrot.slane %v4100_v49, 9  ;;  %v4245_v49 = vld [vmem:[%s4476_s17 + $0x70] sm:$0xf] }
 0x11b   : > { %v1236_v15 = vpop.permute.xlu1 %1235 }
 0x11c   : > { %1323 = vst.msk [vmem:[#allocation2 + $0x24] sm:$0xf] %vm1313_vm10, %v1236_v15  ;;  %v1234_v18 = vpop.permute.xlu0 %1233  ;;  %v4276_v15 = vrot.slane %v4238_v5, 9  ;;  %v4196_v5 = vld [vmem:[%s4476_s17 + $0x6c] sm:$0xf] }
 0x11d   : > { %1322 = vst.msk [vmem:[#allocation2 + $0x20] sm:$0xf] %vm1313_vm10, %v1234_v18  ;;  %2327 = vrot.lane.b32.xlu1 %v4152_v11, %s4439_s23  ;;  %v1558_v11 = vshll.u32 %v4051_v63, 16  ;;  %v1565_v18 = vrot.slane %v1563_v2, 4  ;;  %v2658_v17 = vshll.u32 %v4196_v5, 16 }
 0x11e   : > { %2325 = vrot.lane.b32.xlu0 %v4151_v16, %s4439_s23  ;;  %v1545_v16 = vor.u32 %v1544_v1, %v1541_v0 }
 0x11f   : > { %v1240_v26 = vpop.permute.xlu1 %1239  ;;  %v1569_v30 = vor.u32 %v1568_v19, %v1565_v18  ;;  %v4156_v19 = vld [vmem:[%s4476_s17 + $0x64] sm:$0xf] }
 0x120   : > { %1325 = vst.msk [vmem:[#allocation2 + $0x2c] sm:$0xf] %vm1313_vm10, %v1240_v26  ;;  %v1238_v31 = vpop.permute.xlu0 %1237  ;;  %v1546_v29 = vrot.slane %v1545_v16, 4  ;;  %v2655_v16 = vshrl.u32 %v4196_v5, 16 }
 0x121   : > { %1324 = vst.msk [vmem:[#allocation2 + $0x28] sm:$0xf] %vm1313_vm10, %v1238_v31  ;;  %2331 = vrot.lane.b32.xlu1 %v4154_v23, %s4439_s23  ;;  %v1560_v23 = vrot.slane %v1558_v11, 5  ;;  %v4098_v31 = vld [vmem:[%s4476_s17 + $0x58] sm:$0xf]  ;;  %v1570_v40 = vrot.slane %v1569_v30, 4 }
 0x122   : > { %2329 = vrot.lane.b32.xlu0 %v4153_v28, %s4439_s23  ;;  %v3133_v28 = vsel %vm4631_vm6, %v4276_v15, %v3132_v55  ;;  %v2047_v36 = vrot.slane %v4098_v31, 5  ;;  %v1551_v39 = vsel %vm4487_vm2, %v1546_v29, %v5243_v57  ;;  %v4193_v55 = vld [vmem:[%s4476_s17 + $0x60] sm:$0xf]  ;;  %v2668_v11 = vshrl.u32 %v4197_v3, 16 }
 0x123   : > { %v1244_v44 = vpop.permute.xlu1 %1243  ;;  %v1561_v33 = vsel %vm4487_vm2, %v1556_v22, %v1560_v23  ;;  %v1575_v51 = vsel %vm4487_vm2, %v1570_v40, %v5256_v12  ;;  %v2631_v1 = vshrl.u32 %v4193_v55, 16  ;;  %v2634_v2 = vshll.u32 %v4193_v55, 16 }
 0x124   : > { %1327 = vst.msk [vmem:[#allocation2 + $0x34] sm:$0xf] %vm1313_vm10, %v1244_v44  ;;  %v1242_v48 = vpop.permute.xlu0 %1241  ;;  %v4097_v44 = vld [vmem:[%s4476_s17 + $0x54] sm:$0xe]  ;;  %v2049_v46 = vrot.slane %v2047_v36, 4  ;;  %v5321_v22 = vrot.slane %v2664_v10, 5 }
 0x125   : > { %1326 = vst.msk [vmem:[#allocation2 + $0x30] sm:$0xf] %vm1313_vm10, %v1242_v48  ;;  %2888 = vrot.lane.b32.xlu1 %v2605_v38, %s4440_s28  ;;  %v4102_v48 = vld [vmem:[%s4476_s17 + $0x68] sm:$0x1]  ;;  %v2636_v15 = vrot.slane %v2634_v2, 5  ;;  %v2670_v23 = vrot.slane %v2668_v11, 4 }
 0x126   : > { %2886 = vrot.lane.b32.xlu0 %v2595_v43, %s4440_s28  ;;  %v2054_v43 = vrot.slane %v4101_v37, 5  ;;  %v2057_v57 = vrot.slane %v4102_v48, 5  ;;  %v2051_v59 = vsel %vm4631_vm6, %v2049_v46, %v2050_v47  ;;  %v2657_v29 = vrot.slane %v2655_v16, 4  ;;  %v4241_v48 = vld [vmem:[%s4476_s17 + $0x60] sm:$0xe] }
 0x127   : > { %v1248_v61 = vpop.permute.xlu1 %1247  ;;  %v2660_v30 = vrot.slane %v2658_v17, 5 }
 0x128   : > { %1329 = vst.msk [vmem:[#allocation2 + $0x3c] sm:$0xf] %vm1313_vm10, %v1248_v61  ;;  %v1246_v4 = vpop.permute.xlu0 %1245  ;;  %v2056_v56 = vrot.slane %v2054_v43, 4 }
 0x129   : > { %1328 = vst.msk [vmem:[#allocation2 + $0x38] sm:$0xf] %vm1313_vm10, %v1246_v4  ;;  %2892 = vrot.lane.b32.xlu1 %v2629_v52, %s4440_s28  ;;  %v4133_v52 = vrot.slane %v4097_v44, 9  ;;  %v2661_v41 = vor.u32 %v2660_v30, %v2657_v29 }
 0x12a   : > { %2890 = vrot.lane.b32.xlu0 %v2619_v53, %s4440_s28  ;;  %v4194_v53 = vld [vmem:[%s4476_s17 + $0x64] sm:$0xf] }
 0x12b   : > { %v1252_v14 = vpop.permute.xlu1 %1251  ;;  %v2640_v60 = vshll.u32 %v4194_v53, 16  ;;  %v2644_v61 = vshrl.u32 %v4194_v53, 16  ;;  %v2048_v0 = vsel %vm4631_vm6, %v4133_v52, %v2047_v36  ;;  %v2671_v36 = vor.u32 %v2670_v23, %v5321_v22  ;;  %v4056_v53 = vld [vmem:[%s4476_s17 + $0x70] sm:$0xf] }
 0x12c   : > { %1331 = vst.msk [vmem:[#allocation2 + $0x44] sm:$0xf] %vm1313_vm10, %v1252_v14  ;;  %v1250_v20 = vpop.permute.xlu0 %1249  ;;  %v2633_v14 = vrot.slane %v2631_v1, 4  ;;  %v2662_v52 = vrot.slane %v2661_v41, 4  ;;  %v1600_v1 = vshrl.u32 %v4056_v53, 16 }
 0x12d   : > { %1330 = vst.msk [vmem:[#allocation2 + $0x40] sm:$0xf] %vm1313_vm10, %v1250_v20  ;;  %3225 = vrot.lane.b32.xlu1 %v3129_v6, %s4441_s4  ;;  %v2058_v6 = vsel %vm4631_vm6, %v2056_v56, %v2057_v57  ;;  %v5312_v8 = vrot.slane %v2640_v60, 5  ;;  %v2646_v9 = vrot.slane %v2644_v61, 4  ;;  %v2672_v46 = vrot.slane %v2671_v36, 4 }
 0x12e   : > { %3223 = vrot.lane.b32.xlu0 %v3126_v7, %s4441_s4  ;;  %v2055_v7 = vsel %vm4631_vm6, %v4134_v58, %v2054_v43  ;;  %v4243_v43 = vld [vmem:[%s4476_s17 + $0x68] sm:$0x1]  ;;  %v4055_v57 = vld [vmem:[%s4476_s17 + $0x6c] sm:$0xf]  ;;  %v4277_v58 = vrot.slane %v4241_v48, 9  ;;  %v2667_v3 = vsel %vm4487_vm2, %v2662_v52, %v5321_v22 }
 0x12f   : > { %v1781_v26 = vpop.permute.xlu1 %1780  ;;  %v2647_v20 = vor.u32 %v2646_v9, %v5312_v8  ;;  %v3142_v56 = vrot.slane %v4243_v43, 5  ;;  %v4246_v61 = vld [vmem:[%s4476_s17 + $0x74] sm:$0x1]  ;;  %v1590_v5 = vshll.u32 %v4055_v57, 16  ;;  %v4058_v9 = vld [vmem:[%s4476_s17 + $0x78] sm:$0xf] }
 0x130   : > { %1876 = vst.msk [vmem:[#allocation2 + $0x4] sm:$0xf] %vm1874_vm11, %v1781_v26  ;;  %v1779_v32 = vpop.permute.xlu0 %1778  ;;  %v2637_v26 = vor.u32 %v2636_v15, %v2633_v14  ;;  %v1602_v15 = vrot.slane %v1600_v1, 4  ;;  %v1611_v22 = vshrl.u32 %v4058_v9, 16  ;;  %v1614_v23 = vshll.u32 %v4058_v9, 16 }
 0x131   : > { %1875 = vst.msk [vmem:[#allocation2] sm:$0xf] %vm1874_vm11, %v1779_v32  ;;  %3229 = vrot.lane.b32.xlu1 %v3136_v21, %s4441_s4  ;;  %v2650_v21 = vshll.u32 %v4195_v13, 16  ;;  %v4242_v32 = vld [vmem:[%s4476_s17 + $0x64] sm:$0xf]  ;;  %v2648_v34 = vrot.slane %v2647_v20, 4 }
 0x132   : > { %3227 = vrot.lane.b32.xlu0 %v3133_v28, %s4441_s4  ;;  %v4198_v28 = vld [vmem:[%s4476_s17 + $0x74] sm:$0x1]  ;;  %v2638_v40 = vrot.slane %v2637_v26, 4  ;;  %v3139_v44 = vrot.slane %v4242_v32, 5  ;;  %v1616_v36 = vrot.slane %v1614_v23, 5 }
 0x133   : > { %v1785_v38 = vpop.permute.xlu1 %1784  ;;  %v2652_v35 = vrot.slane %v2650_v21, 5  ;;  %v2674_v37 = vshll.u32 %v4198_v28, 16  ;;  %v1592_v21 = vrot.slane %v1590_v5, 5  ;;  %v4104_v48 = vld [vmem:[%s4476_s17 + $0x70] sm:$0xf] }
 0x134   : > { %1878 = vst.msk [vmem:[#allocation2 + $0xc] sm:$0xf] %vm1874_vm11, %v1785_v38  ;;  %v1783_v42 = vpop.permute.xlu0 %1782  ;;  %v3141_v55 = vrot.slane %v3139_v44, 4  ;;  %v3140_v10 = vsel %vm4631_vm6, %v4277_v58, %v3139_v44  ;;  %v4202_v23 = vld [vmem:[%s4476_s17 + $0x84] sm:$0xf] }
 0x135   : > { %1877 = vst.msk [vmem:[#allocation2 + $0x8] sm:$0xf] %vm1874_vm11, %v1783_v42  ;;  %1804 = vrot.lane.b32.xlu1 %v1561_v33, %s4437_s21  ;;  %v4158_v33 = vld [vmem:[%s4476_s17 + $0x70] sm:$0xf]  ;;  %v2676_v47 = vrot.slane %v2674_v37, 5 }
 0x136   : > { %1802 = vrot.lane.b32.xlu0 %v1551_v39, %s4437_s21  ;;  %v4157_v39 = vld [vmem:[%s4476_s17 + $0x6c] sm:$0xf] }
 0x137   : > { %v2118_v50 = vpop.permute.xlu1 %2117  ;;  %v2677_v60 = vsel %vm4487_vm2, %v2672_v46, %v2676_v47 }
 0x138   : > { %2213 = vst.msk [vmem:[#allocation2 + $0x4] sm:$0xf] %vm2211_vm12, %v2118_v50  ;;  %v2116_v54 = vpop.permute.xlu0 %2115 }
 0x139   : > { %2212 = vst.msk [vmem:[#allocation2] sm:$0xf] %vm2211_vm12, %v2116_v54  ;;  %1808 = vrot.lane.b32.xlu1 %v1585_v45, %s4437_s21  ;;  %v2653_v45 = vsel %vm4487_vm2, %v2648_v34, %v2652_v35  ;;  %v4060_v34 = vld [vmem:[%s4476_s17 + $0x80] sm:$0x1]  ;;  %v1613_v35 = vrot.slane %v1611_v22, 4 }
 0x13a   : > { %1806 = vrot.lane.b32.xlu0 %v1575_v51, %s4437_s21  ;;  %v2643_v51 = vsel %vm4487_vm2, %v2638_v40, %v5312_v8  ;;  %v3143_v8 = vsel %vm4631_vm6, %v3141_v55, %v3142_v56  ;;  %v4017_v40 = vld [vmem:[%s4476_s17 + $0x78] sm:$0xf]  ;;  %v1630_v43 = vshll.u32 %v4060_v34, 16  ;;  %v4107_v55 = vld [vmem:[%s4476_s17 + $0x7c] sm:$0xf] }
 0x13b   : > { %v2122_v63 = vpop.permute.xlu1 %2121  ;;  %v1617_v47 = vor.u32 %v1616_v36, %v1613_v35  ;;  %v2703_v35 = vshrl.u32 %v4202_v23, 16  ;;  %v2706_v36 = vshll.u32 %v4202_v23, 16 }
 0x13c   : > { %2215 = vst.msk [vmem:[#allocation2 + $0xc] sm:$0xf] %vm2211_vm12, %v2122_v63  ;;  %v2120_v4 = vpop.permute.xlu0 %2119  ;;  %v4244_v63 = vld [vmem:[%s4476_s17 + $0x6c] sm:$0xe] }
 0x13d   : > { %2214 = vst.msk [vmem:[#allocation2 + $0x8] sm:$0xf] %vm2211_vm12, %v2120_v4  ;;  %2141 = vrot.lane.b32.xlu1 %v2051_v59, %s4438_s22  ;;  %v3146_v59 = vrot.slane %v4245_v49, 5  ;;  %v1587_v4 = vshrl.u32 %v4055_v57, 16  ;;  %v4278_v13 = vrot.slane %v4244_v63, 9  ;;  %v1618_v58 = vrot.slane %v1617_v47, 4 }
 0x13e   : > { %2139 = vrot.lane.b32.xlu0 %v2048_v0, %s4438_s22  ;;  %v1596_v0 = vshll.u32 %v4056_v53, 16  ;;  %v1632_v53 = vrot.slane %v1630_v43, 5  ;;  %v2068_v63 = vrot.slane %v4107_v55, 5  ;;  %v4159_v43 = vld [vmem:[%s4476_s17 + $0x78] sm:$0xf]  ;;  %v2705_v47 = vrot.slane %v2703_v35, 4 }
 0x13f   : > { %v2312_v12 = vpop.permute.xlu1 %2311  ;;  %v3148_v11 = vrot.slane %v3146_v59, 4  ;;  %v1589_v20 = vrot.slane %v1587_v4, 4  ;;  %v3147_v32 = vsel %vm4631_vm6, %v4278_v13, %v3146_v59  ;;  %v4105_v59 = vld [vmem:[%s4476_s17 + $0x74] sm:$0x1]  ;;  %v4106_v4 = vld [vmem:[%s4476_s17 + $0x78] sm:$0xe] }
 0x140   : > { %2407 = vst.msk [vmem:[#allocation2 + $0x4] sm:$0xf] %vm2405_vm13, %v2312_v12  ;;  %v2310_v18 = vpop.permute.xlu0 %2309  ;;  %v3149_v12 = vrot.slane %v4246_v61, 5  ;;  %v5368_v14 = vrot.slane %v1596_v0, 5  ;;  %v4103_v61 = vld [vmem:[%s4476_s17 + $0x6c] sm:$0xe] }
 0x141   : > { %2406 = vst.msk [vmem:[#allocation2] sm:$0xf] %vm2405_vm13, %v2310_v18  ;;  %2145 = vrot.lane.b32.xlu1 %v2058_v6, %s4438_s22  ;;  %v4059_v6 = vld [vmem:[%s4476_s17 + $0x7c] sm:$0xf]  ;;  %v4136_v13 = vrot.slane %v4106_v4, 9 }
 0x142   : > { %2143 = vrot.lane.b32.xlu0 %v2055_v7, %s4438_s22  ;;  %v1620_v16 = vshll.u32 %v4059_v6, 16  ;;  %v1624_v17 = vshrl.u32 %v4059_v6, 16  ;;  %v1603_v26 = vor.u32 %v1602_v15, %v5368_v14  ;;  %v4064_v35 = vld [vmem:[%s4476_s17 + $0x90] sm:$0xf] }
 0x143   : > { %v2316_v24 = vpop.permute.xlu1 %2315 }
 0x144   : > { %2409 = vst.msk [vmem:[#allocation2 + $0xc] sm:$0xf] %vm2405_vm13, %v2316_v24  ;;  %v2314_v31 = vpop.permute.xlu0 %2313  ;;  %v5378_v29 = vrot.slane %v1620_v16, 5  ;;  %v1626_v30 = vrot.slane %v1624_v17, 4  ;;  %v1604_v41 = vrot.slane %v1603_v26, 4 }
 0x145   : > { %2408 = vst.msk [vmem:[#allocation2 + $0x8] sm:$0xf] %vm2405_vm13, %v2314_v31  ;;  %2335 = vrot.lane.b32.xlu1 %v4156_v19, %s4439_s23  ;;  %v4057_v19 = vld [vmem:[%s4476_s17 + $0x74] sm:$0x1] }
 0x146   : > { %2333 = vrot.lane.b32.xlu0 %v4155_v25, %s4439_s23  ;;  %v3150_v25 = vsel %vm4631_vm6, %v3148_v11, %v3149_v12  ;;  %v1606_v28 = vshll.u32 %v4057_v19, 16  ;;  %v1627_v44 = vor.u32 %v1626_v30, %v5378_v29  ;;  %v1623_v6 = vsel %vm4487_vm2, %v1618_v58, %v5378_v29 }
 0x147   : > { %v2873_v38 = vpop.permute.xlu1 %2872  ;;  %v2070_v11 = vrot.slane %v2068_v63, 4 }
 0x148   : > { %2968 = vst.msk [vmem:[#allocation2 + $0x4] sm:$0xf] %vm2966_vm14, %v2873_v38  ;;  %v2871_v42 = vpop.permute.xlu0 %2870  ;;  %v1628_v52 = vrot.slane %v1627_v44, 4 }
 0x149   : > { %2967 = vst.msk [vmem:[#allocation2] sm:$0xf] %vm2966_vm14, %v2871_v42  ;;  %2339 = vrot.lane.b32.xlu1 %v4158_v33, %s4439_s23  ;;  %v1593_v33 = vor.u32 %v1592_v21, %v1589_v20  ;;  %v1608_v42 = vrot.slane %v1606_v28, 5  ;;  %v4203_v21 = vld [vmem:[%s4476_s17 + $0x88] sm:$0xf] }
 0x14a   : > { %2337 = vrot.lane.b32.xlu0 %v4157_v39, %s4439_s23  ;;  %v4018_v39 = vld [vmem:[%s4476_s17 + $0x7c] sm:$0xf]  ;;  %v1633_v0 = vsel %vm4487_vm2, %v1628_v52, %v1632_v53  ;;  %v2712_v29 = vshll.u32 %v4203_v21, 16  ;;  %v2716_v30 = vshrl.u32 %v4203_v21, 16 }
 0x14b   : > { %v2877_v50 = vpop.permute.xlu1 %2876  ;;  %v1594_v46 = vrot.slane %v1593_v33, 4 }
 0x14c   : > { %2970 = vst.msk [vmem:[#allocation2 + $0xc] sm:$0xf] %vm2966_vm14, %v2877_v50  ;;  %v2875_v54 = vpop.permute.xlu0 %2874 }
 0x14d   : > { %2969 = vst.msk [vmem:[#allocation2 + $0x8] sm:$0xf] %vm2966_vm14, %v2875_v54  ;;  %2896 = vrot.lane.b32.xlu1 %v2653_v45, %s4440_s28  ;;  %v2061_v54 = vrot.slane %v4104_v48, 5  ;;  %v1599_v57 = vsel %vm4487_vm2, %v1594_v46, %v5368_v14  ;;  %v4204_v46 = vld [vmem:[%s4476_s17 + $0x8c] sm:$0x1]  ;;  %v2708_v48 = vrot.slane %v2706_v36, 5 }
 0x14e   : > { %2894 = vrot.lane.b32.xlu0 %v2643_v51, %s4440_s28  ;;  %v1609_v51 = vsel %vm4487_vm2, %v1604_v41, %v1608_v42  ;;  %v2714_v41 = vrot.slane %v2712_v29, 5  ;;  %v2718_v42 = vrot.slane %v2716_v30, 4 }
 0x14f   : > { %v3210_v2 = vpop.permute.xlu1 %3209  ;;  %v2063_v1 = vrot.slane %v2061_v54, 4  ;;  %v2709_v58 = vor.u32 %v2708_v48, %v2705_v47  ;;  %v1662_v47 = vshll.u32 %v4064_v35, 16 }
 0x150   : > { %3305 = vst.msk [vmem:[#allocation2 + $0x4] sm:$0xf] %vm3303_vm15, %v3210_v2  ;;  %v3208_v7 = vpop.permute.xlu0 %3207  ;;  %v2064_v2 = vrot.slane %v4105_v59, 5  ;;  %v2719_v53 = vor.u32 %v2718_v42, %v2714_v41  ;;  %v4248_v59 = vld [vmem:[%s4476_s17 + $0x7c] sm:$0xf] }
 0x151   : > { %3304 = vst.msk [vmem:[#allocation2] sm:$0xf] %vm3303_vm15, %v3208_v7  ;;  %2900 = vrot.lane.b32.xlu1 %v2677_v60, %s4440_s28  ;;  %v4135_v7 = vrot.slane %v4103_v61, 9 }
 0x152   : > { %2898 = vrot.lane.b32.xlu0 %v2667_v3, %s4440_s28  ;;  %v4108_v3 = vld [vmem:[%s4476_s17 + $0x80] sm:$0x1]  ;;  %v2065_v14 = vsel %vm4631_vm6, %v2063_v1, %v2064_v2  ;;  %v3153_v1 = vrot.slane %v4248_v59, 5  ;;  %v4251_v2 = vld [vmem:[%s4476_s17 + $0x88] sm:$0xf] }
 0x153   : > { %v3214_v18 = vpop.permute.xlu1 %3213  ;;  %v2071_v12 = vrot.slane %v4108_v3, 5 }
 0x154   : > { %3307 = vst.msk [vmem:[#allocation2 + $0xc] sm:$0xf] %vm3303_vm15, %v3214_v18  ;;  %v3212_v24 = vpop.permute.xlu0 %3211  ;;  %v2062_v18 = vsel %vm4631_vm6, %v4135_v7, %v2061_v54  ;;  %v2722_v54 = vshll.u32 %v4204_v46, 16  ;;  %v1659_v46 = vshrl.u32 %v4064_v35, 16 }
 0x155   : > { %3306 = vst.msk [vmem:[#allocation2 + $0x8] sm:$0xf] %vm3303_vm15, %v3212_v24  ;;  %3233 = vrot.lane.b32.xlu1 %v3143_v8, %s4441_s4  ;;  %v4200_v8 = vld [vmem:[%s4476_s17 + $0x7c] sm:$0xf]  ;;  %v2072_v24 = vsel %vm4631_vm6, %v2070_v11, %v2071_v12  ;;  %v3155_v11 = vrot.slane %v3153_v1, 4 }
 0x156   : > { %3231 = vrot.lane.b32.xlu0 %v3140_v10, %s4441_s4  ;;  %v4199_v10 = vld [vmem:[%s4476_s17 + $0x78] sm:$0xf]  ;;  %v2688_v15 = vshll.u32 %v4200_v8, 16  ;;  %v2692_v16 = vshrl.u32 %v4200_v8, 16  ;;  %v1661_v59 = vrot.slane %v1659_v46, 4 }
 0x157   : > { %v1789_v31 = vpop.permute.xlu1 %1788  ;;  %v2679_v19 = vshrl.u32 %v4199_v10, 16  ;;  %v2682_v20 = vshll.u32 %v4199_v10, 16  ;;  %v4247_v8 = vld [vmem:[%s4476_s17 + $0x78] sm:$0xe]  ;;  %v4208_v46 = vld [vmem:[%s4476_s17 + $0x9c] sm:$0xf] }
 0x158   : > { %1880 = vst.msk [vmem:[#allocation2 + $0x14] sm:$0xf] %vm1874_vm11, %v1789_v31  ;;  %v1787_v37 = vpop.permute.xlu0 %1786  ;;  %v4410_v38 = vld [vmem:[#allocation2] sm:$0xff]   ;;  %v2690_v26 = vrot.slane %v2688_v15, 5  ;;  %v2694_v28 = vrot.slane %v2692_v16, 4 }
 0x159   : > { %1879 = vst.msk [vmem:[#allocation2 + $0x10] sm:$0xf] %vm1874_vm11, %v1787_v37  ;;  %3237 = vrot.lane.b32.xlu1 %v3150_v25, %s4441_s4  ;;  %4350 = vmatprep.mubr.msk.bf16.mxu0 %vm3468_vm0, %v4410_v38  ;;  %v2069_v25 = vsel %vm4631_vm6, %v4136_v13, %v2068_v63  ;;  %v2681_v33 = vrot.slane %v2679_v19, 4  ;;  %v2684_v34 = vrot.slane %v2682_v20, 5  ;;  %v4160_v38 = vld [vmem:[%s4476_s17 + $0x7c] sm:$0xf] }
 0x15a   : > { %3235 = vrot.lane.b32.xlu0 %v3147_v32, %s4441_s4  ;;  %v4201_v32 = vld [vmem:[%s4476_s17 + $0x80] sm:$0x1]  ;;  %v2720_v63 = vrot.slane %v2719_v53, 4  ;;  %v4252_v13 = vld [vmem:[%s4476_s17 + $0x8c] sm:$0x1] }
 0x15b   : > { %v1793_v45 = vpop.permute.xlu1 %1792  ;;  %v4061_v20 = vld [vmem:[%s4476_s17 + $0x84] sm:$0xf] }
 0x15c   : > { %1882 = vst.msk [vmem:[#allocation2 + $0x1c] sm:$0xf] %vm1874_vm11, %v1793_v45  ;;  %v1791_v49 = vpop.permute.xlu0 %1790  ;;  %v4411_v50 = vld [vmem:[#allocation2 + $0x8] sm:$0xff]   ;;  %v2685_v45 = vor.u32 %v2684_v34, %v2681_v33  ;;  %v1635_v30 = vshrl.u32 %v4061_v20, 16 }
 0x15d   : > { %1881 = vst.msk [vmem:[#allocation2 + $0x18] sm:$0xf] %vm1874_vm11, %v1791_v49  ;;  %1255 = vrot.lane.b32.xlu1 %v4018_v39, %s4436_s20  ;;  %4351 = vmatmul.mubr.msk.bf16.vlgmr.msra.gmra.mxu0 %vm3468_vm0, %v4411_v50  ;;  %v2695_v39 = vor.u32 %v2694_v28, %v2690_v26  ;;  %v4162_v50 = vld [vmem:[%s4476_s17 + $0x88] sm:$0xf] }
 0x15e   : > { %1253 = vrot.lane.b32.xlu0 %v4017_v40, %s4436_s20  ;;  %v2698_v40 = vshll.u32 %v4201_v32, 16  ;;  %v4065_v32 = vld [vmem:[%s4476_s17 + $0x94] sm:$0xf] }
 0x15f   : > { %v2126_v56 = vpop.permute.xlu1 %2125  ;;  %v1672_v42 = vshrl.u32 %v4065_v32, 16 }
 0x160   : > { %2217 = vst.msk [vmem:[#allocation2 + $0x14] sm:$0xf] %vm2211_vm12, %v2126_v56  ;;  %v2124_v60 = vpop.permute.xlu0 %2123  ;;  %v2700_v52 = vrot.slane %v2698_v40, 5  ;;  %v4161_v56 = vld [vmem:[%s4476_s17 + $0x84] sm:$0xf] }
 0x161   : > { %2216 = vst.msk [vmem:[#allocation2 + $0x10] sm:$0xf] %vm2211_vm12, %v2124_v60  ;;  %1812 = vrot.lane.b32.xlu1 %v1609_v51, %s4437_s21  ;;  %v2696_v51 = vrot.slane %v2695_v39, 4 }
 0x162   : > { %1810 = vrot.lane.b32.xlu0 %v1599_v57, %s4437_s21  ;;  %v2686_v57 = vrot.slane %v2685_v45, 4 }
 0x163   : > { %v2130_v5 = vpop.permute.xlu1 %2129  ;;  %v2701_v61 = vsel %vm4487_vm2, %v2696_v51, %v2700_v52 }
 0x164   : > { %2219 = vst.msk [vmem:[#allocation2 + $0x1c] sm:$0xf] %vm2211_vm12, %v2130_v5  ;;  %v2128_v9 = vpop.permute.xlu0 %2127  ;;  %v2691_v4 = vsel %vm4487_vm2, %v2686_v57, %v2690_v26  ;;  %v2710_v5 = vrot.slane %v2709_v58, 4  ;;  %v4066_v58 = vld [vmem:[%s4476_s17 + $0x98] sm:$0x1] }
 0x165   : > { %2218 = vst.msk [vmem:[#allocation2 + $0x18] sm:$0xf] %vm2211_vm12, %v2128_v9  ;;  %1816 = vrot.lane.b32.xlu1 %v1633_v0, %s4437_s21  ;;  %v2724_v0 = vrot.slane %v2722_v54, 5  ;;  %v3160_v9 = vrot.slane %v4251_v2, 5  ;;  %v1674_v54 = vrot.slane %v1672_v42, 4 }
 0x166   : > { %1814 = vrot.lane.b32.xlu0 %v1623_v6, %s4437_s21  ;;  %v4249_v6 = vld [vmem:[%s4476_s17 + $0x80] sm:$0x1]  ;;  %v2715_v16 = vsel %vm4487_vm2, %v2710_v5, %v2714_v41  ;;  %v1668_v41 = vshll.u32 %v4065_v32, 16  ;;  %v4021_v5 = vld [vmem:[%s4476_s17 + $0x90] sm:$0xf] }
 0x167   : > { %v2320_v17 = vpop.permute.xlu1 %2319  ;;  %v2725_v10 = vsel %vm4487_vm2, %v2720_v63, %v2724_v0  ;;  %v3156_v12 = vrot.slane %v4249_v6, 5  ;;  %v3162_v21 = vrot.slane %v3160_v9, 4  ;;  %v4022_v63 = vld [vmem:[%s4476_s17 + $0x94] sm:$0xf] }
 0x168   : > { %2411 = vst.msk [vmem:[#allocation2 + $0x14] sm:$0xf] %vm2405_vm13, %v2320_v17  ;;  %v2318_v22 = vpop.permute.xlu0 %2317  ;;  %v4279_v17 = vrot.slane %v4247_v8, 9  ;;  %v1670_v53 = vrot.slane %v1668_v41, 5  ;;  %v4110_v8 = vld [vmem:[%s4476_s17 + $0x88] sm:$0xf] }
 0x169   : > { %2410 = vst.msk [vmem:[#allocation2 + $0x10] sm:$0xf] %vm2405_vm13, %v2318_v22  ;;  %2149 = vrot.lane.b32.xlu1 %v2065_v14, %s4438_s22  ;;  %v4250_v14 = vld [vmem:[%s4476_s17 + $0x84] sm:$0xe]  ;;  %v3163_v22 = vrot.slane %v4252_v13, 5  ;;  %v2075_v13 = vrot.slane %v4110_v8, 5 }
 0x16a   : > { %2147 = vrot.lane.b32.xlu0 %v2062_v18, %s4438_s22  ;;  %v4062_v18 = vld [vmem:[%s4476_s17 + $0x88] sm:$0xf]  ;;  %v4280_v23 = vrot.slane %v4250_v14, 9  ;;  %v3154_v29 = vsel %vm4631_vm6, %v4279_v17, %v3153_v1  ;;  %v1675_v2 = vor.u32 %v1674_v54, %v1670_v53  ;;  %v4113_v14 = vld [vmem:[%s4476_s17 + $0x94] sm:$0xf] }
 0x16b   : > { %v2324_v31 = vpop.permute.xlu1 %2323  ;;  %v1648_v26 = vshrl.u32 %v4062_v18, 16  ;;  %v3164_v36 = vsel %vm4631_vm6, %v3162_v21, %v3163_v22  ;;  %v2082_v21 = vrot.slane %v4113_v14, 5  ;;  %v4207_v54 = vld [vmem:[%s4476_s17 + $0x98] sm:$0x1] }
 0x16c   : > { %2413 = vst.msk [vmem:[#allocation2 + $0x1c] sm:$0xf] %vm2405_vm13, %v2324_v31  ;;  %v2322_v37 = vpop.permute.xlu0 %2321  ;;  %v1638_v31 = vshll.u32 %v4061_v20, 16  ;;  %v4109_v20 = vld [vmem:[%s4476_s17 + $0x84] sm:$0xe] }
 0x16d   : > { %2412 = vst.msk [vmem:[#allocation2 + $0x18] sm:$0xf] %vm2405_vm13, %v2322_v37  ;;  %2153 = vrot.lane.b32.xlu1 %v2072_v24, %s4438_s22  ;;  %v3157_v24 = vsel %vm4631_vm6, %v3155_v11, %v3156_v12  ;;  %v3161_v37 = vsel %vm4631_vm6, %v4280_v23, %v3160_v9  ;;  %v1650_v40 = vrot.slane %v1648_v26, 4  ;;  %v1676_v11 = vrot.slane %v1675_v2, 4  ;;  %v4112_v26 = vld [vmem:[%s4476_s17 + $0x90] sm:$0xe] }
 0x16e   : > { %2151 = vrot.lane.b32.xlu0 %v2069_v25, %s4438_s22  ;;  %v1644_v25 = vshll.u32 %v4062_v18, 16  ;;  %v1640_v45 = vrot.slane %v1638_v31, 5  ;;  %v4111_v18 = vld [vmem:[%s4476_s17 + $0x8c] sm:$0x1]  ;;  %v2077_v23 = vrot.slane %v2075_v13, 4 }
 0x16f   : > { %v2881_v44 = vpop.permute.xlu1 %2880  ;;  %v4206_v31 = vld [vmem:[%s4476_s17 + $0x94] sm:$0xf] }
 0x170   : > { %2972 = vst.msk [vmem:[#allocation2 + $0x14] sm:$0xf] %vm2966_vm14, %v2881_v44  ;;  %v2879_v49 = vpop.permute.xlu0 %2878  ;;  %v1646_v39 = vrot.slane %v1644_v25, 5  ;;  %v4114_v25 = vld [vmem:[%s4476_s17 + $0x98] sm:$0x1] }
 0x171   : > { %2971 = vst.msk [vmem:[#allocation2 + $0x10] sm:$0xf] %vm2966_vm14, %v2879_v49  ;;  %2343 = vrot.lane.b32.xlu1 %v4160_v38, %s4439_s23  ;;  %v4063_v38 = vld [vmem:[%s4476_s17 + $0x8c] sm:$0x1]  ;;  %v2085_v35 = vrot.slane %v4114_v25, 5 }
 0x172   : > { %2341 = vrot.lane.b32.xlu0 %v4159_v43, %s4439_s23  ;;  %v1637_v43 = vrot.slane %v1635_v30, 4  ;;  %v1651_v51 = vor.u32 %v1650_v40, %v1646_v39  ;;  %v1654_v52 = vshll.u32 %v4063_v38, 16  ;;  %v4137_v30 = vrot.slane %v4109_v20, 9 }
 0x173   : > { %v2885_v55 = vpop.permute.xlu1 %2884  ;;  %v2736_v38 = vshll.u32 %v4206_v31, 16 }
 0x174   : > { %2974 = vst.msk [vmem:[#allocation2 + $0x1c] sm:$0xf] %vm2966_vm14, %v2885_v55  ;;  %v2883_v60 = vpop.permute.xlu0 %2882  ;;  %v1641_v57 = vor.u32 %v1640_v45, %v1637_v43  ;;  %v1652_v0 = vrot.slane %v1651_v51, 4  ;;  %v1656_v1 = vrot.slane %v1654_v52, 5  ;;  %v2076_v41 = vsel %vm4631_vm6, %v4137_v30, %v2075_v13  ;;  %v4209_v43 = vld [vmem:[%s4476_s17 + $0xa0] sm:$0xf] }
 0x175   : > { %2973 = vst.msk [vmem:[#allocation2 + $0x18] sm:$0xf] %vm2966_vm14, %v2883_v60  ;;  %2347 = vrot.lane.b32.xlu1 %v4162_v50, %s4439_s23  ;;  %v4020_v50 = vld [vmem:[%s4476_s17 + $0x88] sm:$0xf]  ;;  %v1664_v60 = vrot.slane %v1662_v47, 5  ;;  %v2760_v51 = vshll.u32 %v4209_v43, 16 }
 0x176   : > { %2345 = vrot.lane.b32.xlu0 %v4161_v56, %s4439_s23  ;;  %v4019_v56 = vld [vmem:[%s4476_s17 + $0x84] sm:$0xf]  ;;  %v1642_v6 = vrot.slane %v1641_v57, 4  ;;  %v2764_v52 = vshrl.u32 %v4209_v43, 16  ;;  %v2751_v57 = vshrl.u32 %v4208_v46, 16 }
 0x177   : > { %v3218_v3 = vpop.permute.xlu1 %3217 }
 0x178   : > { %3309 = vst.msk [vmem:[#allocation2 + $0x14] sm:$0xf] %vm3303_vm15, %v3218_v3  ;;  %v3216_v7 = vpop.permute.xlu0 %3215  ;;  %v1678_v3 = vshll.u32 %v4066_v58, 16  ;;  %v2754_v58 = vshll.u32 %v4208_v46, 16 }
 0x179   : > { %3308 = vst.msk [vmem:[#allocation2 + $0x10] sm:$0xf] %vm3303_vm15, %v3216_v7  ;;  %2904 = vrot.lane.b32.xlu1 %v2701_v61, %s4440_s28  ;;  %v1665_v7 = vor.u32 %v1664_v60, %v1661_v59  ;;  %v4164_v60 = vld [vmem:[%s4476_s17 + $0x94] sm:$0xf] }
 0x17a   : > { %2902 = vrot.lane.b32.xlu0 %v2691_v4, %s4440_s28  ;;  %v1680_v12 = vrot.slane %v1678_v3, 5  ;;  %v4163_v3 = vld [vmem:[%s4476_s17 + $0x90] sm:$0xf] }
 0x17b   : > { %v3222_v15 = vpop.permute.xlu1 %3221  ;;  %v1666_v17 = vrot.slane %v1665_v7, 4  ;;  %v2756_v7 = vrot.slane %v2754_v58, 5  ;;  %v4070_v58 = vld [vmem:[%s4476_s17 + $0xa8] sm:$0xf] }
 0x17c   : > { %3311 = vst.msk [vmem:[#allocation2 + $0x1c] sm:$0xf] %vm3303_vm15, %v3222_v15  ;;  %v3220_v19 = vpop.permute.xlu0 %3219  ;;  %v1681_v22 = vsel %vm4487_vm2, %v1676_v11, %v1680_v12 }
 0x17d   : > { %3310 = vst.msk [vmem:[#allocation2 + $0x18] sm:$0xf] %vm3303_vm15, %v3220_v19  ;;  %2908 = vrot.lane.b32.xlu1 %v2725_v10, %s4440_s28  ;;  %v1657_v10 = vsel %vm4487_vm2, %v1652_v0, %v1656_v1  ;;  %v5556_v0 = vrot.slane %v2760_v51, 5  ;;  %v2766_v1 = vrot.slane %v2764_v52, 4 }
 0x17e   : > { %2906 = vrot.lane.b32.xlu0 %v2715_v16, %s4440_s28  ;;  %v1647_v16 = vsel %vm4487_vm2, %v1642_v6, %v1646_v39  ;;  %v2740_v39 = vshrl.u32 %v4206_v31, 16  ;;  %v2753_v6 = vrot.slane %v2751_v57, 4 }
 0x17f   : > { %v1797_v28 = vpop.permute.xlu1 %1796  ;;  %v2767_v12 = vor.u32 %v2766_v1, %v5556_v0 }
 0x180   : > { %1884 = vst.msk [vmem:[#allocation2 + $0x24] sm:$0xf] %vm1874_vm11, %v1797_v28  ;;  %v1795_v33 = vpop.permute.xlu0 %1794  ;;  %v4412_v34 = vld [vmem:[#allocation2 + $0x10] sm:$0xff]  }
 0x181   : > { %1883 = vst.msk [vmem:[#allocation2 + $0x20] sm:$0xf] %vm1874_vm11, %v1795_v33  ;;  %3241 = vrot.lane.b32.xlu1 %v3157_v24, %s4441_s4  ;;  %4354 = vmatprep.mubr.msk.bf16.mxu0 %vm3468_vm0, %v4412_v34  ;;  %v2078_v24 = vrot.slane %v4111_v18, 5  ;;  %v4205_v33 = vld [vmem:[%s4476_s17 + $0x90] sm:$0xf]  ;;  %v2084_v34 = vrot.slane %v2082_v21, 4 }
 0x182   : > { %3239 = vrot.lane.b32.xlu0 %v3154_v29, %s4441_s4  ;;  %v1671_v29 = vsel %vm4487_vm2, %v1666_v17, %v1670_v53  ;;  %v2727_v42 = vshrl.u32 %v4205_v33, 16  ;;  %v2757_v17 = vor.u32 %v2756_v7, %v2753_v6  ;;  %v4254_v18 = vld [vmem:[%s4476_s17 + $0x94] sm:$0xf]  ;;  %v1707_v6 = vshrl.u32 %v4070_v58, 16 }
 0x183   : > { %v1801_v44 = vpop.permute.xlu1 %1800  ;;  %v2086_v47 = vsel %vm4631_vm6, %v2084_v34, %v2085_v35  ;;  %v1710_v7 = vshll.u32 %v4070_v58, 16 }
 0x184   : > { %1886 = vst.msk [vmem:[#allocation2 + $0x2c] sm:$0xf] %vm1874_vm11, %v1801_v44  ;;  %v1799_v48 = vpop.permute.xlu0 %1798  ;;  %v4413_v49 = vld [vmem:[#allocation2 + $0x18] sm:$0xff]   ;;  %v2730_v44 = vshll.u32 %v4205_v33, 16 }
 0x185   : > { %1885 = vst.msk [vmem:[#allocation2 + $0x28] sm:$0xf] %vm1874_vm11, %v1799_v48  ;;  %3245 = vrot.lane.b32.xlu1 %v3164_v36, %s4441_s4  ;;  %4355 = vmatmul.mubr.msk.bf16.gmra.mxu0 %vm3468_vm0, %v4413_v49  ;;  %v4138_v36 = vrot.slane %v4112_v26, 9  ;;  %v2738_v49 = vrot.slane %v2736_v38, 5  ;;  %v4256_v38 = vld [vmem:[%s4476_s17 + $0x9c] sm:$0xe] }
 0x186   : > { %3243 = vrot.lane.b32.xlu0 %v3161_v37, %s4441_s4  ;;  %v2079_v37 = vsel %vm4631_vm6, %v2077_v23, %v2078_v24  ;;  %v3167_v23 = vrot.slane %v4254_v18, 5  ;;  %v4257_v24 = vld [vmem:[%s4476_s17 + $0xa0] sm:$0xf]  ;;  %v1709_v18 = vrot.slane %v1707_v6, 4 }
 0x187   : > { %v2134_v55 = vpop.permute.xlu1 %2133  ;;  %v2083_v48 = vsel %vm4631_vm6, %v4138_v36, %v2082_v21  ;;  %v2768_v21 = vrot.slane %v2767_v12, 4  ;;  %v3174_v33 = vrot.slane %v4257_v24, 5 }
 0x188   : > { %2221 = vst.msk [vmem:[#allocation2 + $0x24] sm:$0xf] %vm2211_vm12, %v2134_v55  ;;  %v2132_v61 = vpop.permute.xlu0 %2131  ;;  %v2729_v55 = vrot.slane %v2727_v42, 4  ;;  %v3169_v35 = vrot.slane %v3167_v23, 4  ;;  %v4068_v42 = vld [vmem:[%s4476_s17 + $0xa0] sm:$0xf] }
 0x189   : > { %2220 = vst.msk [vmem:[#allocation2 + $0x20] sm:$0xf] %vm2211_vm12, %v2132_v61  ;;  %1259 = vrot.lane.b32.xlu1 %v4020_v50, %s4436_s20  ;;  %v2742_v50 = vrot.slane %v2740_v39, 4  ;;  %v3176_v46 = vrot.slane %v3174_v33, 4  ;;  %v1696_v51 = vshrl.u32 %v4068_v42, 16 }
 0x18a   : > { %1257 = vrot.lane.b32.xlu0 %v4019_v56, %s4436_s20  ;;  %v2732_v56 = vrot.slane %v2730_v44, 5 }
 0x18b   : > { %v2138_v4 = vpop.permute.xlu1 %2137  ;;  %v2743_v61 = vor.u32 %v2742_v50, %v2738_v49  ;;  %v1692_v50 = vshll.u32 %v4068_v42, 16 }
 0x18c   : > { %2223 = vst.msk [vmem:[#allocation2 + $0x2c] sm:$0xf] %vm2211_vm12, %v2138_v4  ;;  %v2136_v9 = vpop.permute.xlu0 %2135  ;;  %v2733_v4 = vor.u32 %v2732_v56, %v2729_v55  ;;  %v4071_v56 = vld [vmem:[%s4476_s17 + $0xac] sm:$0xf] }
 0x18d   : > { %2222 = vst.msk [vmem:[#allocation2 + $0x28] sm:$0xf] %vm2211_vm12, %v2136_v9  ;;  %1263 = vrot.lane.b32.xlu1 %v4022_v63, %s4436_s20  ;;  %v2746_v63 = vshll.u32 %v4207_v54, 16  ;;  %v4166_v9 = vld [vmem:[%s4476_s17 + $0xa0] sm:$0xf]  ;;  %v1720_v1 = vshrl.u32 %v4071_v56, 16 }
 0x18e   : > { %1261 = vrot.lane.b32.xlu0 %v4021_v5, %s4436_s20  ;;  %v4210_v5 = vld [vmem:[%s4476_s17 + $0xa4] sm:$0x1] }
 0x18f   : > { %v2328_v15 = vpop.permute.xlu1 %2327  ;;  %v2748_v11 = vrot.slane %v2746_v63, 5  ;;  %v2770_v13 = vshll.u32 %v4210_v5, 16  ;;  %v1698_v63 = vrot.slane %v1696_v51, 4 }
 0x190   : > { %2415 = vst.msk [vmem:[#allocation2 + $0x24] sm:$0xf] %vm2405_vm13, %v2328_v15  ;;  %v2326_v19 = vpop.permute.xlu0 %2325  ;;  %v4165_v15 = vld [vmem:[%s4476_s17 + $0x9c] sm:$0xf] }
 0x191   : > { %2414 = vst.msk [vmem:[#allocation2 + $0x20] sm:$0xf] %vm2405_vm13, %v2326_v19  ;;  %1820 = vrot.lane.b32.xlu1 %v1657_v10, %s4437_s21  ;;  %v2744_v10 = vrot.slane %v2743_v61, 4  ;;  %v1694_v61 = vrot.slane %v1692_v50, 5 }
 0x192   : > { %1818 = vrot.lane.b32.xlu0 %v1647_v16, %s4437_s21  ;;  %v2734_v16 = vrot.slane %v2733_v4, 4 }
 0x193   : > { %v2332_v28 = vpop.permute.xlu1 %2331  ;;  %v2749_v20 = vsel %vm4487_vm2, %v2744_v10, %v2748_v11  ;;  %v1699_v10 = vor.u32 %v1698_v63, %v1694_v61 }
 0x194   : > { %2417 = vst.msk [vmem:[#allocation2 + $0x2c] sm:$0xf] %vm2405_vm13, %v2332_v28  ;;  %v2330_v32 = vpop.permute.xlu0 %2329  ;;  %v2739_v26 = vsel %vm4487_vm2, %v2734_v16, %v2738_v49  ;;  %v2758_v28 = vrot.slane %v2757_v17, 4  ;;  %v4072_v17 = vld [vmem:[%s4476_s17 + $0xb0] sm:$0x1] }
 0x195   : > { %2416 = vst.msk [vmem:[#allocation2 + $0x28] sm:$0xf] %vm2405_vm13, %v2330_v32  ;;  %1824 = vrot.lane.b32.xlu1 %v1681_v22, %s4437_s21  ;;  %v2772_v22 = vrot.slane %v2770_v13, 5  ;;  %v4253_v32 = vld [vmem:[%s4476_s17 + $0x90] sm:$0xe]  ;;  %v1722_v13 = vrot.slane %v1720_v1, 4 }
 0x196   : > { %1822 = vrot.lane.b32.xlu0 %v1671_v29, %s4437_s21  ;;  %v4255_v29 = vld [vmem:[%s4476_s17 + $0x98] sm:$0x1] }
 0x197   : > { %v2889_v40 = vpop.permute.xlu1 %2888  ;;  %v2773_v34 = vsel %vm4487_vm2, %v2768_v21, %v2772_v22  ;;  %v3170_v36 = vrot.slane %v4255_v29, 5  ;;  %v4026_v21 = vld [vmem:[%s4476_s17 + $0xac] sm:$0xf]  ;;  %v1700_v22 = vrot.slane %v1699_v10, 4 }
 0x198   : > { %2976 = vst.msk [vmem:[#allocation2 + $0x24] sm:$0xf] %vm2966_vm14, %v2889_v40  ;;  %v2887_v45 = vpop.permute.xlu0 %2886  ;;  %v2763_v40 = vsel %vm4487_vm2, %v2758_v28, %v5556_v0  ;;  %v1716_v0 = vshll.u32 %v4071_v56, 16  ;;  %v4025_v28 = vld [vmem:[%s4476_s17 + $0xa8] sm:$0xf] }
 0x199   : > { %2975 = vst.msk [vmem:[#allocation2 + $0x20] sm:$0xf] %vm2966_vm14, %v2887_v45  ;;  %2157 = vrot.lane.b32.xlu1 %v2079_v37, %s4438_s22  ;;  %v4258_v37 = vld [vmem:[%s4476_s17 + $0xa4] sm:$0x1]  ;;  %v4067_v45 = vld [vmem:[%s4476_s17 + $0x9c] sm:$0xf]  ;;  %v3171_v49 = vsel %vm4631_vm6, %v3169_v35, %v3170_v36 }
 0x19a   : > { %2155 = vrot.lane.b32.xlu0 %v2076_v41, %s4438_s22  ;;  %v4281_v41 = vrot.slane %v4253_v32, 9  ;;  %v1683_v54 = vshrl.u32 %v4067_v45, 16  ;;  %v1686_v55 = vshll.u32 %v4067_v45, 16  ;;  %v1718_v12 = vrot.slane %v1716_v0, 5 }
 0x19b   : > { %v2893_v53 = vpop.permute.xlu1 %2892 }
 0x19c   : > { %2978 = vst.msk [vmem:[#allocation2 + $0x2c] sm:$0xf] %vm2966_vm14, %v2893_v53  ;;  %v2891_v59 = vpop.permute.xlu0 %2890  ;;  %v3168_v53 = vsel %vm4631_vm6, %v4281_v41, %v3167_v23  ;;  %v1685_v4 = vrot.slane %v1683_v54, 4  ;;  %v1688_v5 = vrot.slane %v1686_v55, 5  ;;  %v1723_v24 = vor.u32 %v1722_v13, %v1718_v12  ;;  %v4117_v41 = vld [vmem:[%s4476_s17 + $0xa4] sm:$0x1] }
 0x19d   : > { %2977 = vst.msk [vmem:[#allocation2 + $0x28] sm:$0xf] %vm2966_vm14, %v2891_v59  ;;  %2161 = vrot.lane.b32.xlu1 %v2086_v47, %s4438_s22  ;;  %v3177_v47 = vrot.slane %v4258_v37, 5  ;;  %v4119_v37 = vld [vmem:[%s4476_s17 + $0xac] sm:$0xf] }
 0x19e   : > { %2159 = vrot.lane.b32.xlu0 %v2083_v48, %s4438_s22  ;;  %v4282_v48 = vrot.slane %v4256_v38, 9  ;;  %v1689_v16 = vor.u32 %v1688_v5, %v1685_v4  ;;  %v4211_v55 = vld [vmem:[%s4476_s17 + $0xa8] sm:$0xf]  ;;  %v4214_v5 = vld [vmem:[%s4476_s17 + $0xb4] sm:$0xf] }
 0x19f   : > { %v3226_v2 = vpop.permute.xlu1 %3225  ;;  %v3178_v59 = vsel %vm4631_vm6, %v3176_v46, %v3177_v47  ;;  %v2092_v47 = vrot.slane %v4117_v41, 5  ;;  %v2775_v1 = vshrl.u32 %v4211_v55, 16  ;;  %v4213_v13 = vld [vmem:[%s4476_s17 + $0xb0] sm:$0x1] }
 0x1a0   : > { %3313 = vst.msk [vmem:[#allocation2 + $0x24] sm:$0xf] %vm3303_vm15, %v3226_v2  ;;  %v3224_v8 = vpop.permute.xlu0 %3223  ;;  %v1690_v29 = vrot.slane %v1689_v16, 4  ;;  %v2799_v16 = vshrl.u32 %v4214_v5, 16 }
 0x1a1   : > { %3312 = vst.msk [vmem:[#allocation2 + $0x20] sm:$0xf] %vm3303_vm15, %v3224_v8  ;;  %2351 = vrot.lane.b32.xlu1 %v4164_v60, %s4439_s23  ;;  %v3175_v60 = vsel %vm4631_vm6, %v4282_v48, %v3174_v33  ;;  %v4120_v48 = vld [vmem:[%s4476_s17 + $0xb0] sm:$0x1] }
 0x1a2   : > { %2349 = vrot.lane.b32.xlu0 %v4163_v3, %s4439_s23  ;;  %v4069_v3 = vld [vmem:[%s4476_s17 + $0xa4] sm:$0x1] }
 0x1a3   : > { %v3230_v14 = vpop.permute.xlu1 %3229  ;;  %v1702_v11 = vshll.u32 %v4069_v3, 16  ;;  %v4215_v3 = vld [vmem:[%s4476_s17 + $0xb8] sm:$0xf] }
 0x1a4   : > { %3315 = vst.msk [vmem:[#allocation2 + $0x2c] sm:$0xf] %vm3303_vm15, %v3230_v14  ;;  %v3228_v19 = vpop.permute.xlu0 %3227  ;;  %v2808_v10 = vshll.u32 %v4215_v3, 16 }
 0x1a5   : > { %3314 = vst.msk [vmem:[#allocation2 + $0x28] sm:$0xf] %vm3303_vm15, %v3228_v19  ;;  %2355 = vrot.lane.b32.xlu1 %v4166_v9, %s4439_s23  ;;  %v4024_v9 = vld [vmem:[%s4476_s17 + $0xa0] sm:$0xf]  ;;  %v1712_v19 = vrot.slane %v1710_v7, 5  ;;  %v1704_v23 = vrot.slane %v1702_v11, 5 }
 0x1a6   : > { %2353 = vrot.lane.b32.xlu0 %v4165_v15, %s4439_s23  ;;  %v4023_v15 = vld [vmem:[%s4476_s17 + $0x9c] sm:$0xf]  ;;  %v2812_v11 = vshrl.u32 %v4215_v3, 16 }
 0x1a7   : > { %v1805_v25 = vpop.permute.xlu1 %1804  ;;  %v1705_v33 = vsel %vm4487_vm2, %v1700_v22, %v1704_v23  ;;  %v2794_v22 = vshll.u32 %v4213_v13, 16  ;;  %v5678_v23 = vrot.slane %v2808_v10, 5 }
 0x1a8   : > { %1888 = vst.msk [vmem:[#allocation2 + $0x34] sm:$0xf] %vm1874_vm11, %v1805_v25  ;;  %v1803_v30 = vpop.permute.xlu0 %1802  ;;  %v4414_v31 = vld [vmem:[#allocation2 + $0x20] sm:$0xff]   ;;  %v1726_v25 = vshll.u32 %v4072_v17, 16  ;;  %v2802_v17 = vshll.u32 %v4214_v5, 16 }
 0x1a9   : > { %1887 = vst.msk [vmem:[#allocation2 + $0x30] sm:$0xf] %vm1874_vm11, %v1803_v30  ;;  %2912 = vrot.lane.b32.xlu1 %v2749_v20, %s4440_s28  ;;  %4358 = vmatprep.mubr.msk.bf16.mxu0 %vm3468_vm0, %v4414_v31  ;;  %v1713_v30 = vor.u32 %v1712_v19, %v1709_v18  ;;  %v4116_v31 = vld [vmem:[%s4476_s17 + $0xa0] sm:$0xf]  ;;  %v4168_v19 = vld [vmem:[%s4476_s17 + $0xac] sm:$0xf] }
 0x1aa   : > { %2910 = vrot.lane.b32.xlu0 %v2739_v26, %s4440_s28  ;;  %v1728_v35 = vrot.slane %v1726_v25, 5  ;;  %v2089_v36 = vrot.slane %v4116_v31, 5 }
 0x1ab   : > { %v1809_v39 = vpop.permute.xlu1 %1808 }
 0x1ac   : > { %1890 = vst.msk [vmem:[#allocation2 + $0x3c] sm:$0xf] %vm1874_vm11, %v1809_v39  ;;  %v1807_v44 = vpop.permute.xlu0 %1806  ;;  %v4415_v43 = vld [vmem:[#allocation2 + $0x28] sm:$0xff]   ;;  %v1695_v39 = vsel %vm4487_vm2, %v1690_v29, %v1694_v61  ;;  %v2091_v46 = vrot.slane %v2089_v36, 4  ;;  %v2801_v29 = vrot.slane %v2799_v16, 4 }
 0x1ad   : > { %1889 = vst.msk [vmem:[#allocation2 + $0x38] sm:$0xf] %vm1874_vm11, %v1807_v44  ;;  %2916 = vrot.lane.b32.xlu1 %v2773_v34, %s4440_s28  ;;  %4359 = vmatmul.mubr.msk.bf16.gmra.mxu0 %vm3468_vm0, %v4415_v43  ;;  %v1724_v34 = vrot.slane %v1723_v24, 4  ;;  %v4115_v44 = vld [vmem:[%s4476_s17 + $0x9c] sm:$0xe]  ;;  %v2096_v43 = vrot.slane %v4119_v37, 5 }
 0x1ae   : > { %2914 = vrot.lane.b32.xlu0 %v2763_v40, %s4440_s28  ;;  %v1714_v40 = vrot.slane %v1713_v30, 4  ;;  %v2814_v24 = vrot.slane %v2812_v11, 4  ;;  %v2804_v30 = vrot.slane %v2802_v17, 5  ;;  %v4076_v17 = vld [vmem:[%s4476_s17 + $0xc0] sm:$0xf] }
 0x1af   : > { %v2142_v52 = vpop.permute.xlu1 %2141  ;;  %v1729_v45 = vsel %vm4487_vm2, %v1724_v34, %v1728_v35  ;;  %v2098_v56 = vrot.slane %v2096_v43, 4  ;;  %v4169_v34 = vld [vmem:[%s4476_s17 + $0xb4] sm:$0xf] }
 0x1b0   : > { %2225 = vst.msk [vmem:[#allocation2 + $0x34] sm:$0xf] %vm2211_vm12, %v2142_v52  ;;  %v2140_v57 = vpop.permute.xlu0 %2139  ;;  %v1719_v51 = vsel %vm4487_vm2, %v1714_v40, %v1718_v12  ;;  %v4139_v52 = vrot.slane %v4115_v44, 9  ;;  %v2815_v37 = vor.u32 %v2814_v24, %v5678_v23  ;;  %v2805_v41 = vor.u32 %v2804_v30, %v2801_v29 }
 0x1b1   : > { %2224 = vst.msk [vmem:[#allocation2 + $0x30] sm:$0xf] %vm2211_vm12, %v2140_v57  ;;  %3249 = vrot.lane.b32.xlu1 %v3171_v49, %s4441_s4  ;;  %v4118_v49 = vld [vmem:[%s4476_s17 + $0xa8] sm:$0xe]  ;;  %v2099_v57 = vrot.slane %v4120_v48, 5  ;;  %v1755_v29 = vshrl.u32 %v4076_v17, 16 }
 0x1b2   : > { %3247 = vrot.lane.b32.xlu0 %v3168_v53, %s4441_s4  ;;  %v4212_v53 = vld [vmem:[%s4476_s17 + $0xac] sm:$0xf]  ;;  %v4140_v58 = vrot.slane %v4118_v49, 9  ;;  %v2090_v0 = vsel %vm4631_vm6, %v4139_v52, %v2089_v36  ;;  %v2796_v36 = vrot.slane %v2794_v22, 5  ;;  %v4263_v49 = vld [vmem:[%s4476_s17 + $0xb8] sm:$0xf] }
 0x1b3   : > { %v2146_v2 = vpop.permute.xlu1 %2145  ;;  %v2788_v61 = vshrl.u32 %v4212_v53, 16  ;;  %v2100_v6 = vsel %vm4631_vm6, %v2098_v56, %v2099_v57  ;;  %v2806_v52 = vrot.slane %v2805_v41, 4  ;;  %v3188_v56 = vrot.slane %v4263_v49, 5 }
 0x1b4   : > { %2227 = vst.msk [vmem:[#allocation2 + $0x3c] sm:$0xf] %vm2211_vm12, %v2146_v2  ;;  %v2144_v8 = vpop.permute.xlu0 %2143  ;;  %v2778_v2 = vshll.u32 %v4211_v55, 16  ;;  %v2097_v7 = vsel %vm4631_vm6, %v4140_v58, %v2096_v43  ;;  %v4259_v55 = vld [vmem:[%s4476_s17 + $0xa8] sm:$0xe]  ;;  %v1758_v30 = vshll.u32 %v4076_v17, 16 }
 0x1b5   : > { %2226 = vst.msk [vmem:[#allocation2 + $0x38] sm:$0xf] %vm2211_vm12, %v2144_v8  ;;  %3253 = vrot.lane.b32.xlu1 %v3178_v59, %s4441_s4  ;;  %v2093_v59 = vsel %vm4631_vm6, %v2091_v46, %v2092_v47  ;;  %v2816_v46 = vrot.slane %v2815_v37, 4  ;;  %v3190_v5 = vrot.slane %v3188_v56, 4  ;;  %v1757_v41 = vrot.slane %v1755_v29, 4 }
 0x1b6   : > { %3251 = vrot.lane.b32.xlu0 %v3175_v60, %s4441_s4  ;;  %v2784_v60 = vshll.u32 %v4212_v53, 16  ;;  %v4261_v53 = vld [vmem:[%s4476_s17 + $0xb0] sm:$0x1] }
 0x1b7   : > { %v2336_v14 = vpop.permute.xlu1 %2335 }
 0x1b8   : > { %2419 = vst.msk [vmem:[#allocation2 + $0x34] sm:$0xf] %vm2405_vm13, %v2336_v14  ;;  %v2334_v20 = vpop.permute.xlu0 %2333  ;;  %v5668_v8 = vrot.slane %v2784_v60, 5  ;;  %v2777_v14 = vrot.slane %v2775_v1, 4  ;;  %v4264_v60 = vld [vmem:[%s4476_s17 + $0xbc] sm:$0x1] }
 0x1b9   : > { %2418 = vst.msk [vmem:[#allocation2 + $0x30] sm:$0xf] %vm2405_vm13, %v2334_v20  ;;  %1267 = vrot.lane.b32.xlu1 %v4024_v9, %s4436_s20  ;;  %v2790_v9 = vrot.slane %v2788_v61, 4  ;;  %v4167_v20 = vld [vmem:[%s4476_s17 + $0xa8] sm:$0xf]  ;;  %v4283_v1 = vrot.slane %v4259_v55, 9 }
 0x1ba   : > { %1265 = vrot.lane.b32.xlu0 %v4023_v15, %s4436_s20  ;;  %v2780_v15 = vrot.slane %v2778_v2, 5  ;;  %v4262_v61 = vld [vmem:[%s4476_s17 + $0xb4] sm:$0xe]  ;;  %v4074_v2 = vld [vmem:[%s4476_s17 + $0xb8] sm:$0xf] }
 0x1bb   : > { %v2340_v26 = vpop.permute.xlu1 %2339  ;;  %v1744_v10 = vshrl.u32 %v4074_v2, 16 }
 0x1bc   : > { %2421 = vst.msk [vmem:[#allocation2 + $0x3c] sm:$0xf] %vm2405_vm13, %v2340_v26  ;;  %v2338_v32 = vpop.permute.xlu0 %2337  ;;  %v2781_v26 = vor.u32 %v2780_v15, %v2777_v14  ;;  %v4077_v15 = vld [vmem:[%s4476_s17 + $0xc4] sm:$0xf] }
 0x1bd   : > { %2420 = vst.msk [vmem:[#allocation2 + $0x38] sm:$0xf] %vm2405_vm13, %v2338_v32  ;;  %1271 = vrot.lane.b32.xlu1 %v4026_v21, %s4436_s20  ;;  %v2791_v21 = vor.u32 %v2790_v9, %v5668_v8  ;;  %v1740_v9 = vshll.u32 %v4074_v2, 16  ;;  %v1764_v22 = vshll.u32 %v4077_v15, 16  ;;  %v4121_v2 = vld [vmem:[%s4476_s17 + $0xb4] sm:$0xe] }
 0x1be   : > { %1269 = vrot.lane.b32.xlu0 %v4025_v28, %s4436_s20  ;;  %v4216_v28 = vld [vmem:[%s4476_s17 + $0xbc] sm:$0x1]  ;;  %v2782_v40 = vrot.slane %v2781_v26, 4 }
 0x1bf   : > { %v2897_v38 = vpop.permute.xlu1 %2896  ;;  %v2792_v35 = vrot.slane %v2791_v21, 4  ;;  %v1746_v21 = vrot.slane %v1744_v10, 4 }
 0x1c0   : > { %2980 = vst.msk [vmem:[#allocation2 + $0x34] sm:$0xf] %vm2966_vm14, %v2897_v38  ;;  %v2895_v42 = vpop.permute.xlu0 %2894  ;;  %v2818_v38 = vshll.u32 %v4216_v28, 16 }
 0x1c1   : > { %2979 = vst.msk [vmem:[#allocation2 + $0x30] sm:$0xf] %vm2966_vm14, %v2895_v42  ;;  %1828 = vrot.lane.b32.xlu1 %v1705_v33, %s4437_s21  ;;  %v4170_v33 = vld [vmem:[%s4476_s17 + $0xb8] sm:$0xf]  ;;  %v4260_v42 = vld [vmem:[%s4476_s17 + $0xac] sm:$0xf] }
 0x1c2   : > { %1826 = vrot.lane.b32.xlu0 %v1695_v39, %s4437_s21  ;;  %v2820_v47 = vrot.slane %v2818_v38, 5  ;;  %v3181_v48 = vrot.slane %v4260_v42, 5  ;;  %v4027_v38 = vld [vmem:[%s4476_s17 + $0xb4] sm:$0xf]  ;;  %v1760_v42 = vrot.slane %v1758_v30, 5 }
 0x1c3   : > { %v2901_v50 = vpop.permute.xlu1 %2900 }
 0x1c4   : > { %2982 = vst.msk [vmem:[#allocation2 + $0x3c] sm:$0xf] %vm2966_vm14, %v2901_v50  ;;  %v2899_v54 = vpop.permute.xlu0 %2898  ;;  %v2821_v57 = vsel %vm4487_vm2, %v2816_v46, %v2820_v47  ;;  %v3183_v58 = vrot.slane %v3181_v48, 4 }
 0x1c5   : > { %2981 = vst.msk [vmem:[#allocation2 + $0x38] sm:$0xf] %vm2966_vm14, %v2899_v54  ;;  %1832 = vrot.lane.b32.xlu1 %v1729_v45, %s4437_s21  ;;  %v2797_v45 = vsel %vm4487_vm2, %v2792_v35, %v2796_v36  ;;  %v1766_v35 = vrot.slane %v1764_v22, 5 }
 0x1c6   : > { %1830 = vrot.lane.b32.xlu0 %v1719_v51, %s4437_s21  ;;  %v2787_v51 = vsel %vm4487_vm2, %v2782_v40, %v5668_v8  ;;  %v4078_v40 = vld [vmem:[%s4476_s17 + $0xc8] sm:$0x1] }
 0x1c7   : > { %v3234_v63 = vpop.permute.xlu1 %3233 }
 0x1c8   : > { %3317 = vst.msk [vmem:[#allocation2 + $0x34] sm:$0xf] %vm3303_vm15, %v3234_v63  ;;  %v3232_v4 = vpop.permute.xlu0 %3231 }
 0x1c9   : > { %3316 = vst.msk [vmem:[#allocation2 + $0x30] sm:$0xf] %vm3303_vm15, %v3232_v4  ;;  %2165 = vrot.lane.b32.xlu1 %v2093_v59, %s4438_s22  ;;  %v3184_v59 = vrot.slane %v4261_v53, 5  ;;  %v4073_v4 = vld [vmem:[%s4476_s17 + $0xb4] sm:$0xf] }
 0x1ca   : > { %2163 = vrot.lane.b32.xlu0 %v2090_v0, %s4438_s22  ;;  %v2811_v0 = vsel %vm4487_vm2, %v2806_v52, %v5678_v23  ;;  %v1731_v13 = vshrl.u32 %v4073_v4, 16  ;;  %v1734_v14 = vshll.u32 %v4073_v4, 16  ;;  %v1768_v23 = vshrl.u32 %v4077_v15, 16  ;;  %v4122_v53 = vld [vmem:[%s4476_s17 + $0xb8] sm:$0xf] }
 0x1cb   : > { %v3238_v12 = vpop.permute.xlu1 %3237  ;;  %v3185_v8 = vsel %vm4631_vm6, %v3183_v58, %v3184_v59  ;;  %v1761_v52 = vor.u32 %v1760_v42, %v1757_v41  ;;  %v2103_v58 = vrot.slane %v4122_v53, 5  ;;  %v4125_v59 = vld [vmem:[%s4476_s17 + $0xc4] sm:$0xf] }
 0x1cc   : > { %3319 = vst.msk [vmem:[#allocation2 + $0x3c] sm:$0xf] %vm3303_vm15, %v3238_v12  ;;  %v3236_v18 = vpop.permute.xlu0 %3235  ;;  %v3182_v12 = vsel %vm4631_vm6, %v4283_v1, %v3181_v48  ;;  %v1733_v26 = vrot.slane %v1731_v13, 4  ;;  %v1736_v28 = vrot.slane %v1734_v14, 5  ;;  %v1770_v36 = vrot.slane %v1768_v23, 4 }
 0x1cd   : > { %3318 = vst.msk [vmem:[#allocation2 + $0x38] sm:$0xf] %vm3303_vm15, %v3236_v18  ;;  %2169 = vrot.lane.b32.xlu1 %v2100_v6, %s4438_s22  ;;  %v3191_v6 = vrot.slane %v4264_v60, 5  ;;  %v1774_v48 = vshll.u32 %v4078_v40, 16  ;;  %v4217_v14 = vld [vmem:[%s4476_s17 + $0xc0] sm:$0xf] }
 0x1ce   : > { %2167 = vrot.lane.b32.xlu0 %v2097_v7, %s4438_s22  ;;  %v4284_v7 = vrot.slane %v4262_v61, 9  ;;  %v1771_v47 = vor.u32 %v1770_v36, %v1766_v35  ;;  %v2823_v23 = vshrl.u32 %v4217_v14, 16 }
 0x1cf   : > { %v1256_v25 = vpop.permute.xlu1 %1255  ;;  %v3192_v18 = vsel %vm4631_vm6, %v3190_v5, %v3191_v6  ;;  %v2105_v5 = vrot.slane %v2103_v58, 4 }
 0x1d0   : > { %1333 = vst.msk [vmem:[#allocation2 + $0x4c] sm:$0xf] %vm1313_vm10, %v1256_v25  ;;  %v1254_v31 = vpop.permute.xlu0 %1253  ;;  %v4416_v32 = vld [vmem:[#allocation2 + $0x30] sm:$0xff]   ;;  %v4075_v25 = vld [vmem:[%s4476_s17 + $0xbc] sm:$0x1] }
 0x1d1   : > { %1332 = vst.msk [vmem:[#allocation2 + $0x48] sm:$0xf] %vm1313_vm10, %v1254_v31  ;;  %2359 = vrot.lane.b32.xlu1 %v4168_v19, %s4439_s23  ;;  %4362 = vmatprep.mubr.msk.bf16.mxu0 %vm3468_vm0, %v4416_v32  ;;  %v3189_v19 = vsel %vm4631_vm6, %v4284_v7, %v3188_v56  ;;  %v4028_v32 = vld [vmem:[%s4476_s17 + $0xb8] sm:$0xf]  ;;  %v1772_v56 = vrot.slane %v1771_v47, 4 }
 0x1d2   : > { %2357 = vrot.lane.b32.xlu0 %v4167_v20, %s4439_s23  ;;  %v1742_v20 = vrot.slane %v1740_v9, 5  ;;  %v4126_v7 = vld [vmem:[%s4476_s17 + $0xc8] sm:$0x1] }
 0x1d3   : > { %v1813_v39 = vpop.permute.xlu1 %1812 }
 0x1d4   : > { %1892 = vst.msk [vmem:[#allocation2 + $0x44] sm:$0xf] %vm1874_vm11, %v1813_v39  ;;  %v1811_v44 = vpop.permute.xlu0 %1810  ;;  %v4417_v43 = vld [vmem:[#allocation2 + $0x38] sm:$0xff]   ;;  %v1737_v39 = vor.u32 %v1736_v28, %v1733_v26  ;;  %v4220_v28 = vld [vmem:[%s4476_s17 + $0xcc] sm:$0xf] }
 0x1d5   : > { %1891 = vst.msk [vmem:[#allocation2 + $0x40] sm:$0xf] %vm1874_vm11, %v1811_v44  ;;  %2363 = vrot.lane.b32.xlu1 %v4170_v33, %s4439_s23  ;;  %4363 = vmatmul.mubr.msk.bf16.gmra.mxu0 %vm3468_vm0, %v4417_v43  ;;  %v1747_v33 = vor.u32 %v1746_v21, %v1742_v20  ;;  %v4030_v43 = vld [vmem:[%s4476_s17 + $0xc4] sm:$0xf]  ;;  %v2850_v40 = vshll.u32 %v4220_v28, 16 }
 0x1d6   : > { %2361 = vrot.lane.b32.xlu0 %v4169_v34, %s4439_s23  ;;  %v1750_v34 = vshll.u32 %v4075_v25, 16  ;;  %v4221_v25 = vld [vmem:[%s4476_s17 + $0xd0] sm:$0xf] }
 0x1d7   : > { %v1817_v50 = vpop.permute.xlu1 %1816  ;;  %v2852_v53 = vrot.slane %v2850_v40, 5 }
 0x1d8   : > { %1894 = vst.msk [vmem:[#allocation2 + $0x4c] sm:$0xf] %vm1874_vm11, %v1817_v50  ;;  %v1815_v54 = vpop.permute.xlu0 %1814  ;;  %v1752_v46 = vrot.slane %v1750_v34, 5  ;;  %v4029_v50 = vld [vmem:[%s4476_s17 + $0xc0] sm:$0xf]  ;;  %v2856_v34 = vshll.u32 %v4221_v25, 16 }
 0x1d9   : > { %1893 = vst.msk [vmem:[#allocation2 + $0x48] sm:$0xf] %vm1874_vm11, %v1815_v54  ;;  %2920 = vrot.lane.b32.xlu1 %v2797_v45, %s4440_s28  ;;  %v1748_v45 = vrot.slane %v1747_v33, 4 }
 0x1da   : > { %2918 = vrot.lane.b32.xlu0 %v2787_v51, %s4440_s28  ;;  %v1738_v51 = vrot.slane %v1737_v39, 4  ;;  %v2847_v39 = vshrl.u32 %v4220_v28, 16  ;;  %v2858_v47 = vrot.slane %v2856_v34, 5 }
 0x1db   : > { %v2150_v63 = vpop.permute.xlu1 %2149  ;;  %v1753_v55 = vsel %vm4487_vm2, %v1748_v45, %v1752_v46 }
 0x1dc   : > { %2229 = vst.msk [vmem:[#allocation2 + $0x44] sm:$0xf] %vm2211_vm12, %v2150_v63  ;;  %v2148_v3 = vpop.permute.xlu0 %2147  ;;  %v1743_v61 = vsel %vm4487_vm2, %v1738_v51, %v1742_v20  ;;  %v1762_v63 = vrot.slane %v1761_v52, 4  ;;  %v4222_v51 = vld [vmem:[%s4476_s17 + $0xd4] sm:$0x1]  ;;  %v2849_v52 = vrot.slane %v2847_v39, 4 }
 0x1dd   : > { %2228 = vst.msk [vmem:[#allocation2 + $0x40] sm:$0xf] %vm2211_vm12, %v2148_v3  ;;  %2924 = vrot.lane.b32.xlu1 %v2821_v57, %s4440_s28  ;;  %v1776_v57 = vrot.slane %v1774_v48, 5  ;;  %v2110_v3 = vrot.slane %v4125_v59, 5 }
 0x1de   : > { %2922 = vrot.lane.b32.xlu0 %v2811_v0, %s4440_s28  ;;  %v4123_v0 = vld [vmem:[%s4476_s17 + $0xbc] sm:$0x1]  ;;  %v1767_v10 = vsel %vm4487_vm2, %v1762_v63, %v1766_v35  ;;  %v2860_v35 = vshrl.u32 %v4221_v25, 16  ;;  %v4173_v63 = vld [vmem:[%s4476_s17 + $0xcc] sm:$0xf] }
 0x1df   : > { %v2154_v11 = vpop.permute.xlu1 %2153  ;;  %v1777_v4 = vsel %vm4487_vm2, %v1772_v56, %v1776_v57  ;;  %v2106_v6 = vrot.slane %v4123_v0, 5  ;;  %v2112_v15 = vrot.slane %v2110_v3, 4  ;;  %v4174_v56 = vld [vmem:[%s4476_s17 + $0xd0] sm:$0xf] }
 0x1e0   : > { %2231 = vst.msk [vmem:[#allocation2 + $0x4c] sm:$0xf] %vm2211_vm12, %v2154_v11  ;;  %v2152_v16 = vpop.permute.xlu0 %2151  ;;  %v4141_v11 = vrot.slane %v4121_v2, 9  ;;  %v2862_v48 = vrot.slane %v2860_v35, 4  ;;  %v4266_v2 = vld [vmem:[%s4476_s17 + $0xc4] sm:$0xf] }
 0x1e1   : > { %2230 = vst.msk [vmem:[#allocation2 + $0x48] sm:$0xf] %vm2211_vm12, %v2152_v16  ;;  %3257 = vrot.lane.b32.xlu1 %v3185_v8, %s4441_s4  ;;  %v4124_v8 = vld [vmem:[%s4476_s17 + $0xc0] sm:$0xe]  ;;  %v2113_v16 = vrot.slane %v4126_v7, 5  ;;  %v3195_v7 = vrot.slane %v4266_v2, 5 }
 0x1e2   : > { %3255 = vrot.lane.b32.xlu0 %v3182_v12, %s4441_s4  ;;  %v4218_v12 = vld [vmem:[%s4476_s17 + $0xc4] sm:$0xf]  ;;  %v4142_v17 = vrot.slane %v4124_v8, 9  ;;  %v2104_v22 = vsel %vm4631_vm6, %v4141_v11, %v2103_v58  ;;  %v2863_v59 = vor.u32 %v2862_v48, %v2858_v47  ;;  %v4267_v11 = vld [vmem:[%s4476_s17 + $0xc8] sm:$0x1] }
 0x1e3   : > { %v2344_v24 = vpop.permute.xlu1 %2343  ;;  %v2836_v20 = vshrl.u32 %v4218_v12, 16  ;;  %v2114_v29 = vsel %vm4631_vm6, %v2112_v15, %v2113_v16  ;;  %v3197_v16 = vrot.slane %v3195_v7, 4 }
 0x1e4   : > { %2423 = vst.msk [vmem:[#allocation2 + $0x44] sm:$0xf] %vm2405_vm13, %v2344_v24  ;;  %v2342_v31 = vpop.permute.xlu0 %2341  ;;  %v2826_v24 = vshll.u32 %v4217_v14, 16  ;;  %v2111_v30 = vsel %vm4631_vm6, %v4142_v17, %v2110_v3  ;;  %v4265_v14 = vld [vmem:[%s4476_s17 + $0xc0] sm:$0xe]  ;;  %v3198_v17 = vrot.slane %v4267_v11, 5 }
 0x1e5   : > { %2422 = vst.msk [vmem:[#allocation2 + $0x40] sm:$0xf] %vm2405_vm13, %v2342_v31  ;;  %3261 = vrot.lane.b32.xlu1 %v3192_v18, %s4441_s4  ;;  %v2107_v18 = vsel %vm4631_vm6, %v2105_v5, %v2106_v6  ;;  %v4219_v31 = vld [vmem:[%s4476_s17 + $0xc8] sm:$0x1]  ;;  %v2838_v33 = vrot.slane %v2836_v20, 4  ;;  %v2864_v5 = vrot.slane %v2863_v59, 4 }
 0x1e6   : > { %3259 = vrot.lane.b32.xlu0 %v3189_v19, %s4441_s4  ;;  %v2832_v19 = vshll.u32 %v4218_v12, 16  ;;  %v2842_v46 = vshll.u32 %v4219_v31, 16  ;;  %v4269_v12 = vld [vmem:[%s4476_s17 + $0xd0] sm:$0xf]  ;;  %v3199_v25 = vsel %vm4631_vm6, %v3197_v16, %v3198_v17 }
 0x1e7   : > { %v2348_v37 = vpop.permute.xlu1 %2347 }
 0x1e8   : > { %2425 = vst.msk [vmem:[#allocation2 + $0x4c] sm:$0xf] %vm2405_vm13, %v2348_v37  ;;  %v2346_v44 = vpop.permute.xlu0 %2345  ;;  %v2825_v37 = vrot.slane %v2823_v23, 4  ;;  %v2844_v58 = vrot.slane %v2842_v46, 5 }
 0x1e9   : > { %2424 = vst.msk [vmem:[#allocation2 + $0x48] sm:$0xf] %vm2405_vm13, %v2346_v44  ;;  %1275 = vrot.lane.b32.xlu1 %v4028_v32, %s4436_s20  ;;  %v5791_v32 = vrot.slane %v2832_v19, 5  ;;  %v4172_v44 = vld [vmem:[%s4476_s17 + $0xc4] sm:$0xf] }
 0x1ea   : > { %1273 = vrot.lane.b32.xlu0 %v4027_v38, %s4436_s20  ;;  %v2828_v38 = vrot.slane %v2826_v24, 5  ;;  %v4268_v24 = vld [vmem:[%s4476_s17 + $0xcc] sm:$0xe] }
 0x1eb   : > { %v2905_v49 = vpop.permute.xlu1 %2904  ;;  %v2839_v45 = vor.u32 %v2838_v33, %v5791_v32 }
 0x1ec   : > { %2984 = vst.msk [vmem:[#allocation2 + $0x44] sm:$0xf] %vm2966_vm14, %v2905_v49  ;;  %v2903_v54 = vpop.permute.xlu0 %2902 }
 0x1ed   : > { %2983 = vst.msk [vmem:[#allocation2 + $0x40] sm:$0xf] %vm2966_vm14, %v2903_v54  ;;  %1279 = vrot.lane.b32.xlu1 %v4030_v43, %s4436_s20  ;;  %v4171_v43 = vld [vmem:[%s4476_s17 + $0xc0] sm:$0xf]  ;;  %v2840_v57 = vrot.slane %v2839_v45, 4 }
 0x1ee   : > { %1277 = vrot.lane.b32.xlu0 %v4029_v50, %s4436_s20  ;;  %v2829_v50 = vor.u32 %v2828_v38, %v2825_v37 }
 0x1ef   : > { %v2909_v60 = vpop.permute.xlu1 %2908 }
 0x1f0   : > { %2986 = vst.msk [vmem:[#allocation2 + $0x4c] sm:$0xf] %vm2966_vm14, %v2909_v60  ;;  %v2907_v1 = vpop.permute.xlu0 %2906  ;;  %v2866_v60 = vshll.u32 %v4222_v51, 16  ;;  %v2830_v0 = vrot.slane %v2829_v50, 4 }
 0x1f1   : > { %2985 = vst.msk [vmem:[#allocation2 + $0x48] sm:$0xf] %vm2966_vm14, %v2907_v1  ;;  %1836 = vrot.lane.b32.xlu1 %v1753_v55, %s4437_s21  ;;  %v2853_v1 = vor.u32 %v2852_v53, %v2849_v52 }
 0x1f2   : > { %1834 = vrot.lane.b32.xlu0 %v1743_v61, %s4437_s21  ;;  %v2868_v6 = vrot.slane %v2866_v60, 5 }
 0x1f3   : > { %v3242_v9 = vpop.permute.xlu1 %3241 }
 0x1f4   : > { %3321 = vst.msk [vmem:[#allocation2 + $0x44] sm:$0xf] %vm3303_vm15, %v3242_v9  ;;  %v3240_v13 = vpop.permute.xlu0 %3239  ;;  %v2835_v9 = vsel %vm4487_vm2, %v2830_v0, %v5791_v32  ;;  %v2869_v15 = vsel %vm4487_vm2, %v2864_v5, %v2868_v6 }
 0x1f5   : > { %3320 = vst.msk [vmem:[#allocation2 + $0x40] sm:$0xf] %vm3303_vm15, %v3240_v13  ;;  %1840 = vrot.lane.b32.xlu1 %v1777_v4, %s4437_s21  ;;  %v2845_v4 = vsel %vm4487_vm2, %v2840_v57, %v2844_v58 }
 0x1f6   : > { %1838 = vrot.lane.b32.xlu0 %v1767_v10, %s4437_s21  ;;  %v2854_v10 = vrot.slane %v2853_v1, 4 }
 0x1f7   : > { %v3246_v21 = vpop.permute.xlu1 %3245 }
 0x1f8   : > { %3323 = vst.msk [vmem:[#allocation2 + $0x4c] sm:$0xf] %vm3303_vm15, %v3246_v21  ;;  %v3244_v26 = vpop.permute.xlu0 %3243  ;;  %v2859_v20 = vsel %vm4487_vm2, %v2854_v10, %v2858_v47  ;;  %v4285_v21 = vrot.slane %v4265_v14, 9  ;;  %vm3752_vm2 = vcmask 253952  }
 0x1f9   : > { %3322 = vst.msk [vmem:[#allocation2 + $0x48] sm:$0xf] %vm3303_vm15, %v3244_v26  ;;  %2173 = vrot.lane.b32.xlu1 %v2107_v18, %s4438_s22  ;;  %v3202_v18 = vrot.slane %v4269_v12, 5 }
 0x1fa   : > { %2171 = vrot.lane.b32.xlu0 %v2104_v22, %s4438_s22  ;;  %v4270_v22 = vld [vmem:[%s4476_s17 + $0xd4] sm:$0x1]  ;;  %v3196_v27 = vsel %vm4631_vm6, %v4285_v21, %v3195_v7 }
 0x1fb   : > { %v1260_v36 = vpop.permute.xlu1 %1259  ;;  %v3204_v26 = vrot.slane %v3202_v18, 4  ;;  %v3205_v28 = vrot.slane %v4270_v22, 5 }
 0x1fc   : > { %1335 = vst.msk [vmem:[#allocation2 + $0x54] sm:$0xf] %vm1313_vm10, %v1260_v36  ;;  %v1258_v41 = vpop.permute.xlu0 %1257  ;;  %v4418_v42 = vld [vmem:[#allocation2 + $0x40] sm:$0xff]  }
 0x1fd   : > { %1334 = vst.msk [vmem:[#allocation2 + $0x50] sm:$0xf] %vm1313_vm10, %v1258_v41  ;;  %2177 = vrot.lane.b32.xlu1 %v2114_v29, %s4438_s22  ;;  %4366 = vmatprep.mubr.msk.bf16.mxu1 %vm3468_vm0, %v4418_v42  ;;  %v3206_v32 = vsel %vm4631_vm6, %v3204_v26, %v3205_v28 }
 0x1fe   : > { %2175 = vrot.lane.b32.xlu0 %v2111_v30, %s4438_s22  ;;  %v4286_v30 = vrot.slane %v4268_v24, 9 }
 0x1ff   : > { %v1264_v49 = vpop.permute.xlu1 %1263 }
 0x200   : > { %1337 = vst.msk [vmem:[#allocation2 + $0x5c] sm:$0xf] %vm1313_vm10, %v1264_v49  ;;  %v1262_v54 = vpop.permute.xlu0 %1261  ;;  %v4419_v55 = vld [vmem:[#allocation2 + $0x48] sm:$0xff]   ;;  %v3203_v34 = vsel %vm4631_vm6, %v4286_v30, %v3202_v18 }
 0x201   : > { %1336 = vst.msk [vmem:[#allocation2 + $0x58] sm:$0xf] %vm1313_vm10, %v1262_v54  ;;  %2367 = vrot.lane.b32.xlu1 %v4172_v44, %s4439_s23  ;;  %4367 = vmatmul.mubr.msk.bf16.vlgmr.msra.gmra.mxu1 %vm3468_vm0, %v4419_v55 }
 0x202   : > { %2365 = vrot.lane.b32.xlu0 %v4171_v43, %s4439_s23 }
 0x203   : > { %v1821_v61 = vpop.permute.xlu1 %1820 }
 0x204   : > { %1896 = vst.msk [vmem:[#allocation2 + $0x54] sm:$0xf] %vm1874_vm11, %v1821_v61  ;;  %v1819_v3 = vpop.permute.xlu0 %1818 }
 0x205   : > { %1895 = vst.msk [vmem:[#allocation2 + $0x50] sm:$0xf] %vm1874_vm11, %v1819_v3  ;;  %2371 = vrot.lane.b32.xlu1 %v4174_v56, %s4439_s23 }
 0x206   : > { %2369 = vrot.lane.b32.xlu0 %v4173_v63, %s4439_s23 }
 0x207   : > { %v1825_v8 = vpop.permute.xlu1 %1824 }
 0x208   : > { %1898 = vst.msk [vmem:[#allocation2 + $0x5c] sm:$0xf] %vm1874_vm11, %v1825_v8  ;;  %v1823_v13 = vpop.permute.xlu0 %1822 }
 0x209   : > { %1897 = vst.msk [vmem:[#allocation2 + $0x58] sm:$0xf] %vm1874_vm11, %v1823_v13  ;;  %2928 = vrot.lane.b32.xlu1 %v2845_v4, %s4440_s28 }
 0x20a   : > { %2926 = vrot.lane.b32.xlu0 %v2835_v9, %s4440_s28 }
 0x20b   : > { %v2158_v19 = vpop.permute.xlu1 %2157 }
 0x20c   : > { %2233 = vst.msk [vmem:[#allocation2 + $0x54] sm:$0xf] %vm2211_vm12, %v2158_v19  ;;  %v2156_v23 = vpop.permute.xlu0 %2155 }
 0x20d   : > { %2232 = vst.msk [vmem:[#allocation2 + $0x50] sm:$0xf] %vm2211_vm12, %v2156_v23  ;;  %2932 = vrot.lane.b32.xlu1 %v2869_v15, %s4440_s28 }
 0x20e   : > { %2930 = vrot.lane.b32.xlu0 %v2859_v20, %s4440_s28 }
 0x20f   : > { %v2162_v29 = vpop.permute.xlu1 %2161 }
 0x210   : > { %2235 = vst.msk [vmem:[#allocation2 + $0x5c] sm:$0xf] %vm2211_vm12, %v2162_v29  ;;  %v2160_v31 = vpop.permute.xlu0 %2159 }
 0x211   : > { %2234 = vst.msk [vmem:[#allocation2 + $0x58] sm:$0xf] %vm2211_vm12, %v2160_v31  ;;  %3265 = vrot.lane.b32.xlu1 %v3199_v25, %s4441_s4 }
 0x212   : > { %3263 = vrot.lane.b32.xlu0 %v3196_v27, %s4441_s4 }
 0x213   : > { %v2352_v33 = vpop.permute.xlu1 %2351 }
 0x214   : > { %2427 = vst.msk [vmem:[#allocation2 + $0x54] sm:$0xf] %vm2405_vm13, %v2352_v33  ;;  %v2350_v35 = vpop.permute.xlu0 %2349 }
 0x215   : > { %2426 = vst.msk [vmem:[#allocation2 + $0x50] sm:$0xf] %vm2405_vm13, %v2350_v35  ;;  %3269 = vrot.lane.b32.xlu1 %v3206_v32, %s4441_s4 }
 0x216   : > { %3267 = vrot.lane.b32.xlu0 %v3203_v34, %s4441_s4 }
 0x217   : > { %v2356_v36 = vpop.permute.xlu1 %2355 }
 0x218   : > { %2429 = vst.msk [vmem:[#allocation2 + $0x5c] sm:$0xf] %vm2405_vm13, %v2356_v36  ;;  %v2354_v37 = vpop.permute.xlu0 %2353 }
 0x219   : > { %2428 = vst.msk [vmem:[#allocation2 + $0x58] sm:$0xf] %vm2405_vm13, %v2354_v37 }
 0x21b   : > { %v2913_v38 = vpop.permute.xlu1 %2912 }
 0x21c   : > { %2988 = vst.msk [vmem:[#allocation2 + $0x54] sm:$0xf] %vm2966_vm14, %v2913_v38  ;;  %v2911_v62 = vpop.permute.xlu0 %2910 }
 0x21d   : > { %2987 = vst.msk [vmem:[#allocation2 + $0x50] sm:$0xf] %vm2966_vm14, %v2911_v62  ;;  %v4352_v39 = vpop.f32.mrf.mxu0 }
 0x21e   : > { %3858 = vst.msk [vmem:[%s5859_s8 + $0x10] sm:$0xff] %vm3682_vm1, %v4352_v39  ;;  %v3756_v48 = vmul.f32 %v4352_v39, %v4352_v39  ;;  %v3686_v53 = vsel %vm3682_vm1, %v4352_v39, 0.0 }
 0x21f   : > { %v2917_v40 = vpop.permute.xlu1 %2916  ;;  %v3555_v42 = vpop.f32.mrf.mxu0 }
 0x220   : > { %2990 = vst.msk [vmem:[#allocation2 + $0x5c] sm:$0xf] %vm2966_vm14, %v2917_v40  ;;  %v2915_v41 = vpop.permute.xlu0 %2914  ;;  %v3754_v43 = vmul.f32 %v3555_v42, %v3555_v42  ;;  %v3683_v49 = vsel %vm3682_vm1, %v3555_v42, 0.0  ;;  %v3789_v61 = vsel %vm3682_vm1, %v3756_v48, 0.0 }
 0x221   : > { %2989 = vst.msk [vmem:[#allocation2 + $0x58] sm:$0xf] %vm2966_vm14, %v2915_v41  ;;  %v4353_v44 = vpop.f32.mrf.mxu0 }
 0x222   : > { %3856 = vst.msk [vmem:[%s5859_s8] sm:$0xff] %vm3682_vm1, %v3555_v42  ;;  %3859 = vst.msk [vmem:[%s5859_s8 + $0x18] sm:$0xff] %vm3682_vm1, %v4353_v44  ;;  %v3786_v54 = vsel %vm3682_vm1, %v3754_v43, 0.0  ;;  %v3757_v55 = vmul.f32 %v4353_v44, %v4353_v44  ;;  %v3688_v63 = vsel %vm3682_vm1, %v4353_v44, 0.0 }
 0x223   : > { %v3250_v45 = vpop.permute.xlu1 %3249  ;;  %v3558_v47 = vpop.f32.mrf.mxu0 }
 0x224   : > { %3325 = vst.msk [vmem:[#allocation2 + $0x54] sm:$0xf] %vm3303_vm15, %v3250_v45  ;;  %v3248_v46 = vpop.permute.xlu0 %3247  ;;  %v3684_v50 = vsel %vm3682_vm1, %v3558_v47, 0.0  ;;  %v3755_v51 = vmul.f32 %v3558_v47, %v3558_v47  ;;  %v3791_v2 = vsel %vm3682_vm1, %v3757_v55, 0.0 }
 0x225   : > { %3324 = vst.msk [vmem:[#allocation2 + $0x50] sm:$0xf] %vm3303_vm15, %v3248_v46  ;;  %v3685_v52 = vadd.f32 %v3684_v50, %v3683_v49 }
 0x226   : > { %3857 = vst.msk [vmem:[%s5859_s8 + $0x8] sm:$0xff] %vm3682_vm1, %v3558_v47  ;;  %v3787_v56 = vsel %vm3682_vm1, %v3755_v51, 0.0 }
 0x227   : > { %v3254_v57 = vpop.permute.xlu1 %3253  ;;  %v3687_v58 = vadd.f32 %v3686_v53, %v3685_v52  ;;  %v3788_v59 = vadd.f32 %v3787_v56, %v3786_v54 }
 0x228   : > { %3327 = vst.msk [vmem:[#allocation2 + $0x5c] sm:$0xf] %vm3303_vm15, %v3254_v57  ;;  %v3252_v60 = vpop.permute.xlu0 %3251 }
 0x229   : > { %3326 = vst.msk [vmem:[#allocation2 + $0x58] sm:$0xf] %vm3303_vm15, %v3252_v60  ;;  %v3790_v0 = vadd.f32 %v3789_v61, %v3788_v59  ;;  %v3689_v1 = vadd.f32 %v3688_v63, %v3687_v58 }
 0x22b   : > { %v1268_v3 = vpop.permute.xlu1 %1267  ;;  %v3792_v6 = vadd.f32 %v3791_v2, %v3790_v0 }
 0x22c   : > { %1339 = vst.msk [vmem:[#allocation2 + $0x64] sm:$0xf] %vm1313_vm10, %v1268_v3  ;;  %v1266_v4 = vpop.permute.xlu0 %1265  ;;  %v4420_v5 = vld [vmem:[#allocation2 + $0x50] sm:$0xff]  }
 0x22d   : > { %1338 = vst.msk [vmem:[#allocation2 + $0x60] sm:$0xf] %vm1313_vm10, %v1266_v4  ;;  %4370 = vmatprep.mubr.msk.bf16.mxu1 %vm3468_vm0, %v4420_v5 }
 0x22f   : > { %v1272_v7 = vpop.permute.xlu1 %1271 }
 0x230   : > { %1341 = vst.msk [vmem:[#allocation2 + $0x6c] sm:$0xf] %vm1313_vm10, %v1272_v7  ;;  %v1270_v8 = vpop.permute.xlu0 %1269  ;;  %v4421_v9 = vld [vmem:[#allocation2 + $0x58] sm:$0xff]  }
 0x231   : > { %1340 = vst.msk [vmem:[#allocation2 + $0x68] sm:$0xf] %vm1313_vm10, %v1270_v8  ;;  %4371 = vmatmul.mubr.msk.bf16.gmra.mxu1 %vm3468_vm0, %v4421_v9 }
 0x233   : > { %v1829_v10 = vpop.permute.xlu1 %1828 }
 0x234   : > { %1900 = vst.msk [vmem:[#allocation2 + $0x64] sm:$0xf] %vm1874_vm11, %v1829_v10  ;;  %v1827_v11 = vpop.permute.xlu0 %1826 }
 0x235   : > { %1899 = vst.msk [vmem:[#allocation2 + $0x60] sm:$0xf] %vm1874_vm11, %v1827_v11 }
 0x237   : > { %v1833_v12 = vpop.permute.xlu1 %1832 }
 0x238   : > { %1902 = vst.msk [vmem:[#allocation2 + $0x6c] sm:$0xf] %vm1874_vm11, %v1833_v12  ;;  %v1831_v13 = vpop.permute.xlu0 %1830 }
 0x239   : > { %1901 = vst.msk [vmem:[#allocation2 + $0x68] sm:$0xf] %vm1874_vm11, %v1831_v13 }
 0x23b   : > { %v2166_v14 = vpop.permute.xlu1 %2165 }
 0x23c   : > { %2237 = vst.msk [vmem:[#allocation2 + $0x64] sm:$0xf] %vm2211_vm12, %v2166_v14  ;;  %v2164_v15 = vpop.permute.xlu0 %2163 }
 0x23d   : > { %2236 = vst.msk [vmem:[#allocation2 + $0x60] sm:$0xf] %vm2211_vm12, %v2164_v15 }
 0x23f   : > { %v2170_v16 = vpop.permute.xlu1 %2169 }
 0x240   : > { %2239 = vst.msk [vmem:[#allocation2 + $0x6c] sm:$0xf] %vm2211_vm12, %v2170_v16  ;;  %v2168_v17 = vpop.permute.xlu0 %2167 }
 0x241   : > { %2238 = vst.msk [vmem:[#allocation2 + $0x68] sm:$0xf] %vm2211_vm12, %v2168_v17 }
 0x243   : > { %v2360_v18 = vpop.permute.xlu1 %2359 }
 0x244   : > { %2431 = vst.msk [vmem:[#allocation2 + $0x64] sm:$0xf] %vm2405_vm13, %v2360_v18  ;;  %v2358_v19 = vpop.permute.xlu0 %2357 }
 0x245   : > { %2430 = vst.msk [vmem:[#allocation2 + $0x60] sm:$0xf] %vm2405_vm13, %v2358_v19  ;;  %v4356_v20 = vpop.f32.mrf.mxu0 }
 0x246   : > { %3862 = vst.msk [vmem:[%s5859_s8 + $0x30] sm:$0xff] %vm3682_vm1, %v4356_v20  ;;  %v3760_v33 = vmul.f32 %v4356_v20, %v4356_v20  ;;  %v3694_v37 = vsel %vm3682_vm1, %v4356_v20, 0.0 }
 0x247   : > { %v2364_v21 = vpop.permute.xlu1 %2363  ;;  %v3571_v23 = vpop.f32.mrf.mxu0 }
 0x248   : > { %2433 = vst.msk [vmem:[#allocation2 + $0x6c] sm:$0xf] %vm2405_vm13, %v2364_v21  ;;  %v2362_v22 = vpop.permute.xlu0 %2361  ;;  %v3690_v24 = vsel %vm3682_vm1, %v3571_v23, 0.0  ;;  %v3758_v25 = vmul.f32 %v3571_v23, %v3571_v23  ;;  %v3797_v44 = vsel %vm3682_vm1, %v3760_v33, 0.0 }
 0x249   : > { %2432 = vst.msk [vmem:[#allocation2 + $0x68] sm:$0xf] %vm2405_vm13, %v2362_v22  ;;  %v3691_v26 = vadd.f32 %v3690_v24, %v3689_v1  ;;  %v4357_v28 = vpop.f32.mrf.mxu0 }
 0x24a   : > { %3860 = vst.msk [vmem:[%s5859_s8 + $0x20] sm:$0xff] %vm3682_vm1, %v3571_v23  ;;  %v3793_v29 = vsel %vm3682_vm1, %v3758_v25, 0.0  ;;  %3863 = vst.msk [vmem:[%s5859_s8 + $0x38] sm:$0xff] %vm3682_vm1, %v4357_v28  ;;  %v3761_v38 = vmul.f32 %v4357_v28, %v4357_v28  ;;  %v3696_v43 = vsel %vm3682_vm1, %v4357_v28, 0.0 }
 0x24b   : > { %v2921_v27 = vpop.permute.xlu1 %2920  ;;  %v3794_v30 = vadd.f32 %v3793_v29, %v3792_v6  ;;  %v3574_v32 = vpop.f32.mrf.mxu0 }
 0x24c   : > { %2992 = vst.msk [vmem:[#allocation2 + $0x64] sm:$0xf] %vm2966_vm14, %v2921_v27  ;;  %v2919_v31 = vpop.permute.xlu0 %2918  ;;  %v3692_v34 = vsel %vm3682_vm1, %v3574_v32, 0.0  ;;  %v3759_v35 = vmul.f32 %v3574_v32, %v3574_v32  ;;  %v3799_v47 = vsel %vm3682_vm1, %v3761_v38, 0.0 }
 0x24d   : > { %2991 = vst.msk [vmem:[#allocation2 + $0x60] sm:$0xf] %vm2966_vm14, %v2919_v31  ;;  %v3693_v36 = vadd.f32 %v3692_v34, %v3691_v26 }
 0x24e   : > { %3861 = vst.msk [vmem:[%s5859_s8 + $0x28] sm:$0xff] %vm3682_vm1, %v3574_v32  ;;  %v3795_v62 = vsel %vm3682_vm1, %v3759_v35, 0.0 }
 0x24f   : > { %v2925_v39 = vpop.permute.xlu1 %2924  ;;  %v3695_v40 = vadd.f32 %v3694_v37, %v3693_v36  ;;  %v3796_v41 = vadd.f32 %v3795_v62, %v3794_v30 }
 0x250   : > { %2994 = vst.msk [vmem:[#allocation2 + $0x6c] sm:$0xf] %vm2966_vm14, %v2925_v39  ;;  %v2923_v42 = vpop.permute.xlu0 %2922 }
 0x251   : > { %2993 = vst.msk [vmem:[#allocation2 + $0x68] sm:$0xf] %vm2966_vm14, %v2923_v42  ;;  %v3798_v45 = vadd.f32 %v3797_v44, %v3796_v41  ;;  %v3697_v46 = vadd.f32 %v3696_v43, %v3695_v40 }
 0x253   : > { %v3258_v48 = vpop.permute.xlu1 %3257  ;;  %v3800_v50 = vadd.f32 %v3799_v47, %v3798_v45 }
 0x254   : > { %3329 = vst.msk [vmem:[#allocation2 + $0x64] sm:$0xf] %vm3303_vm15, %v3258_v48  ;;  %v3256_v49 = vpop.permute.xlu0 %3255 }
 0x255   : > { %3328 = vst.msk [vmem:[#allocation2 + $0x60] sm:$0xf] %vm3303_vm15, %v3256_v49 }
 0x257   : > { %v3262_v51 = vpop.permute.xlu1 %3261 }
 0x258   : > { %3331 = vst.msk [vmem:[#allocation2 + $0x6c] sm:$0xf] %vm3303_vm15, %v3262_v51  ;;  %v3260_v52 = vpop.permute.xlu0 %3259 }
 0x259   : > { %3330 = vst.msk [vmem:[#allocation2 + $0x68] sm:$0xf] %vm3303_vm15, %v3260_v52 }
 0x25b   : > { %v1276_v53 = vpop.permute.xlu1 %1275 }
 0x25c   : > { %1343 = vst.msk [vmem:[#allocation2 + $0x74] sm:$0xf] %vm1313_vm10, %v1276_v53  ;;  %v1274_v54 = vpop.permute.xlu0 %1273  ;;  %v4422_v55 = vld [vmem:[#allocation2 + $0x60] sm:$0xff]  }
 0x25d   : > { %1342 = vst.msk [vmem:[#allocation2 + $0x70] sm:$0xf] %vm1313_vm10, %v1274_v54  ;;  %4374 = vmatprep.mubr.msk.bf16.mxu1 %vm3468_vm0, %v4422_v55 }
 0x25f   : > { %v1280_v56 = vpop.permute.xlu1 %1279 }
 0x260   : > { %1345 = vst.msk [vmem:[#allocation2 + $0x7c] sm:$0xf] %vm1313_vm10, %v1280_v56  ;;  %v1278_v57 = vpop.permute.xlu0 %1277  ;;  %v4423_v58 = vld [vmem:[#allocation2 + $0x68] sm:$0xff]  }
 0x261   : > { %1344 = vst.msk [vmem:[#allocation2 + $0x78] sm:$0xf] %vm1313_vm10, %v1278_v57  ;;  %4375 = vmatmul.mubr.msk.bf16.gmra.mxu1 %vm3468_vm0, %v4423_v58 }
 0x263   : > { %v1837_v59 = vpop.permute.xlu1 %1836 }
 0x264   : > { %1904 = vst.msk [vmem:[#allocation2 + $0x74] sm:$0xf] %vm1874_vm11, %v1837_v59  ;;  %v1835_v60 = vpop.permute.xlu0 %1834 }
 0x265   : > { %1903 = vst.msk [vmem:[#allocation2 + $0x70] sm:$0xf] %vm1874_vm11, %v1835_v60 }
 0x267   : > { %v1841_v61 = vpop.permute.xlu1 %1840 }
 0x268   : > { %1906 = vst.msk [vmem:[#allocation2 + $0x7c] sm:$0xf] %vm1874_vm11, %v1841_v61  ;;  %v1839_v63 = vpop.permute.xlu0 %1838 }
 0x269   : > { %1905 = vst.msk [vmem:[#allocation2 + $0x78] sm:$0xf] %vm1874_vm11, %v1839_v63 }
 0x26b   : > { %v2174_v0 = vpop.permute.xlu1 %2173 }
 0x26c   : > { %2241 = vst.msk [vmem:[#allocation2 + $0x74] sm:$0xf] %vm2211_vm12, %v2174_v0  ;;  %v2172_v1 = vpop.permute.xlu0 %2171 }
 0x26d   : > { %2240 = vst.msk [vmem:[#allocation2 + $0x70] sm:$0xf] %vm2211_vm12, %v2172_v1  ;;  %v4360_v2 = vpop.f32.mrf.mxu0 }
 0x26e   : > { %3866 = vst.msk [vmem:[%s5859_s8 + $0x50] sm:$0xff] %vm3682_vm1, %v4360_v2  ;;  %v3764_v15 = vmul.f32 %v4360_v2, %v4360_v2  ;;  %v3702_v19 = vsel %vm3682_vm1, %v4360_v2, 0.0 }
 0x26f   : > { %v2178_v3 = vpop.permute.xlu1 %2177  ;;  %v3587_v5 = vpop.f32.mrf.mxu0 }
 0x270   : > { %2243 = vst.msk [vmem:[#allocation2 + $0x7c] sm:$0xf] %vm2211_vm12, %v2178_v3  ;;  %v2176_v4 = vpop.permute.xlu0 %2175  ;;  %v3698_v6 = vsel %vm3682_vm1, %v3587_v5, 0.0  ;;  %v3762_v7 = vmul.f32 %v3587_v5, %v3587_v5  ;;  %v3805_v26 = vsel %vm3682_vm1, %v3764_v15, 0.0 }
 0x271   : > { %2242 = vst.msk [vmem:[#allocation2 + $0x78] sm:$0xf] %vm2211_vm12, %v2176_v4  ;;  %v3699_v8 = vadd.f32 %v3698_v6, %v3697_v46  ;;  %v4361_v9 = vpop.f32.mrf.mxu0 }
 0x272   : > { %3864 = vst.msk [vmem:[%s5859_s8 + $0x40] sm:$0xff] %vm3682_vm1, %v3587_v5  ;;  %v3801_v10 = vsel %vm3682_vm1, %v3762_v7, 0.0  ;;  %3867 = vst.msk [vmem:[%s5859_s8 + $0x58] sm:$0xff] %vm3682_vm1, %v4361_v9  ;;  %v3765_v20 = vmul.f32 %v4361_v9, %v4361_v9  ;;  %v3704_v28 = vsel %vm3682_vm1, %v4361_v9, 0.0 }
 0x273   : > { %v2368_v11 = vpop.permute.xlu1 %2367  ;;  %v3802_v12 = vadd.f32 %v3801_v10, %v3800_v50  ;;  %v3590_v14 = vpop.f32.mrf.mxu0 }
 0x274   : > { %2435 = vst.msk [vmem:[#allocation2 + $0x74] sm:$0xf] %vm2405_vm13, %v2368_v11  ;;  %v2366_v13 = vpop.permute.xlu0 %2365  ;;  %v3700_v16 = vsel %vm3682_vm1, %v3590_v14, 0.0  ;;  %v3763_v17 = vmul.f32 %v3590_v14, %v3590_v14  ;;  %v3807_v30 = vsel %vm3682_vm1, %v3765_v20, 0.0 }
 0x275   : > { %2434 = vst.msk [vmem:[#allocation2 + $0x70] sm:$0xf] %vm2405_vm13, %v2366_v13  ;;  %v3701_v18 = vadd.f32 %v3700_v16, %v3699_v8 }
 0x276   : > { %3865 = vst.msk [vmem:[%s5859_s8 + $0x48] sm:$0xff] %vm3682_vm1, %v3590_v14  ;;  %v3803_v21 = vsel %vm3682_vm1, %v3763_v17, 0.0 }
 0x277   : > { %v2372_v22 = vpop.permute.xlu1 %2371  ;;  %v3703_v23 = vadd.f32 %v3702_v19, %v3701_v18  ;;  %v3804_v24 = vadd.f32 %v3803_v21, %v3802_v12 }
 0x278   : > { %2437 = vst.msk [vmem:[#allocation2 + $0x7c] sm:$0xf] %vm2405_vm13, %v2372_v22  ;;  %v2370_v25 = vpop.permute.xlu0 %2369 }
 0x279   : > { %2436 = vst.msk [vmem:[#allocation2 + $0x78] sm:$0xf] %vm2405_vm13, %v2370_v25  ;;  %v3806_v29 = vadd.f32 %v3805_v26, %v3804_v24  ;;  %v3705_v27 = vadd.f32 %v3704_v28, %v3703_v23 }
 0x27b   : > { %v2929_v31 = vpop.permute.xlu1 %2928  ;;  %v3808_v33 = vadd.f32 %v3807_v30, %v3806_v29 }
 0x27c   : > { %2996 = vst.msk [vmem:[#allocation2 + $0x74] sm:$0xf] %vm2966_vm14, %v2929_v31  ;;  %v2927_v32 = vpop.permute.xlu0 %2926 }
 0x27d   : > { %2995 = vst.msk [vmem:[#allocation2 + $0x70] sm:$0xf] %vm2966_vm14, %v2927_v32 }
 0x27f   : > { %v2933_v34 = vpop.permute.xlu1 %2932 }
 0x280   : > { %2998 = vst.msk [vmem:[#allocation2 + $0x7c] sm:$0xf] %vm2966_vm14, %v2933_v34  ;;  %v2931_v35 = vpop.permute.xlu0 %2930 }
 0x281   : > { %2997 = vst.msk [vmem:[#allocation2 + $0x78] sm:$0xf] %vm2966_vm14, %v2931_v35 }
 0x283   : > { %v3266_v36 = vpop.permute.xlu1 %3265 }
 0x284   : > { %3333 = vst.msk [vmem:[#allocation2 + $0x74] sm:$0xf] %vm3303_vm15, %v3266_v36  ;;  %v3264_v37 = vpop.permute.xlu0 %3263 }
 0x285   : > { %3332 = vst.msk [vmem:[#allocation2 + $0x70] sm:$0xf] %vm3303_vm15, %v3264_v37 }
 0x287   : > { %v3270_v38 = vpop.permute.xlu1 %3269 }
 0x288   : > { %3335 = vst.msk [vmem:[#allocation2 + $0x7c] sm:$0xf] %vm3303_vm15, %v3270_v38  ;;  %v3268_v62 = vpop.permute.xlu0 %3267 }
 0x289   : > { %3334 = vst.msk [vmem:[#allocation2 + $0x78] sm:$0xf] %vm3303_vm15, %v3268_v62 }
 0x28c   : > { %v4424_v39 = vld [vmem:[#allocation2 + $0x70] sm:$0xff]  }
 0x28d   : > { %4378 = vmatprep.mubr.msk.bf16.mxu1 %vm3468_vm0, %v4424_v39 }
 0x290   : > { %v4425_v40 = vld [vmem:[#allocation2 + $0x78] sm:$0xff]  }
 0x291   : > { %4379 = vmatmul.mubr.msk.bf16.gmra.mxu1 %vm3468_vm0, %v4425_v40 }
 0x295   : > { %v4364_v41 = vpop.f32.mrf.mxu0 }
 0x296   : > { %3870 = vst.msk [vmem:[%s5859_s8 + $0x70] sm:$0xff] %vm3682_vm1, %v4364_v41  ;;  %v3768_v50 = vmul.f32 %v4364_v41, %v4364_v41  ;;  %v3710_v54 = vsel %vm3682_vm1, %v4364_v41, 0.0 }
 0x297   : > { %v3603_v42 = vpop.f32.mrf.mxu0 }
 0x298   : > { %v3706_v44 = vsel %vm3682_vm1, %v3603_v42, 0.0  ;;  %v3766_v43 = vmul.f32 %v3603_v42, %v3603_v42  ;;  %3868 = vst.msk [vmem:[%s5859_s8 + $0x60] sm:$0xff] %vm3682_vm1, %v3603_v42  ;;  %v3813_v59 = vsel %vm3682_vm1, %v3768_v50, 0.0 }
 0x299   : > { %v3707_v45 = vadd.f32 %v3706_v44, %v3705_v27  ;;  %v4365_v46 = vpop.f32.mrf.mxu0 }
 0x29a   : > { %v3809_v47 = vsel %vm3682_vm1, %v3766_v43, 0.0  ;;  %3871 = vst.msk [vmem:[%s5859_s8 + $0x78] sm:$0xff] %vm3682_vm1, %v4365_v46  ;;  %v3769_v55 = vmul.f32 %v4365_v46, %v4365_v46  ;;  %v3712_v60 = vsel %vm3682_vm1, %v4365_v46, 0.0 }
 0x29b   : > { %v3810_v48 = vadd.f32 %v3809_v47, %v3808_v33  ;;  %v3606_v49 = vpop.f32.mrf.mxu0 }
 0x29c   : > { %v3708_v51 = vsel %vm3682_vm1, %v3606_v49, 0.0  ;;  %v3767_v52 = vmul.f32 %v3606_v49, %v3606_v49  ;;  %3869 = vst.msk [vmem:[%s5859_s8 + $0x68] sm:$0xff] %vm3682_vm1, %v3606_v49  ;;  %v3815_v0 = vsel %vm3682_vm1, %v3769_v55, 0.0 }
 0x29d   : > { %v3709_v53 = vadd.f32 %v3708_v51, %v3707_v45 }
 0x29e   : > { %v3811_v56 = vsel %vm3682_vm1, %v3767_v52, 0.0 }
 0x29f   : > { %v3711_v57 = vadd.f32 %v3710_v54, %v3709_v53  ;;  %v3812_v58 = vadd.f32 %v3811_v56, %v3810_v48 }
 0x2a1   : > { %v3814_v61 = vadd.f32 %v3813_v59, %v3812_v58  ;;  %v3713_v63 = vadd.f32 %v3712_v60, %v3711_v57 }
 0x2a3   : > { %v3816_v1 = vadd.f32 %v3815_v0, %v3814_v61 }
 0x2c1   : > { %v4368_v2 = vpop.f32.mrf.mxu1 }
 0x2c2   : > { %3874 = vst.msk [vmem:[%s5859_s8 + $0x90] sm:$0xff] %vm3682_vm1, %v4368_v2  ;;  %v3772_v11 = vmul.f32 %v4368_v2, %v4368_v2  ;;  %v3718_v15 = vsel %vm3682_vm1, %v4368_v2, 0.0 }
 0x2c3   : > { %v3619_v3 = vpop.f32.mrf.mxu1 }
 0x2c4   : > { %v3714_v4 = vsel %vm3682_vm1, %v3619_v3, 0.0  ;;  %v3770_v5 = vmul.f32 %v3619_v3, %v3619_v3  ;;  %3872 = vst.msk [vmem:[%s5859_s8 + $0x80] sm:$0xff] %vm3682_vm1, %v3619_v3  ;;  %v3821_v20 = vsel %vm3682_vm1, %v3772_v11, 0.0 }
 0x2c5   : > { %v3715_v6 = vadd.f32 %v3714_v4, %v3713_v63  ;;  %v4369_v7 = vpop.f32.mrf.mxu1 }
 0x2c6   : > { %v3817_v8 = vsel %vm3682_vm1, %v3770_v5, 0.0  ;;  %3875 = vst.msk [vmem:[%s5859_s8 + $0x98] sm:$0xff] %vm3682_vm1, %v4369_v7  ;;  %v3773_v16 = vmul.f32 %v4369_v7, %v4369_v7  ;;  %v3720_v21 = vsel %vm3682_vm1, %v4369_v7, 0.0 }
 0x2c7   : > { %v3818_v9 = vadd.f32 %v3817_v8, %v3816_v1  ;;  %v3622_v10 = vpop.f32.mrf.mxu1 }
 0x2c8   : > { %v3716_v12 = vsel %vm3682_vm1, %v3622_v10, 0.0  ;;  %v3771_v13 = vmul.f32 %v3622_v10, %v3622_v10  ;;  %3873 = vst.msk [vmem:[%s5859_s8 + $0x88] sm:$0xff] %vm3682_vm1, %v3622_v10  ;;  %v3823_v24 = vsel %vm3682_vm1, %v3773_v16, 0.0 }
 0x2c9   : > { %v3717_v14 = vadd.f32 %v3716_v12, %v3715_v6 }
 0x2ca   : > { %v3819_v17 = vsel %vm3682_vm1, %v3771_v13, 0.0 }
 0x2cb   : > { %v3719_v18 = vadd.f32 %v3718_v15, %v3717_v14  ;;  %v3820_v19 = vadd.f32 %v3819_v17, %v3818_v9 }
 0x2cd   : > { %v3822_v22 = vadd.f32 %v3821_v20, %v3820_v19  ;;  %v3721_v23 = vadd.f32 %v3720_v21, %v3719_v18 }
 0x2cf   : > { %v3824_v25 = vadd.f32 %v3823_v24, %v3822_v22 }
 0x2f1   : > { %v4372_v26 = vpop.f32.mrf.mxu1 }
 0x2f2   : > { %3878 = vst.msk [vmem:[%s5859_s8 + $0xb0] sm:$0xff] %vm3682_vm1, %v4372_v26  ;;  %v3776_v35 = vmul.f32 %v4372_v26, %v4372_v26  ;;  %v3726_v62 = vsel %vm3682_vm1, %v4372_v26, 0.0 }
 0x2f3   : > { %v3635_v28 = vpop.f32.mrf.mxu1 }
 0x2f4   : > { %v3722_v29 = vsel %vm3682_vm1, %v3635_v28, 0.0  ;;  %v3774_v27 = vmul.f32 %v3635_v28, %v3635_v28  ;;  %3876 = vst.msk [vmem:[%s5859_s8 + $0xa0] sm:$0xff] %vm3682_vm1, %v3635_v28  ;;  %v3829_v44 = vsel %vm3682_vm1, %v3776_v35, 0.0 }
 0x2f5   : > { %v3723_v30 = vadd.f32 %v3722_v29, %v3721_v23  ;;  %v4373_v31 = vpop.f32.mrf.mxu1 }
 0x2f6   : > { %v3825_v32 = vsel %vm3682_vm1, %v3774_v27, 0.0  ;;  %3879 = vst.msk [vmem:[%s5859_s8 + $0xb8] sm:$0xff] %vm3682_vm1, %v4373_v31  ;;  %v3777_v39 = vmul.f32 %v4373_v31, %v4373_v31  ;;  %v3728_v43 = vsel %vm3682_vm1, %v4373_v31, 0.0 }
 0x2f7   : > { %v3826_v33 = vadd.f32 %v3825_v32, %v3824_v25  ;;  %v3638_v34 = vpop.f32.mrf.mxu1 }
 0x2f8   : > { %v3724_v36 = vsel %vm3682_vm1, %v3638_v34, 0.0  ;;  %v3775_v37 = vmul.f32 %v3638_v34, %v3638_v34  ;;  %3877 = vst.msk [vmem:[%s5859_s8 + $0xa8] sm:$0xff] %vm3682_vm1, %v3638_v34  ;;  %v3831_v47 = vsel %vm3682_vm1, %v3777_v39, 0.0 }
 0x2f9   : > { %v3725_v38 = vadd.f32 %v3724_v36, %v3723_v30 }
 0x2fa   : > { %v3827_v40 = vsel %vm3682_vm1, %v3775_v37, 0.0 }
 0x2fb   : > { %v3727_v41 = vadd.f32 %v3726_v62, %v3725_v38  ;;  %v3828_v42 = vadd.f32 %v3827_v40, %v3826_v33 }
 0x2fd   : > { %v3830_v45 = vadd.f32 %v3829_v44, %v3828_v42  ;;  %v3729_v46 = vadd.f32 %v3728_v43, %v3727_v41 }
 0x2ff   : > { %v3832_v48 = vadd.f32 %v3831_v47, %v3830_v45 }
 0x321   : > { %v4376_v49 = vpop.f32.mrf.mxu1 }
 0x322   : > { %3882 = vst.msk [vmem:[%s5859_s8 + $0xd0] sm:$0xff] %vm3682_vm1, %v4376_v49  ;;  %v3780_v63 = vmul.f32 %v4376_v49, %v4376_v49  ;;  %v3734_v1 = vsel %vm3682_vm1, %v4376_v49, 0.0 }
 0x323   : > { %v3651_v50 = vpop.f32.mrf.mxu1 }
 0x324   : > { %3880 = vst.msk [vmem:[%s5859_s8 + $0xc0] sm:$0xff] %vm3682_vm1, %v3651_v50  ;;  %v3778_v53 = vmul.f32 %v3651_v50, %v3651_v50  ;;  %v3730_v54 = vsel %vm3682_vm1, %v3651_v50, 0.0  ;;  %v3837_v4 = vsel %vm3682_vm1, %v3780_v63, 0.0 }
 0x325   : > { %v4377_v51 = vpop.f32.mrf.mxu1  ;;  %v3731_v58 = vadd.f32 %v3730_v54, %v3729_v46 }
 0x326   : > { %3883 = vst.msk [vmem:[%s5859_s8 + $0xd8] sm:$0xff] %vm3682_vm1, %v4377_v51  ;;  %v3833_v56 = vsel %vm3682_vm1, %v3778_v53, 0.0  ;;  %v3781_v5 = vmul.f32 %v4377_v51, %v4377_v51  ;;  %v3736_v8 = vsel %vm3682_vm1, %v4377_v51, 0.0 }
 0x327   : > { %v3654_v52 = vpop.f32.mrf.mxu1  ;;  %v3834_v60 = vadd.f32 %v3833_v56, %v3832_v48 }
 0x328   : > { %3881 = vst.msk [vmem:[%s5859_s8 + $0xc8] sm:$0xff] %vm3682_vm1, %v3654_v52  ;;  %v3779_v55 = vmul.f32 %v3654_v52, %v3654_v52  ;;  %v3732_v57 = vsel %vm3682_vm1, %v3654_v52, 0.0  ;;  %v3839_v13 = vsel %vm3682_vm1, %v3781_v5, 0.0 }
 0x329   : > { %v3733_v61 = vadd.f32 %v3732_v57, %v3731_v58 }
 0x32a   : > { %v3835_v59 = vsel %vm3682_vm1, %v3779_v55, 0.0 }
 0x32b   : > { %v3836_v0 = vadd.f32 %v3835_v59, %v3834_v60  ;;  %v3735_v2 = vadd.f32 %v3734_v1, %v3733_v61 }
 0x32d   : > { %v3838_v6 = vadd.f32 %v3837_v4, %v3836_v0  ;;  %v3737_v11 = vadd.f32 %v3736_v8, %v3735_v2 }
 0x32f   : > { %v3840_v16 = vadd.f32 %v3839_v13, %v3838_v6 }
 0x351   : > { %v4380_v3 = vpop.f32.mrf.mxu1 }
 0x352   : > { %3886 = vst.msk [vmem:[%s5859_s8 + $0xf0] sm:$0xff] %vm3682_vm1, %v4380_v3  ;;  %v3784_v18 = vmul.f32 %v4380_v3, %v4380_v3  ;;  %v3742_v23 = vsel %vm3682_vm1, %v4380_v3, 0.0 }
 0x353   : > { %v3667_v7 = vpop.f32.mrf.mxu1 }
 0x354   : > { %v3738_v9 = vsel %vm3682_vm1, %v3667_v7, 0.0  ;;  %v3782_v10 = vmul.f32 %v3667_v7, %v3667_v7  ;;  %3884 = vst.msk [vmem:[%s5859_s8 + $0xe0] sm:$0xff] %vm3682_vm1, %v3667_v7  ;;  %v3845_v29 = vsel %vm3682_vm1, %v3784_v18, 0.0 }
 0x355   : > { %v4381_v12 = vpop.f32.mrf.mxu1  ;;  %v3739_v15 = vadd.f32 %v3738_v9, %v3737_v11 }
 0x356   : > { %v3841_v14 = vsel %vm3682_vm1, %v3782_v10, 0.0  ;;  %3887 = vst.msk [vmem:[%s5859_s8 + $0xf8] sm:$0xff] %vm3682_vm1, %v4381_v12  ;;  %v3785_v24 = vmul.f32 %v4381_v12, %v4381_v12  ;;  %v3744_v27 = vsel %vm3682_vm1, %v4381_v12, 0.0 }
 0x357   : > { %v3670_v17 = vpop.f32.mrf.mxu1  ;;  %v3842_v21 = vadd.f32 %v3841_v14, %v3840_v16 }
 0x358   : > { %v3740_v19 = vsel %vm3682_vm1, %v3670_v17, 0.0  ;;  %v3783_v20 = vmul.f32 %v3670_v17, %v3670_v17  ;;  %3885 = vst.msk [vmem:[%s5859_s8 + $0xe8] sm:$0xff] %vm3682_vm1, %v3670_v17  ;;  %v3847_v32 = vsel %vm3682_vm1, %v3785_v24, 0.0 }
 0x359   : > { %v3741_v22 = vadd.f32 %v3740_v19, %v3739_v15 }
 0x35a   : > { %v3843_v25 = vsel %vm3682_vm1, %v3783_v20, 0.0 }
 0x35b   : > { %v3743_v26 = vadd.f32 %v3742_v23, %v3741_v22  ;;  %v3844_v28 = vadd.f32 %v3843_v25, %v3842_v21 }
 0x35d   : > { %v3745_v30 = vadd.f32 %v3744_v27, %v3743_v26  ;;  %v3846_v31 = vadd.f32 %v3845_v29, %v3844_v28 }
 0x35f   : > { %v3746_v33 = vrot.slane %v3745_v30, 4  ;;  %v3848_v34 = vadd.f32 %v3847_v32, %v3846_v31 }
 0x361   : > { %v3747_v35 = vadd.f32 %v3746_v33, %v3745_v30  ;;  %v3849_v36 = vrot.slane %v3848_v34, 4 }
 0x363   : > { %v3748_v37 = vrot.slane %v3747_v35, 2  ;;  %v3850_v38 = vadd.f32 %v3849_v36, %v3848_v34 }
 0x365   : > { %v3749_v62 = vadd.f32 %v3748_v37, %v3747_v35  ;;  %v3851_v39 = vrot.slane %v3850_v38, 2 }
 0x367   : > { %v3750_v40 = vrot.slane %v3749_v62, 1  ;;  %v3852_v41 = vadd.f32 %v3851_v39, %v3850_v38 }
 0x369   : > { %v3751_v42 = vadd.f32 %v3750_v40, %v3749_v62  ;;  %v3853_v44 = vrot.slane %v3852_v41, 1 }
 0x36b   : > { %3753 = vst.msk [vmem:[%s181_s14] sm:$0x1] %vm3752_vm2, %v3751_v42  ;;  %v3854_v43 = vadd.f32 %v3853_v44, %v3852_v41 }
 0x36d   : > { %3855 = vst.msk [vmem:[%s181_s14 + $0x1] sm:$0x1] %vm3752_vm2, %v3854_v43 }
 0x36e PF: > { %s14_s12 = sadd.s32 1, %s4432_s12  }
 0x36f   : > { %p11_p4 = scmp.ge.s32.totalorder %s14_s12, 4  }
 0x371   :  { %13 = sbr.rel (!%p11_p4) target bundleno = 1 (0x1), region = 72 }

</bundles_post_ra>
